<compile_context>
chip_gen: v7x
topology: tpu7x:2x2x1
jax: 0.10.0
libtpu: 0.0.40
codegen_flags: <defaults>
</compile_context>

<pallas_src>
import functools

import jax
import jax.numpy as jnp
from jax.experimental import pallas as pl
from jax.experimental.pallas import tpu as pltpu

# ----------------------------- model hyper-params -----------------------------
BS = 2                 # batch size
T = 2                  # temporal extent of backbone features
HIDDEN = 128           # hidden_dim
NUM_GROUPS = 32        # GroupNorm(32, hidden_dim)
NQ = 8                 # num_queries
LAY_N = 3              # transformer.decoder.num_layers
NUM_CLASSES = 8
K_CLS = 16             # trailing feature dim of cls_hs that gets mean-reduced
QUERY_DIM = 4

# backbone feature pyramid (features[1:], channels-last): (T, H, W, C)
FEAT_SHAPES = [(T, 16, 16, 32), (T, 8, 8, 64), (T, 4, 4, 128)]
LEVEL_S = [t * h * w for (t, h, w, _) in FEAT_SHAPES]      # [512, 128, 32]
S_MAX = max(LEVEL_S)
C_MAX = HIDDEN                                             # all cin <= 128

# packed (lane-dense) head-output column layout, width 128
PACK_W = 128
CLS_OFF = 0                              # [0, 8)   class logits
BOX_OFF = NUM_CLASSES                    # [8, 12)  boxes
CB_OFF = NUM_CLASSES + QUERY_DIM         # [12, 15) class_embed_b logits


# ============================ Pallas kernel bodies ============================
def proj_gn_kernel(x_ref, w_ref, b_ref, g_ref, be_ref, m_ref, mt_ref, o_ref,
                   *, num_groups, s_valid):
    """Pointwise / im2col'd conv as matmul, fused with GroupNorm(32, H).

    x_ref : (1, B, S_pad, K)  bf16   channels-last, spatially flattened, padded
    w_ref : (1, K, H)         bf16   conv weight
    b_ref / g_ref / be_ref : (1, 1, H) f32   conv bias / GN gamma / GN beta
    m_ref : (H, G) f32  channel->group one-hot;  mt_ref : (G, H) its transpose
    o_ref : (1, B, S_pad, H)  f32
    s_valid: per-grid-step valid spatial size (rows beyond it are padding).
    """
    lvl = pl.program_id(0)
    s_true = s_valid[0]
    for i in range(1, len(s_valid)):
        s_true = jnp.where(lvl == i, s_valid[i], s_true)

    _, bsz, s_pad, _ = x_ref.shape
    h = o_ref.shape[-1]
    gs = h // num_groups

    w = w_ref[0]                                   # (K, H) bf16
    bias = b_ref[0]                                # (1, H) f32
    gamma = g_ref[0]
    beta = be_ref[0]
    m = m_ref[...]                                 # (H, G)
    mt = mt_ref[...]                               # (G, H)

    row_ids = jax.lax.broadcasted_iota(jnp.int32, (s_pad, 1), 0)
    valid = (row_ids < s_true).astype(jnp.float32)        # (S_pad, 1)
    n = jnp.asarray(s_true * gs, jnp.float32)             # elems / (sample, group)

    for b in range(bsz):                                  # batch folded into block
        y = jnp.dot(x_ref[0, b], w, preferred_element_type=jnp.float32) + bias
        ym = y * valid                                    # zero out padded rows
        # folded statistics: one (2,H)@(H,G) pass for sum and sum-of-squares
        stats = jnp.concatenate(
            [jnp.sum(ym, axis=0, keepdims=True),
             jnp.sum(ym * ym, axis=0, keepdims=True)], axis=0)              # (2, H)
        gstats = jnp.dot(stats, m, preferred_element_type=jnp.float32) / n  # (2, G)
        gmean = gstats[0:1]
        gvar = jnp.maximum(gstats[1:2] - gmean * gmean, 0.0)   # clamp cancellation
        back = jnp.concatenate([gmean, jax.lax.rsqrt(gvar + 1e-5)], axis=0)  # (2, G)
        hstat = jnp.dot(back, mt, preferred_element_type=jnp.float32)        # (2, H)
        yn = (y - hstat[0:1]) * hstat[1:2]
        o_ref[0, b] = (yn * gamma + beta).astype(o_ref.dtype)


def heads_kernel(hs_ref, refp_ref, cls_ref, keep_ref,
                 w1_ref, b1_ref, w2_ref, b2_ref, w3_ref, b3_ref,
                 wcb_ref, bcb_ref, pool_ref, bmask_ref, out_ref):
    """Per decoder-layer head compute (batch folded into the block).

    hs_ref  : (1, B, NQ, H)       f32 decoder hidden states
    refp_ref: (1, B, NQ, 128)     f32 reference points packed into cols [8,12)
    cls_ref : (1, B, NQ, C*K)     f32
    keep_ref: (1, B, NQ, C*K)     f32 dropout keep mask in {0, 2}  (= keep/(1-p))
    w1/w2   : (1, H, H) bf16, b1/b2: (1, 1, H) f32       per-layer bbox MLP
    w3      : (1, H, 128) bf16 (cols 8..11), b3: (1, 1, 128) f32
    wcb     : (H, 128) bf16 (cols 12..14), bcb: (1, 128) f32   class_embed_b
    pool    : (C*K, 128) bf16 (cols 0..7, values 1/K)  dropout-mean pooling
    bmask   : (1, 128) f32  1.0 on box columns
    out_ref : (1, B, NQ, 128) f32 packed slab: logits | boxes | logits_b | 0
    """
    _, bsz, nq, h = hs_ref.shape
    rows = bsz * nq
    packw = out_ref.shape[-1]
    f32 = jnp.float32

    hs = hs_ref[0].reshape(rows, h).astype(jnp.bfloat16)

    # ---- class_embed_b: Linear(hidden, 3) -> columns [CB_OFF, CB_OFF+3) ----
    logitsb = jnp.dot(hs, wcb_ref[...], preferred_element_type=f32) + bcb_ref[...]

    # ---- bbox_embed[layer]: MLP(H, H, 4, 3) with ReLU -> columns [BOX_OFF, +4) ----
    h1 = jnp.maximum(jnp.dot(hs, w1_ref[0], preferred_element_type=f32)
                     + b1_ref[0], 0.0)
    h2 = jnp.maximum(jnp.dot(h1.astype(jnp.bfloat16), w2_ref[0],
                             preferred_element_type=f32) + b2_ref[0], 0.0)
    tmp = jnp.dot(h2.astype(jnp.bfloat16), w3_ref[0],
                  preferred_element_type=f32) + b3_ref[0]
    # tmp[..., :query_dim] += inverse_sigmoid(reference); query_dim == 4 -> all boxes
    r = jnp.clip(refp_ref[0].reshape(rows, packw), 0.0, 1.0)
    inv_sig = jnp.log(jnp.maximum(r, 1e-3) / jnp.maximum(1.0 - r, 1e-3))
    boxes = jax.nn.sigmoid(tmp + inv_sig) * bmask_ref[...]

    # ---- Dropout(0.5, training) + mean over trailing K -> columns [CLS_OFF, +C) ----
    dropped = cls_ref[0].reshape(rows, -1) * keep_ref[0].reshape(rows, -1)
    logits = jnp.dot(dropped.astype(jnp.bfloat16), pool_ref[...],
                     preferred_element_type=f32)

    out_ref[0] = (logits + boxes + logitsb).reshape(bsz, nq, packw).astype(out_ref.dtype)


# ============================== pallas_call wrappers ==========================
def proj_groupnorm(x, w, b, gamma, beta, m, mt, s_valid):
    """x: (L, B, S_pad, K) bf16 -> (L, B, S_pad, HIDDEN) f32; grid over level."""
    nlvl, bsz, s_pad, k = x.shape
    h = w.shape[-1]
    g = m.shape[-1]
    kern = functools.partial(proj_gn_kernel, num_groups=NUM_GROUPS,
                             s_valid=tuple(int(s) for s in s_valid))
    return pl.pallas_call(
        kern,
        out_shape=jax.ShapeDtypeStruct((nlvl, bsz, s_pad, h), jnp.float32),
        grid=(nlvl,),
        in_specs=[
            pl.BlockSpec((1, bsz, s_pad, k), lambda l: (l, 0, 0, 0)),   # x
            pl.BlockSpec((1, k, h), lambda l: (l, 0, 0)),               # conv weight
            pl.BlockSpec((1, 1, h), lambda l: (l, 0, 0)),               # conv bias
            pl.BlockSpec((1, 1, h), lambda l: (l, 0, 0)),               # GN gamma
            pl.BlockSpec((1, 1, h), lambda l: (l, 0, 0)),               # GN beta
            pl.BlockSpec((h, g), lambda l: (0, 0)),                     # group mask
            pl.BlockSpec((g, h), lambda l: (0, 0)),                     # group mask^T
        ],
        out_specs=pl.BlockSpec((1, bsz, s_pad, h), lambda l: (l, 0, 0, 0)),
        compiler_params=pltpu.CompilerParams(dimension_semantics=("parallel",)),
    )(x, w, b, gamma, beta, m, mt)


def run_heads(hs, refp, cls_hs, keep, p):
    lay, bsz, nq, h = hs.shape
    ck = cls_hs.shape[-1]
    return pl.pallas_call(
        heads_kernel,
        out_shape=jax.ShapeDtypeStruct((lay, bsz, nq, PACK_W), jnp.float32),
        grid=(lay,),
        in_specs=[
            pl.BlockSpec((1, bsz, nq, h), lambda l: (l, 0, 0, 0)),       # hs
            pl.BlockSpec((1, bsz, nq, PACK_W), lambda l: (l, 0, 0, 0)),  # ref packed
            pl.BlockSpec((1, bsz, nq, ck), lambda l: (l, 0, 0, 0)),      # cls_hs
            pl.BlockSpec((1, bsz, nq, ck), lambda l: (l, 0, 0, 0)),      # keep mask
            pl.BlockSpec((1, h, h), lambda l: (l, 0, 0)),                # w1
            pl.BlockSpec((1, 1, h), lambda l: (l, 0, 0)),                # b1
            pl.BlockSpec((1, h, h), lambda l: (l, 0, 0)),                # w2
            pl.BlockSpec((1, 1, h), lambda l: (l, 0, 0)),                # b2
            pl.BlockSpec((1, h, PACK_W), lambda l: (l, 0, 0)),           # w3 packed
            pl.BlockSpec((1, 1, PACK_W), lambda l: (l, 0, 0)),           # b3 packed
            pl.BlockSpec((h, PACK_W), lambda l: (0, 0)),                 # wcb packed
            pl.BlockSpec((1, PACK_W), lambda l: (0, 0)),                 # bcb packed
            pl.BlockSpec((ck, PACK_W), lambda l: (0, 0)),                # pool packed
            pl.BlockSpec((1, PACK_W), lambda l: (0, 0)),                 # box col mask
        ],
        out_specs=pl.BlockSpec((1, bsz, nq, PACK_W), lambda l: (l, 0, 0, 0)),
        compiler_params=pltpu.CompilerParams(dimension_semantics=("parallel",)),
    )(hs, refp, cls_hs, keep, p["w1"], p["b1"], p["w2"], p["b2"],
      p["w3_p"], p["b3_p"], p["wcb_p"], p["bcb_p"], p["pool_p"], p["box_mask"])


# ================================= glue / setup ================================
def im2col_3x3x3_s122(x):
    """3x3x3 patches, stride (1,2,2), padding 1.  x: (B,T,H,W,C) -> (B,S_out,27*C)."""
    # TODO(synk): could be replaced by jax.lax.conv_general_dilated_patches; kept as
    # explicit slices for robustness (pure XLA glue, not kernel compute).
    bsz, t, hh, ww, c = x.shape
    xp = jnp.pad(x, ((0, 0), (1, 1), (1, 1), (1, 1), (0, 0)))
    to = t
    ho = (hh + 2 - 3) // 2 + 1
    wo = (ww + 2 - 3) // 2 + 1
    cols = []
    for dt in range(3):
        for dh in range(3):
            for dw in range(3):
                sl = xp[:, dt:dt + to,
                        dh:dh + 2 * (ho - 1) + 1:2,
                        dw:dw + 2 * (wo - 1) + 1:2, :]
                cols.append(sl)
    patches = jnp.concatenate(cols, axis=-1)            # (B, To, Ho, Wo, 27*C)
    return patches.reshape(bsz, to * ho * wo, 27 * c), (to, ho, wo)


def xavier_uniform(key, shape, fan_in, fan_out):
    bound = (6.0 / (fan_in + fan_out)) ** 0.5
    return jax.random.uniform(key, shape, jnp.float32, -bound, bound)


def linear_default(key, shape, fan_in):
    bound = 1.0 / (fan_in ** 0.5)
    return jax.random.uniform(key, shape, jnp.float32, -bound, bound)


def build_params(key):
    keys = jax.random.split(key, 12)
    p = {}

    # input_proj[0:3]: Conv3d(cin, hidden, 1); weights zero-padded to C_MAX rows
    ws = []
    for i, (_, _, _, cin) in enumerate(FEAT_SHAPES):
        w = xavier_uniform(keys[i], (cin, HIDDEN), cin, HIDDEN)
        ws.append(jnp.zeros((C_MAX, HIDDEN), jnp.float32).at[:cin].set(w))
    p["proj_w"] = jnp.stack(ws, axis=0).astype(jnp.bfloat16)       # (3, 128, 128)
    p["proj_b"] = jnp.zeros((len(FEAT_SHAPES), 1, HIDDEN), jnp.float32)
    p["proj_gamma"] = jnp.ones((len(FEAT_SHAPES), 1, HIDDEN), jnp.float32)
    p["proj_beta"] = jnp.zeros((len(FEAT_SHAPES), 1, HIDDEN), jnp.float32)

    # input_proj[3]: Conv3d(cin, hidden, 3, stride (1,2,2), pad 1) via im2col
    cin3 = FEAT_SHAPES[-1][-1]
    p["proj3_w"] = xavier_uniform(keys[3], (27 * cin3, HIDDEN),
                                  27 * cin3, 27 * HIDDEN)[None].astype(jnp.bfloat16)
    p["proj3_b"] = jnp.zeros((1, 1, HIDDEN), jnp.float32)
    p["proj3_gamma"] = jnp.ones((1, 1, HIDDEN), jnp.float32)
    p["proj3_beta"] = jnp.zeros((1, 1, HIDDEN), jnp.float32)

    # class_embed_b: Linear(hidden, 3), packed into columns [CB_OFF, CB_OFF+3)
    wcb = linear_default(keys[4], (HIDDEN, 3), HIDDEN)
    bcb = linear_default(keys[5], (3,), HIDDEN)
    p["wcb_p"] = (jnp.zeros((HIDDEN, PACK_W), jnp.float32)
                  .at[:, CB_OFF:CB_OFF + 3].set(wcb)).astype(jnp.bfloat16)
    p["bcb_p"] = jnp.zeros((1, PACK_W), jnp.float32).at[0, CB_OFF:CB_OFF + 3].set(bcb)

    # bbox_embed[lvl]: MLP(hidden, hidden, 4, 3); last layer zero-init (packed cols)
    p["w1"] = linear_default(keys[6], (LAY_N, HIDDEN, HIDDEN),
                             HIDDEN).astype(jnp.bfloat16)
    p["b1"] = linear_default(keys[7], (LAY_N, 1, HIDDEN), HIDDEN)
    p["w2"] = linear_default(keys[8], (LAY_N, HIDDEN, HIDDEN),
                             HIDDEN).astype(jnp.bfloat16)
    p["b2"] = linear_default(keys[9], (LAY_N, 1, HIDDEN), HIDDEN)
    p["w3_p"] = jnp.zeros((LAY_N, HIDDEN, PACK_W), jnp.bfloat16)   # zero-init
    p["b3_p"] = jnp.zeros((LAY_N, 1, PACK_W), jnp.float32)

    # refpoint_embed (nn.Embedding(num_queries, 4)), default normal init
    p["refpoint"] = jax.random.normal(keys[10], (NQ, 4), jnp.float32)

    # constant masks hoisted out of the kernel bodies (perf feedback)
    gsz = HIDDEN // NUM_GROUPS
    m = (jnp.arange(HIDDEN)[:, None] // gsz
         == jnp.arange(NUM_GROUPS)[None, :]).astype(jnp.float32)    # (H, G)
    p["gn_m"] = m
    p["gn_mt"] = m.T                                                # (G, H)
    ck = NUM_CLASSES * K_CLS
    pool = (jnp.arange(ck)[:, None] // K_CLS
            == jnp.arange(NUM_CLASSES)[None, :]).astype(jnp.float32) / K_CLS
    p["pool_p"] = (jnp.zeros((ck, PACK_W), jnp.float32)
                   .at[:, CLS_OFF:CLS_OFF + NUM_CLASSES].set(pool)).astype(jnp.bfloat16)
    p["box_mask"] = (jnp.zeros((1, PACK_W), jnp.float32)
                     .at[0, BOX_OFF:BOX_OFF + QUERY_DIM].set(1.0))
    return p


def detr_forward(features, hs, cls_hs, reference, params, dropout_key):
    """features: list of 3 channels-last backbone maps (B,T,H,W,C).
    hs/cls_hs/reference: synthetic transformer outputs."""
    # ---- input_proj[0:3] (1x1x1 conv + GroupNorm) fused into ONE pallas_call ----
    xs = []
    for feat in features:
        b, t, hh, ww, c = feat.shape
        xf = feat.reshape(b, t * hh * ww, c)
        xf = jnp.pad(xf, ((0, 0), (0, S_MAX - xf.shape[1]), (0, C_MAX - c)))
        xs.append(xf)
    x_stack = jnp.stack(xs, axis=0).astype(jnp.bfloat16)           # (3, B, 512, 128)
    proj_out = proj_groupnorm(x_stack, params["proj_w"], params["proj_b"],
                              params["proj_gamma"], params["proj_beta"],
                              params["gn_m"], params["gn_mt"], LEVEL_S)
    srcs = [proj_out[lvl, :, :s, :] for lvl, s in enumerate(LEVEL_S)]

    # ---- input_proj[3]: strided 3x3x3 conv + GroupNorm on the last backbone map ----
    patches, _ = im2col_3x3x3_s122(features[-1])                   # (B, 8, 27*C)
    p3 = proj_groupnorm(patches[None].astype(jnp.bfloat16),
                        params["proj3_w"], params["proj3_b"],
                        params["proj3_gamma"], params["proj3_beta"],
                        params["gn_m"], params["gn_mt"], [patches.shape[1]])
    srcs.append(p3[0])
    # TODO(synk): mask F.interpolate + positional-encoding recomputation for the
    # extra level live in the external backbone[1] module and are not modeled.

    # ---- prediction heads (grid over decoder layers; batch folded into block) ----
    # nn.Dropout(0.5, training=True): deterministic host-side mask (in-kernel
    # hardware PRNG is unavailable in interpret mode); values {0, 2} = keep/(1-p).
    keep = jax.random.bernoulli(dropout_key, 0.5, cls_hs.shape).astype(jnp.float32) * 2.0
    refp = jnp.zeros(reference.shape[:-1] + (PACK_W,), jnp.float32)
    refp = refp.at[..., BOX_OFF:BOX_OFF + QUERY_DIM].set(reference)
    packed = run_heads(hs, refp, cls_hs, keep, params)             # (L, B, NQ, 128)

    outputs_class = packed[..., CLS_OFF:CLS_OFF + NUM_CLASSES]
    outputs_coord = packed[..., BOX_OFF:BOX_OFF + QUERY_DIM]
    outputs_class_b = packed[..., CB_OFF:CB_OFF + 3]

    out = {"pred_logits": outputs_class[-1],
           "pred_boxes": outputs_coord[-1],
           "pred_logits_b": outputs_class_b[-1]}
    out["aux_outputs"] = [
        {"pred_logits": a, "pred_boxes": bb, "pred_logits_b": c}
        for a, bb, c in zip(outputs_class[:-1], outputs_coord[:-1],
                            outputs_class_b[:-1])]
    return out, srcs


if __name__ == "__main__":
    key = jax.random.PRNGKey(0)
    k_feat, k_hs, k_cls, k_ref, k_par, k_drop = jax.random.split(key, 6)

    params = build_params(k_par)

    # synthetic backbone outputs (features[1:]) and transformer outputs
    fkeys = jax.random.split(k_feat, len(FEAT_SHAPES))
    features = [jax.random.normal(fk, (BS,) + s, jnp.float32)
                for fk, s in zip(fkeys, FEAT_SHAPES)]
    hs = jax.random.normal(k_hs, (LAY_N, BS, NQ, HIDDEN), jnp.float32)
    cls_hs = jax.random.normal(k_cls, (LAY_N, BS, NQ, NUM_CLASSES * K_CLS), jnp.float32)
    reference = jax.nn.sigmoid(
        jnp.broadcast_to(params["refpoint"][None, None], (LAY_N, BS, NQ, 4))
        + 0.1 * jax.random.normal(k_ref, (LAY_N, BS, NQ, 4), jnp.float32))

    out, srcs = detr_forward(features, hs, cls_hs, reference, params, k_drop)
    jax.block_until_ready((out["pred_logits"], out["pred_boxes"],
                           out["pred_logits_b"], srcs))

    assert out["pred_logits"].shape == (BS, NQ, NUM_CLASSES)
    assert out["pred_boxes"].shape == (BS, NQ, 4)
    assert out["pred_logits_b"].shape == (BS, NQ, 3)
    assert len(out["aux_outputs"]) == LAY_N - 1
    assert len(srcs) == 4 and all(s.shape[-1] == HIDDEN for s in srcs)
    assert bool(jnp.all(jnp.isfinite(out["pred_logits"])))
    assert bool(jnp.all((out["pred_boxes"] >= 0.0) & (out["pred_boxes"] <= 1.0)))
    print("KERNEL_OK")
</pallas_src>

<mosaic_0001>
module attributes {stable_mosaic.version = 11 : i64} {
  func.func @proj_gn_kernel(%arg0: i32, %arg1: memref<1x2x512x128xbf16, #tpu.memory_space<vmem>>, %arg2: memref<1x128x128xbf16, #tpu.memory_space<vmem>>, %arg3: memref<1x1x128xf32, #tpu.memory_space<vmem>>, %arg4: memref<1x1x128xf32, #tpu.memory_space<vmem>>, %arg5: memref<1x1x128xf32, #tpu.memory_space<vmem>>, %arg6: memref<128x32xf32, #tpu.memory_space<vmem>>, %arg7: memref<32x128xf32, #tpu.memory_space<vmem>>, %arg8: memref<1x2x512x128xf32, #tpu.memory_space<vmem>>) attributes {dimension_semantics = [#tpu.dimension_semantics<parallel>], iteration_bounds = array<i64: 3>, scalar_prefetch = 0 : i64, scratch_operands = 0 : i64, tpu.core_type = #tpu.core_type<tc>, window_params = [{transform_indices = @transform_0, window_bounds = array<i64: 1, 2, 512, 128>}, {transform_indices = @transform_1, window_bounds = array<i64: 1, 128, 128>}, {transform_indices = @transform_2, window_bounds = array<i64: 1, 1, 128>}, {transform_indices = @transform_3, window_bounds = array<i64: 1, 1, 128>}, {transform_indices = @transform_4, window_bounds = array<i64: 1, 1, 128>}, {pipeline_mode = #tpu.pipeline_mode<synchronous>, transform_indices = @transform_5, window_bounds = array<i64: 128, 32>}, {pipeline_mode = #tpu.pipeline_mode<synchronous>, transform_indices = @transform_6, window_bounds = array<i64: 32, 128>}, {transform_indices = @transform_7, window_bounds = array<i64: 1, 2, 512, 128>}]} {
    %c1_i32 = arith.constant 1 : i32
    %0 = arith.cmpi eq, %arg0, %c1_i32 : i32
    %c128_i32 = arith.constant 128 : i32
    %c512_i32 = arith.constant 512 : i32
    %1 = arith.select %0, %c128_i32, %c512_i32 : i32
    %c2_i32 = arith.constant 2 : i32
    %2 = arith.cmpi eq, %arg0, %c2_i32 : i32
    %c32_i32 = arith.constant 32 : i32
    %3 = arith.select %2, %c32_i32, %1 : i32
    %c0 = arith.constant 0 : index
    %c0_0 = arith.constant 0 : index
    %c0_1 = arith.constant 0 : index
    %4 = vector.load %arg2[%c0, %c0_0, %c0_1] : memref<1x128x128xbf16, #tpu.memory_space<vmem>>, vector<1x128x128xbf16>
    %5 = vector.shape_cast %4 : vector<1x128x128xbf16> to vector<128x128xbf16>
    %c0_2 = arith.constant 0 : index
    %c0_3 = arith.constant 0 : index
    %c0_4 = arith.constant 0 : index
    %6 = vector.load %arg3[%c0_2, %c0_3, %c0_4] : memref<1x1x128xf32, #tpu.memory_space<vmem>>, vector<1x1x128xf32>
    %7 = vector.shape_cast %6 : vector<1x1x128xf32> to vector<1x128xf32>
    %c0_5 = arith.constant 0 : index
    %c0_6 = arith.constant 0 : index
    %c0_7 = arith.constant 0 : index
    %8 = vector.load %arg4[%c0_5, %c0_6, %c0_7] : memref<1x1x128xf32, #tpu.memory_space<vmem>>, vector<1x1x128xf32>
    %9 = vector.shape_cast %8 : vector<1x1x128xf32> to vector<1x128xf32>
    %c0_8 = arith.constant 0 : index
    %c0_9 = arith.constant 0 : index
    %c0_10 = arith.constant 0 : index
    %10 = vector.load %arg5[%c0_8, %c0_9, %c0_10] : memref<1x1x128xf32, #tpu.memory_space<vmem>>, vector<1x1x128xf32>
    %11 = vector.shape_cast %10 : vector<1x1x128xf32> to vector<1x128xf32>
    %c0_11 = arith.constant 0 : index
    %c0_12 = arith.constant 0 : index
    %12 = vector.load %arg6[%c0_11, %c0_12] : memref<128x32xf32, #tpu.memory_space<vmem>>, vector<128x32xf32>
    %c0_13 = arith.constant 0 : index
    %c0_14 = arith.constant 0 : index
    %13 = vector.load %arg7[%c0_13, %c0_14] : memref<32x128xf32, #tpu.memory_space<vmem>>, vector<32x128xf32>
    %14 = tpu.iota {dimensions = array<i32: 0>} : vector<512x1xi32>
    %15 = vector.broadcast %3 : i32 to vector<512x1xi32>
    %16 = arith.cmpi slt, %14, %15 : vector<512x1xi32>
    %17 = arith.extui %16 : vector<512x1xi1> to vector<512x1xi32>
    %18 = arith.sitofp %17 : vector<512x1xi32> to vector<512x1xf32>
    %c4_i32 = arith.constant 4 : i32
    %19 = arith.muli %3, %c4_i32 : i32
    %20 = arith.sitofp %19 : i32 to f32
    %c0_15 = arith.constant 0 : index
    %c0_16 = arith.constant 0 : index
    %c0_17 = arith.constant 0 : index
    %c0_18 = arith.constant 0 : index
    %21 = vector.load %arg1[%c0_15, %c0_16, %c0_17, %c0_18] : memref<1x2x512x128xbf16, #tpu.memory_space<vmem>>, vector<1x1x512x128xbf16>
    %22 = vector.shape_cast %21 : vector<1x1x512x128xbf16> to vector<512x128xbf16>
    %cst = arith.constant dense<0.000000e+00> : vector<512x128xf32>
    %23 = tpu.matmul %22, %5, %cst {dimension_numbers = #tpu.dot_dimension_numbers<[1], [0], [0], [1], [0, 0, 1, 1], [], []>} : vector<512x128xbf16>, vector<128x128xbf16>, vector<512x128xf32> -> vector<512x128xf32>
    %24 = vector.broadcast %7 : vector<1x128xf32> to vector<512x128xf32>
    %25 = arith.addf %23, %24 : vector<512x128xf32>
    %26 = vector.broadcast %18 : vector<512x1xf32> to vector<512x128xf32>
    %27 = arith.mulf %25, %26 : vector<512x128xf32>
    %cst_19 = arith.constant dense<0.000000e+00> : vector<128xf32>
    %28 = vector.multi_reduction <add>, %27, %cst_19 [0] : vector<512x128xf32> to vector<128xf32>
    %29 = vector.shape_cast %28 : vector<128xf32> to vector<1x128xf32>
    %30 = arith.mulf %27, %27 : vector<512x128xf32>
    %cst_20 = arith.constant dense<0.000000e+00> : vector<128xf32>
    %31 = vector.multi_reduction <add>, %30, %cst_20 [0] : vector<512x128xf32> to vector<128xf32>
    %32 = vector.shape_cast %31 : vector<128xf32> to vector<1x128xf32>
    %33 = tpu.concatenate %29, %32 in 0 : vector<1x128xf32>, vector<1x128xf32> -> vector<2x128xf32>
    %cst_21 = arith.constant dense<0.000000e+00> : vector<2x32xf32>
    %34 = tpu.matmul %33, %12, %cst_21 {dimension_numbers = #tpu.dot_dimension_numbers<[1], [0], [0], [1], [0, 0, 1, 1], [], []>} : vector<2x128xf32>, vector<128x32xf32>, vector<2x32xf32> -> vector<2x32xf32>
    %35 = vector.broadcast %20 : f32 to vector<2x32xf32>
    %36 = arith.divf %34, %35 : vector<2x32xf32>
    %37 = vector.extract_strided_slice %36 {offsets = [0, 0], sizes = [1, 32], strides = [1, 1]} : vector<2x32xf32> to vector<1x32xf32>
    %38 = vector.extract_strided_slice %36 {offsets = [1, 0], sizes = [1, 32], strides = [1, 1]} : vector<2x32xf32> to vector<1x32xf32>
    %39 = arith.mulf %37, %37 : vector<1x32xf32>
    %40 = arith.subf %38, %39 : vector<1x32xf32>
    %cst_22 = arith.constant 0.000000e+00 : f32
    %41 = vector.broadcast %cst_22 : f32 to vector<1x32xf32>
    %42 = arith.maximumf %40, %41 : vector<1x32xf32>
    %cst_23 = arith.constant 9.99999974E-6 : f32
    %43 = vector.broadcast %cst_23 : f32 to vector<1x32xf32>
    %44 = arith.addf %42, %43 : vector<1x32xf32>
    %45 = math.rsqrt %44 : vector<1x32xf32>
    %46 = tpu.concatenate %37, %45 in 0 : vector<1x32xf32>, vector<1x32xf32> -> vector<2x32xf32>
    %cst_24 = arith.constant dense<0.000000e+00> : vector<2x128xf32>
    %47 = tpu.matmul %46, %13, %cst_24 {dimension_numbers = #tpu.dot_dimension_numbers<[1], [0], [0], [1], [0, 0, 1, 1], [], []>} : vector<2x32xf32>, vector<32x128xf32>, vector<2x128xf32> -> vector<2x128xf32>
    %48 = vector.extract_strided_slice %47 {offsets = [0, 0], sizes = [1, 128], strides = [1, 1]} : vector<2x128xf32> to vector<1x128xf32>
    %49 = vector.broadcast %48 : vector<1x128xf32> to vector<512x128xf32>
    %50 = arith.subf %25, %49 : vector<512x128xf32>
    %51 = vector.extract_strided_slice %47 {offsets = [1, 0], sizes = [1, 128], strides = [1, 1]} : vector<2x128xf32> to vector<1x128xf32>
    %52 = vector.broadcast %51 : vector<1x128xf32> to vector<512x128xf32>
    %53 = arith.mulf %50, %52 : vector<512x128xf32>
    %54 = vector.broadcast %9 : vector<1x128xf32> to vector<512x128xf32>
    %55 = arith.mulf %53, %54 : vector<512x128xf32>
    %56 = vector.broadcast %11 : vector<1x128xf32> to vector<512x128xf32>
    %57 = arith.addf %55, %56 : vector<512x128xf32>
    %c0_25 = arith.constant 0 : index
    %c0_26 = arith.constant 0 : index
    %c0_27 = arith.constant 0 : index
    %c0_28 = arith.constant 0 : index
    %58 = vector.load %arg8[%c0_25, %c0_26, %c0_27, %c0_28] : memref<1x2x512x128xf32, #tpu.memory_space<vmem>>, vector<1x1x512x128xf32>
    %59 = vector.shape_cast %58 : vector<1x1x512x128xf32> to vector<512x128xf32>
    %60 = vector.shape_cast %57 : vector<512x128xf32> to vector<1x1x512x128xf32>
    tpu.vector_store %arg8[%c0_25, %c0_26, %c0_27, %c0_28], %60 {strides = array<i32>} : memref<1x2x512x128xf32, #tpu.memory_space<vmem>>, vector<1x1x512x128xf32>,
    %c0_29 = arith.constant 0 : index
    %c1 = arith.constant 1 : index
    %c0_30 = arith.constant 0 : index
    %c0_31 = arith.constant 0 : index
    %61 = vector.load %arg1[%c0_29, %c1, %c0_30, %c0_31] : memref<1x2x512x128xbf16, #tpu.memory_space<vmem>>, vector<1x1x512x128xbf16>
    %62 = vector.shape_cast %61 : vector<1x1x512x128xbf16> to vector<512x128xbf16>
    %cst_32 = arith.constant dense<0.000000e+00> : vector<512x128xf32>
    %63 = tpu.matmul %62, %5, %cst_32 {dimension_numbers = #tpu.dot_dimension_numbers<[1], [0], [0], [1], [0, 0, 1, 1], [], []>} : vector<512x128xbf16>, vector<128x128xbf16>, vector<512x128xf32> -> vector<512x128xf32>
    %64 = vector.broadcast %7 : vector<1x128xf32> to vector<512x128xf32>
    %65 = arith.addf %63, %64 : vector<512x128xf32>
    %66 = vector.broadcast %18 : vector<512x1xf32> to vector<512x128xf32>
    %67 = arith.mulf %65, %66 : vector<512x128xf32>
    %cst_33 = arith.constant dense<0.000000e+00> : vector<128xf32>
    %68 = vector.multi_reduction <add>, %67, %cst_33 [0] : vector<512x128xf32> to vector<128xf32>
    %69 = vector.shape_cast %68 : vector<128xf32> to vector<1x128xf32>
    %70 = arith.mulf %67, %67 : vector<512x128xf32>
    %cst_34 = arith.constant dense<0.000000e+00> : vector<128xf32>
    %71 = vector.multi_reduction <add>, %70, %cst_34 [0] : vector<512x128xf32> to vector<128xf32>
    %72 = vector.shape_cast %71 : vector<128xf32> to vector<1x128xf32>
    %73 = tpu.concatenate %69, %72 in 0 : vector<1x128xf32>, vector<1x128xf32> -> vector<2x128xf32>
    %cst_35 = arith.constant dense<0.000000e+00> : vector<2x32xf32>
    %74 = tpu.matmul %73, %12, %cst_35 {dimension_numbers = #tpu.dot_dimension_numbers<[1], [0], [0], [1], [0, 0, 1, 1], [], []>} : vector<2x128xf32>, vector<128x32xf32>, vector<2x32xf32> -> vector<2x32xf32>
    %75 = vector.broadcast %20 : f32 to vector<2x32xf32>
    %76 = arith.divf %74, %75 : vector<2x32xf32>
    %77 = vector.extract_strided_slice %76 {offsets = [0, 0], sizes = [1, 32], strides = [1, 1]} : vector<2x32xf32> to vector<1x32xf32>
    %78 = vector.extract_strided_slice %76 {offsets = [1, 0], sizes = [1, 32], strides = [1, 1]} : vector<2x32xf32> to vector<1x32xf32>
    %79 = arith.mulf %77, %77 : vector<1x32xf32>
    %80 = arith.subf %78, %79 : vector<1x32xf32>
    %cst_36 = arith.constant 0.000000e+00 : f32
    %81 = vector.broadcast %cst_36 : f32 to vector<1x32xf32>
    %82 = arith.maximumf %80, %81 : vector<1x32xf32>
    %cst_37 = arith.constant 9.99999974E-6 : f32
    %83 = vector.broadcast %cst_37 : f32 to vector<1x32xf32>
    %84 = arith.addf %82, %83 : vector<1x32xf32>
    %85 = math.rsqrt %84 : vector<1x32xf32>
    %86 = tpu.concatenate %77, %85 in 0 : vector<1x32xf32>, vector<1x32xf32> -> vector<2x32xf32>
    %cst_38 = arith.constant dense<0.000000e+00> : vector<2x128xf32>
    %87 = tpu.matmul %86, %13, %cst_38 {dimension_numbers = #tpu.dot_dimension_numbers<[1], [0], [0], [1], [0, 0, 1, 1], [], []>} : vector<2x32xf32>, vector<32x128xf32>, vector<2x128xf32> -> vector<2x128xf32>
    %88 = vector.extract_strided_slice %87 {offsets = [0, 0], sizes = [1, 128], strides = [1, 1]} : vector<2x128xf32> to vector<1x128xf32>
    %89 = vector.broadcast %88 : vector<1x128xf32> to vector<512x128xf32>
    %90 = arith.subf %65, %89 : vector<512x128xf32>
    %91 = vector.extract_strided_slice %87 {offsets = [1, 0], sizes = [1, 128], strides = [1, 1]} : vector<2x128xf32> to vector<1x128xf32>
    %92 = vector.broadcast %91 : vector<1x128xf32> to vector<512x128xf32>
    %93 = arith.mulf %90, %92 : vector<512x128xf32>
    %94 = vector.broadcast %9 : vector<1x128xf32> to vector<512x128xf32>
    %95 = arith.mulf %93, %94 : vector<512x128xf32>
    %96 = vector.broadcast %11 : vector<1x128xf32> to vector<512x128xf32>
    %97 = arith.addf %95, %96 : vector<512x128xf32>
    %c0_39 = arith.constant 0 : index
    %c1_40 = arith.constant 1 : index
    %c0_41 = arith.constant 0 : index
    %c0_42 = arith.constant 0 : index
    %98 = vector.load %arg8[%c0_39, %c1_40, %c0_41, %c0_42] : memref<1x2x512x128xf32, #tpu.memory_space<vmem>>, vector<1x1x512x128xf32>
    %99 = vector.shape_cast %98 : vector<1x1x512x128xf32> to vector<512x128xf32>
    %100 = vector.shape_cast %97 : vector<512x128xf32> to vector<1x1x512x128xf32>
    tpu.vector_store %arg8[%c0_39, %c1_40, %c0_41, %c0_42], %100 {strides = array<i32>} : memref<1x2x512x128xf32, #tpu.memory_space<vmem>>, vector<1x1x512x128xf32>,
    return
  }
  func.func @transform_0(%arg0: i32) -> (i32, i32, i32, i32) {
    %c0_i32 = arith.constant 0 : i32
    %c0_i32_0 = arith.constant 0 : i32
    %c0_i32_1 = arith.constant 0 : i32
    %c0_i32_2 = arith.constant 0 : i32
    return %arg0, %c0_i32, %c0_i32_0, %c0_i32_1 : i32, i32, i32, i32
  }
  func.func @transform_1(%arg0: i32) -> (i32, i32, i32) {
    %c0_i32 = arith.constant 0 : i32
    %c0_i32_0 = arith.constant 0 : i32
    %c0_i32_1 = arith.constant 0 : i32
    return %arg0, %c0_i32, %c0_i32_0 : i32, i32, i32
  }
  func.func @transform_2(%arg0: i32) -> (i32, i32, i32) {
    %c0_i32 = arith.constant 0 : i32
    %c0_i32_0 = arith.constant 0 : i32
    %c0_i32_1 = arith.constant 0 : i32
    return %arg0, %c0_i32, %c0_i32_0 : i32, i32, i32
  }
  func.func @transform_3(%arg0: i32) -> (i32, i32, i32) {
    %c0_i32 = arith.constant 0 : i32
    %c0_i32_0 = arith.constant 0 : i32
    %c0_i32_1 = arith.constant 0 : i32
    return %arg0, %c0_i32, %c0_i32_0 : i32, i32, i32
  }
  func.func @transform_4(%arg0: i32) -> (i32, i32, i32) {
    %c0_i32 = arith.constant 0 : i32
    %c0_i32_0 = arith.constant 0 : i32
    %c0_i32_1 = arith.constant 0 : i32
    return %arg0, %c0_i32, %c0_i32_0 : i32, i32, i32
  }
  func.func @transform_5(%arg0: i32) -> (i32, i32) {
    %c0_i32 = arith.constant 0 : i32
    %c0_i32_0 = arith.constant 0 : i32
    %c0_i32_1 = arith.constant 0 : i32
    return %c0_i32, %c0_i32_0 : i32, i32
  }
  func.func @transform_6(%arg0: i32) -> (i32, i32) {
    %c0_i32 = arith.constant 0 : i32
    %c0_i32_0 = arith.constant 0 : i32
    %c0_i32_1 = arith.constant 0 : i32
    return %c0_i32, %c0_i32_0 : i32, i32
  }
  func.func @transform_7(%arg0: i32) -> (i32, i32, i32, i32) {
    %c0_i32 = arith.constant 0 : i32
    %c0_i32_0 = arith.constant 0 : i32
    %c0_i32_1 = arith.constant 0 : i32
    %c0_i32_2 = arith.constant 0 : i32
    return %arg0, %c0_i32, %c0_i32_0, %c0_i32_1 : i32, i32, i32, i32
  }
}

</mosaic_0001>

<bundles_post_ra>
// kernel: tpu_custom_call.1
= control target key start
LH: loop header
LB: loop body
LE: loop exit
PB: predicated region body
PF: predicated region fallthrough
CT: control target
= control target key end

     0   :  { %s8544_s0 = inlined_call_operand.hbm [shape: bf16[3,2,512,128], index: 0, kind: input, shape index: {}]   ;;  %s8545_s1 = inlined_call_operand.hbm [shape: bf16[3,128,128], index: 1, kind: input, shape index: {}]   ;;  %s8546_s2 = inlined_call_operand.hbm [shape: f32[3,1,128], index: 2, kind: input, shape index: {}]   ;;  %s8547_s3 = inlined_call_operand.hbm [shape: f32[3,1,128], index: 3, kind: input, shape index: {}]   ;;  %s8548_s4 = inlined_call_operand.hbm [shape: f32[3,1,128], index: 4, kind: input, shape index: {}]   ;;  %s8549_s5 = inlined_call_operand.vmem [shape: f32[128,32], index: 5, kind: input, shape index: {}]   ;;  %s8550_s6 = inlined_call_operand.hbm [shape: f32[32,128], index: 6, kind: input, shape index: {}]   ;;  %s8551_s7 = inlined_call_operand.hbm [shape: f32[3,2,512,128], index: 7, kind: output, shape index: {}]  }
   0x1   :  { %8755 = sst [smem:[#allocation122_spill]] %s8545_s1 }
   0x2   :  { %8756 = sst [smem:[#allocation123_spill]] %s8547_s3 }
   0x3   :  { %12 = vsyncpa [#allocation3], 0 }
   0x4   :  { %14 = vsyncpa [#allocation3 + $0x1], 0 }
   0x5   :  { %15 = vsyncpa [#allocation6], 0 }
   0x6   :  { %17 = vsyncpa [#allocation6 + $0x1], 0 }
   0x7   :  { %18 = vsyncpa [#allocation9], 0 }
   0x8   :  { %20 = vsyncpa [#allocation9 + $0x1], 0 }
   0x9   :  { %21 = vsyncpa [#allocation12], 0 }
   0xa   :  { %22 = vsyncpa [#allocation4], 0 }
   0xb   :  { %24 = vsyncpa [#allocation4 + $0x1], 0  ;;  %s4806_s24 = smov 0   ;;  %s4808_s25 = smov 0  }
   0xc   :  { %s4810_s26 = smov 0   ;;  %s4812_s27 = smov 0  }
   0xd LB: > { %8757 = sst [smem:[#allocation19_spill]] %s4736_s24  ;;  %s4827_s28 = sadd.s32 1, %s4748_s27   ;;  %s4748_s27 = sphi %s4812_s27, %s9279_s27   ;;  %s4744_s26 = sphi %s4810_s26, %s9281_s26   ;;  %s4740_s25 = sphi %s4808_s25, %s9283_s25   ;;  %s4736_s24 = sphi %s4806_s24, %s9282_s24  }
   0xe   : > { %8758 = sst [smem:[#allocation20_spill]] %s4744_s26  ;;  %s37_s29 = sadd.s32 1, %s4744_s26 }
   0xf   : > { %8759 = sst [smem:[#allocation21_spill]] %s4748_s27  ;;  %s34_s30 = ssub.s32 %s4748_s27, %s4827_s28 }
  0x10   : > { %8760 = sst [smem:[#allocation22_spill]] %s4827_s28  ;;  %p8552_p0 = scmp.ne.s32.totalorder %s4744_s26, %s4740_s25 }
  0x11   : > { %p35_p1 = scmp.eq.s32.totalorder %s34_s30, 0  ;;  %p45_p2 = scmp.eq.s32.totalorder %s4748_s27, 0 }
  0x12   : > { %p4357_p3 = scmp.lt.s32.totalorder %s4748_s27, 3  ;;  %s4843_s9 = sand.u32 1, %s4744_s26  }
  0x13   : > { %s4837_s8 = scalar_select %p35_p1, %s4744_s26, %s37_s29  }
  0x14   : > { %p46_p4 = por %p45_p2, %p8552_p0  ;;  %s283_s11 = sand.u32 1, %s4748_s27  }
  0x15   : > { %8761 = sst [smem:[#allocation23_spill]] %s4837_s8  ;;  %s3591_s12 = sshll.u32 %s4843_s9, 6 }
  0x16   : > { %p4845_p5 = pnand %p4357_p3, %p46_p4  ;;  %s3878_s13 = sshll.u32 %s4748_s27, 10 }
  0x17   : > { %s287_s14 = scalar_lea.vmem [#allocation5], %s3591_s12  ;;  %s8763_s1 = sld [smem:[#allocation122_spill]] }
  0x18   : > { %s8762_s10 = scalar_select %p4845_p5, 1, 0 }
  0x19   : > { %s294_s15 = sshll.u32 %s287_s14, 4  ;;  %s4861_s19 = scalar_lea.sflag [#allocation6], %s283_s11  ;;  %s4857_s15 = int_to_ptr.vmem [resolvable:$true] %s294_s15 }
  0x1a   : > { %p4867_p7 = pneg %p4845_p5 }
  0x1c   : > { %s8764_s21 = scalar_select %p4867_p7, 1, 0 }
  0x1d   : > { %s4855_s18 = scalar_lea.hbm %s8763_s1, %s3878_s13  ;;  %s4497_s29 = scalar_lea.hbm %s8763_s1, 3072 }
  0x1e   : > { %s4492_s20 = scalar_lea.hbm %s4855_s18, 1024  ;;  %p4498_p10 = scmp.lt.u32.totalorder %s4855_s18, %s8763_s1 }
  0x1f   : > { %p4493_p6 = scmp.ne.s32.totalorder %s4855_s18, %s4492_s20  ;;  %p4499_p11 = scmp.lt.u32.totalorder %s4497_s29, %s4492_s20 }
  0x20   : > { %p4501_p13 = scmp.lt.u32.totalorder %s4492_s20, %s4855_s18 }
  0x21   : > { %p4495_p8 = pnand %p4867_p7, %p4493_p6  ;;  %p4500_p12 = por %p4499_p11, %p4498_p10 }
  0x23   : > { %p4496_p9 = pneg %p4495_p8  ;;  %p4502_p1 = por %p4501_p13, %p4500_p12 }
  0x25   : > { %p4503_p2 = pnand %p4502_p1, %p4496_p9 }
  0x27   : > { %4506 = shalt.err (!%p4503_p2)
}
  0x28   : > { %s4507_s13 = scalar_lea.vmem %s4857_s15, 1024  ;;  %s4750_s14 = smov [#allocation5]  }
  0x29   : > { %p4508_p3 = scmp.ne.s32.totalorder %s4857_s15, %s4507_s13  ;;  %s4512_s16 = sshll.u32 %s4750_s14, 4  ;;  %s4513_s16 = int_to_ptr.vmem [resolvable:$false] %s4512_s16 }
  0x2a   : > { %s4514_s17 = scalar_lea.vmem %s4513_s16, 2048  ;;  %p4515_p8 = scmp.lt.s32.totalorder %s4857_s15, %s4513_s16 }
  0x2b   : > { %p4510_p4 = pnand %p4508_p3, %p4867_p7  ;;  %p4516_p0 = scmp.lt.s32.totalorder %s4514_s17, %s4507_s13 }
  0x2d   : > { %p4511_p6 = pneg %p4510_p4  ;;  %p4517_p10 = por %p4516_p0, %p4515_p8 }
  0x2f   : > { %p4518_p11 = pnand %p4517_p10, %p4511_p6 }
  0x31   : > { %4521 = shalt.err (!%p4518_p11)
}
  0x32   : > { %s8553_s20 = smov 64   ;;  %s8554_s22 = smov 4  }
  0x33   : > { %4342 = dma.hbm_to_vmem [thread:$0]  (!%p4845_p5), %s4855_s18, 1024, %s4857_s15, %s4861_s19, %s8553_s20, %s8553_s20, %s8554_s22  }
  0x34   : > { %s4895_s23 = sshll.u32 %s4748_s27, 4  ;;  %s8765_s3 = sld [smem:[#allocation123_spill]] }
  0x35   : > { %s324_s13 = scalar_lea.vmem [#allocation8], %s4843_s9  ;;  %s4906_s16 = scalar_lea.sflag [#allocation9], %s283_s11 }
  0x36   : > { %s331_s14 = sshll.u32 %s324_s13, 4  ;;  %s332_s14 = int_to_ptr.vmem [resolvable:$true] %s331_s14 }
  0x3a   : > { %s4901_s12 = scalar_lea.hbm %s8765_s3, %s4895_s23  ;;  %s4527_s29 = scalar_lea.hbm %s8765_s3, 48 }
  0x3b   : > { %s4522_s17 = scalar_lea.hbm %s4901_s12, 16  ;;  %p4528_p13 = scmp.lt.u32.totalorder %s4901_s12, %s8765_s3 }
  0x3c   : > { %p4523_p0 = scmp.ne.s32.totalorder %s4901_s12, %s4522_s17  ;;  %p4529_p1 = scmp.lt.u32.totalorder %s4527_s29, %s4522_s17 }
  0x3d   : > { %p4531_p3 = scmp.lt.u32.totalorder %s4522_s17, %s4901_s12 }
  0x3e   : > { %p4525_p9 = pnand %p4523_p0, %p4867_p7  ;;  %p4530_p2 = por %p4529_p1, %p4528_p13 }
  0x40   : > { %p4526_p12 = pneg %p4525_p9  ;;  %p4532_p4 = por %p4531_p3, %p4530_p2 }
  0x42   : > { %p4533_p6 = pnand %p4532_p4, %p4526_p12 }
  0x44   : > { %4536 = shalt.err (!%p4533_p6)
}
  0x45   : > { %s4537_s11 = scalar_lea.vmem %s332_s14, 16  ;;  %s4753_s13 = smov [#allocation8]  }
  0x46   : > { %p4538_p8 = scmp.ne.s32.totalorder %s332_s14, %s4537_s11  ;;  %s4542_s22 = sshll.u32 %s4753_s13, 4  ;;  %s4543_s22 = int_to_ptr.vmem [resolvable:$false] %s4542_s22 }
  0x47   : > { %s4544_s15 = scalar_lea.vmem %s4543_s22, 32  ;;  %p4545_p0 = scmp.lt.s32.totalorder %s332_s14, %s4543_s22 }
  0x48   : > { %p4540_p10 = pnand %p4538_p8, %p4867_p7  ;;  %p4546_p9 = scmp.lt.s32.totalorder %s4544_s15, %s4537_s11 }
  0x4a   : > { %p4541_p11 = pneg %p4540_p10  ;;  %p4547_p5 = por %p4546_p9, %p4545_p0 }
  0x4c   : > { %p4548_p1 = pnand %p4547_p5, %p4541_p11 }
  0x4e   : > { %4551 = shalt.err (!%p4548_p1)
}
  0x4f   : > { %p8766_p13 = scmp.ne.s32.totalorder %s8762_s10, 0  ;;  %s4927_s20 = sadd.s32 4294967295, %s4748_s27  }
  0x50   : > { %s3584_s22 = sadd.s32 4294967294, %s4748_s27   ;;  %p50_p5 = scmp.ne.s32.totalorder %s4740_s25, %s4736_s24 }
  0x51   : > { %4348 = dma.hbm_to_vmem [thread:$0]  (!%p8766_p13), %s4901_s12, 16, %s332_s14, %s4906_s16  }
  0x52   : > { %p8564_p12 = scmp.eq.s32.totalorder %s4927_s20, 0  ;;  %p8563_p2 = scmp.eq.s32.totalorder %s4927_s20, 2 }
  0x53   : > { %p226_p3 = scmp.eq.s32.totalorder %s3584_s22, 2  ;;  %p3585_p6 = scmp.ge.s32.totalorder %s4748_s27, 1 }
  0x54   : > { %p4936_p4 = por %p8564_p12, %p50_p5  ;;  %p8768_p8 = scmp.ne.s32.totalorder %s4744_s26, %s4740_s25 }
  0x55   : > { %p4950_p11 = por %p226_p3, %p50_p5  ;;  %p233_p0 = scmp.lt.s32.totalorder %s4748_s27, 4 }
  0x56   : > { %s8767_s17 = scalar_select %p4936_p4, 1, 0 }
  0x57   : > { %p4946_p10 = por %p8563_p2, %p8768_p8  ;;  %p4955_p9 = pnand %p3585_p6, %p233_p0 }
  0x58   : > { %s8771_s14 = scalar_select %p4950_p11, 1, 0 }
  0x59   : > { %s8769_s12 = scalar_select %p4946_p10, 1, 0 }
  0x5a   : > { %8772 = sst [smem:[#allocation25_spill]] %s8771_s14  ;;  %s4754_s29 = smov [#allocation11]  }
  0x5b   : > { %8770 = sst [smem:[#allocation24_spill]] %s8769_s12  ;;  %s248_s30 = sshll.u32 %s4754_s29, 4  ;;  %s4959_s30 = int_to_ptr.vmem [resolvable:$true] %s248_s30 }
  0x5c   : > { %s8773_s18 = scalar_select %p4955_p9, 1, 0 }
  0x5d   : > { %p4332_p1 = pneg %p4955_p9  ;;  %s3588_s11 = sshll.u32 %s4843_s9, 9 }
  0x5e   : > { %s3877_s13 = sshll.u32 %s4748_s27, 13  ;;  %s266_s8 = scalar_lea.vmem [#allocation2], %s3588_s11 }
  0x5f   : > { %p4967_p8 = pnand %p4332_p1, %p8564_p12  ;;  %s4974_s3 = scalar_lea.hbm %s8544_s0, %s3877_s13 }
  0x60   : > { %s273_s26 = sshll.u32 %s266_s8, 4  ;;  %s4552_s14 = scalar_lea.hbm %s8550_s6, 512  ;;  %s4976_s26 = int_to_ptr.vmem [resolvable:$true] %s273_s26 }
  0x61   : > { %p4553_p5 = scmp.ne.s32.totalorder %s8550_s6, %s4552_s14  ;;  %p4554_p3 = pneg %p4967_p8 }
  0x62   : > { %p4559_p1 = scmp.lt.u32.totalorder %s4552_s14, %s8550_s6 }
  0x63   : > { %p4555_p6 = pnand %p4554_p3, %p4553_p5 }
  0x65   : > { %p4556_p0 = pneg %p4555_p6 }
  0x67   : > { %p4561_p2 = pnand %p4559_p1, %p4556_p0 }
  0x69   : > { %4564 = shalt.err (!%p4561_p2)
}
  0x6a   : > { %s4565_s8 = scalar_lea.vmem %s4959_s30, 512  ;;  %p4573_p4 = scmp.lt.s32.totalorder %s4959_s30, %s4959_s30 }
  0x6b   : > { %p4566_p12 = scmp.ne.s32.totalorder %s4959_s30, %s4565_s8  ;;  %p4574_p9 = scmp.lt.s32.totalorder %s4565_s8, %s4565_s8 }
  0x6d   : > { %p4568_p11 = pnand %p4566_p12, %p4554_p3  ;;  %p4575_p13 = por %p4574_p9, %p4573_p4 }
  0x6f   : > { %p4569_p10 = pneg %p4568_p11 }
  0x71   : > { %p4576_p7 = pnand %p4575_p13, %p4569_p10 }
  0x73   : > { %4579 = shalt.err (!%p4576_p7)
}
  0x74   : > { %s4755_s24 = smov 128   ;;  %s4756_s27 = smov 8  }
  0x75   : > { %4335 = dma.hbm_to_vmem [thread:$0]  (!%p4967_p8), %s8550_s6, 512, %s4959_s30, [#allocation12], %s4755_s24, %s4755_s24, %s4756_s27  }
  0x76   : > { %s263_s11 = scalar_lea.sflag [#allocation3], %s4843_s9  ;;  %s4580_s13 = scalar_lea.hbm %s4974_s3, 8192 }
  0x77   : > { %p4581_p12 = scmp.ne.s32.totalorder %s4974_s3, %s4580_s13  ;;  %p8775_p13 = scmp.ne.s32.totalorder %s8764_s21, 0 }
  0x78   : > { %s4585_s22 = scalar_lea.hbm %s8544_s0, 24576  ;;  %p4586_p4 = scmp.lt.u32.totalorder %s4974_s3, %s8544_s0 }
  0x79   : > { %p4583_p7 = pnand %p4581_p12, %p8775_p13  ;;  %p4587_p10 = scmp.lt.u32.totalorder %s4585_s22, %s4580_s13 }
  0x7a   : > { %p4589_p9 = scmp.lt.u32.totalorder %s4580_s13, %s4974_s3 }
  0x7b   : > { %p4584_p2 = pneg %p4583_p7  ;;  %p4588_p11 = por %p4587_p10, %p4586_p4 }
  0x7d   : > { %p4590_p5 = por %p4589_p9, %p4588_p11 }
  0x7f   : > { %p4591_p3 = pnand %p4590_p5, %p4584_p2 }
  0x81   : > { %4594 = shalt.err (!%p4591_p3)
}
  0x82   : > { %s4595_s30 = scalar_lea.vmem %s4976_s26, 8192  ;;  %s4757_s15 = smov [#allocation2]  }
  0x83   : > { %p4596_p8 = scmp.ne.s32.totalorder %s4976_s26, %s4595_s30  ;;  %s4600_s24 = sshll.u32 %s4757_s15, 4  ;;  %s4601_s24 = int_to_ptr.vmem [resolvable:$false] %s4600_s24 }
  0x84   : > { %s4602_s12 = scalar_lea.vmem %s4601_s24, 16384  ;;  %p4603_p1 = scmp.lt.s32.totalorder %s4976_s26, %s4601_s24 }
  0x85   : > { %p4598_p6 = pnand %p4596_p8, %p8775_p13  ;;  %p4604_p12 = scmp.lt.s32.totalorder %s4602_s12, %s4595_s30 }
  0x87   : > { %p4599_p0 = pneg %p4598_p6  ;;  %p4605_p7 = por %p4604_p12, %p4603_p1 }
  0x89   : > { %p4606_p4 = pnand %p4605_p7, %p4599_p0 }
  0x8b   : > { %4609 = shalt.err (!%p4606_p4)
}
  0x8c   : > { %p8776_p2 = scmp.ne.s32.totalorder %s8762_s10, 0  ;;  %s8777_s27 = smov 4  }
  0x8d   : > { %s8778_s28 = smov 64   ;;  %s5030_s29 = scalar_lea.hbm %s8546_s2, %s4895_s23 }
  0x8e   : > { %4339 = dma.hbm_to_vmem [thread:$0]  (!%p8776_p2), %s4974_s3, 8192, %s4976_s26, %s263_s11, %s8778_s28, %s8778_s28, %s8777_s27  }
  0x8f   : > { %s307_s1 = scalar_lea.vmem [#allocation7], %s4843_s9  ;;  %s5037_s15 = scalar_lea.hbm %s8548_s4, %s4895_s23 }
  0x90   : > { %s314_s22 = sshll.u32 %s307_s1, 4  ;;  %s4610_s24 = scalar_lea.hbm %s5030_s29, 16  ;;  %s315_s22 = int_to_ptr.vmem [resolvable:$true] %s314_s22 }
  0x91   : > { %p4611_p10 = scmp.ne.s32.totalorder %s5030_s29, %s4610_s24  ;;  %s4615_s11 = scalar_lea.hbm %s8546_s2, 48 }
  0x92   : > { %p4616_p5 = scmp.lt.u32.totalorder %s5030_s29, %s8546_s2  ;;  %p4617_p3 = scmp.lt.u32.totalorder %s4615_s11, %s4610_s24 }
  0x93   : > { %p4613_p11 = pnand %p4611_p10, %p8775_p13  ;;  %p4619_p6 = scmp.lt.u32.totalorder %s4610_s24, %s5030_s29 }
  0x94   : > { %p4618_p8 = por %p4617_p3, %p4616_p5 }
  0x95   : > { %p4614_p9 = pneg %p4613_p11 }
  0x96   : > { %p4620_p0 = por %p4619_p6, %p4618_p8 }
  0x98   : > { %p4621_p1 = pnand %p4620_p0, %p4614_p9 }
  0x9a   : > { %4624 = shalt.err (!%p4621_p1)
}
  0x9b   : > { %s4625_s23 = scalar_lea.vmem %s315_s22, 16  ;;  %s4758_s28 = smov [#allocation7]  }
  0x9c   : > { %p4626_p12 = scmp.ne.s32.totalorder %s315_s22, %s4625_s23  ;;  %s4630_s14 = sshll.u32 %s4758_s28, 4  ;;  %s4631_s14 = int_to_ptr.vmem [resolvable:$false] %s4630_s14 }
  0x9d   : > { %s4632_s13 = scalar_lea.vmem %s4631_s14, 32  ;;  %p4633_p10 = scmp.lt.s32.totalorder %s315_s22, %s4631_s14 }
  0x9e   : > { %p4628_p7 = pnand %p4626_p12, %p8775_p13  ;;  %p4634_p11 = scmp.lt.s32.totalorder %s4632_s13, %s4625_s23 }
  0xa0   : > { %p4629_p4 = pneg %p4628_p7  ;;  %p4635_p2 = por %p4634_p11, %p4633_p10 }
  0xa2   : > { %p4636_p3 = pnand %p4635_p2, %p4629_p4 }
  0xa4   : > { %4639 = shalt.err (!%p4636_p3)
}
  0xa5   : > { %p8779_p5 = scmp.ne.s32.totalorder %s8762_s10, 0  ;;  %s341_s1 = scalar_lea.vmem [#allocation10], %s4843_s9 }
  0xa6   : > { %s348_s8 = sshll.u32 %s341_s1, 4  ;;  %s4640_s30 = scalar_lea.hbm %s5037_s15, 16  ;;  %s349_s8 = int_to_ptr.vmem [resolvable:$true] %s348_s8 }
  0xa7   : > { %4345 = dma.hbm_to_vmem [thread:$0]  (!%p8779_p5), %s5030_s29, 16, %s315_s22, %s4861_s19  }
  0xa8   : > { %p4641_p9 = scmp.ne.s32.totalorder %s5037_s15, %s4640_s30  ;;  %s4645_s26 = scalar_lea.hbm %s8548_s4, 48 }
  0xa9   : > { %p4646_p6 = scmp.lt.u32.totalorder %s5037_s15, %s8548_s4  ;;  %p4647_p0 = scmp.lt.u32.totalorder %s4645_s26, %s4640_s30 }
  0xaa   : > { %p4643_p8 = pnand %p4641_p9, %p8775_p13  ;;  %p4649_p12 = scmp.lt.u32.totalorder %s4640_s30, %s5037_s15 }
  0xab   : > { %p4648_p1 = por %p4647_p0, %p4646_p6 }
  0xac   : > { %p4644_p2 = pneg %p4643_p8 }
  0xad   : > { %p4650_p7 = por %p4649_p12, %p4648_p1 }
  0xaf   : > { %p4651_p4 = pnand %p4650_p7, %p4644_p2 }
  0xb1   : > { %4654 = shalt.err (!%p4651_p4)
}
  0xb2   : > { %s4655_s9 = scalar_lea.vmem %s349_s8, 16  ;;  %s4759_s19 = smov [#allocation10]  }
  0xb3   : > { %p4656_p10 = scmp.ne.s32.totalorder %s349_s8, %s4655_s9  ;;  %s4660_s29 = sshll.u32 %s4759_s19, 4  ;;  %s4661_s29 = int_to_ptr.vmem [resolvable:$false] %s4660_s29 }
  0xb4   : > { %s4662_s22 = scalar_lea.vmem %s4661_s29, 32  ;;  %p4663_p9 = scmp.lt.s32.totalorder %s349_s8, %s4661_s29 }
  0xb5   : > { %p4658_p11 = pnand %p4656_p10, %p8775_p13  ;;  %p4664_p8 = scmp.lt.s32.totalorder %s4662_s22, %s4655_s9 }
  0xb7   : > { %p4659_p3 = pneg %p4658_p11  ;;  %p4665_p5 = por %p4664_p8, %p4663_p9 }
  0xb9   : > { %p4666_p0 = pnand %p4665_p5, %p4659_p3 }
  0xbb   : > { %4669 = shalt.err (!%p4666_p0)
}
  0xbc   : > { %p8780_p6 = scmp.ne.s32.totalorder %s8762_s10, 0  ;;  %p8781_p2 = scmp.ne.s32.totalorder %s8773_s18, 0 }
  0xbe   : > { %4351 = dma.hbm_to_vmem [thread:$0]  (!%p8780_p6), %s5037_s15, 16, %s349_s8, %s4906_s16  }
  0xbf   : > { %357 = sbr.rel (%p8781_p2) target bundleno = 1846 (0x736), region = 48 }
  0xc6   : > { %s5079_s21 = sand.u32 1, %s4740_s25   ;;  %p8782_p13 = scmp.ne.s32.totalorder %s8767_s17, 0 }
  0xc7   : > { %s3598_s27 = sshll.u32 %s5079_s21, 9  ;;  %s360_s23 = scalar_lea.sflag [#allocation3], %s5079_s21 }
  0xc8   : > { %s5083_s28 = scalar_lea.vmem [#allocation2], %s3598_s27 }
  0xc9   : > { %4715 = dma.done.wait (%p8782_p13), %s360_s23, 8192  }
  0xca   : > { %4717 = vsyncadd (%p8782_p13), %s360_s23, 4294959104  ;;  %s368_s10 = sand.u32 1, %s4927_s20   ;;  %s3599_s16 = sshll.u32 %s5079_s21, 6 }
  0xcb   : > { %s369_s18 = scalar_lea.sflag [#allocation6], %s368_s10  ;;  %s5091_s15 = scalar_lea.vmem [#allocation5], %s3599_s16 }
  0xcc   : > { %4719 = dma.done.wait (%p8782_p13), %s369_s18, 1040  }
  0xcd   : > { %4721 = vsyncadd (%p8782_p13), %s369_s18, 4294966256  ;;  %s5098_s14 = scalar_lea.vmem [#allocation7], %s5079_s21  ;;  %s386_s13 = scalar_lea.sflag [#allocation9], %s368_s10 }
  0xce   : > { %s388_s1 = scalar_lea.vmem [#allocation8], %s5079_s21 }
  0xcf   : > { %4723 = dma.done.wait (%p8782_p13), %s386_s13, 32  }
  0xd0   : > { %4725 = vsyncadd (%p8782_p13), %s386_s13, 4294967264  ;;  %s396_s8 = scalar_lea.vmem [#allocation10], %s5079_s21  ;;  %p8783_p5 = scmp.eq.s32.totalorder %s4927_s20, 0 }
  0xd2   : > { %4727 = dma.done.wait (%p8783_p5), [#allocation12], 512   ;;  %p8784_p1 = pmov %p8783_p5 }
  0xd3   : > { %v4402_v0 = vld [vmem:[%s5091_s15] sm:$0xff]   ;;  %v4403_v1 = vld [vmem:[%s5091_s15 + $0x8] sm:$0xff]   ;;  %v4404_v2 = vld [vmem:[%s5091_s15 + $0x10] sm:$0xff]   ;;  %p449_p12 = scmp.eq.s32.totalorder %s4927_s20, 1  ;;  %v492_v40 = vlaneseq  ;;  %v8572_v45 = vmov 0.0|0.0   ;;  %p8786_p7 = scmp.eq.s32.totalorder %s4927_s20, 2 }
  0xd4   : > { %4729 = vsyncadd (%p8784_p1), [#allocation12], 4294966784  ;;  %4004 = vmatprep.subr.bf16.mxu0 %v4402_v0  ;;  %v4405_v3 = vld [vmem:[%s5091_s15 + $0x18] sm:$0xff]   ;;  %v4410_v4 = vld [vmem:[%s5083_s28] sm:$0xff]   ;;  %4256 = vmatprep.subr.bf16.mxu1 %v8572_v45  ;;  %vm4762_vm9 = vmmov 0   ;;  %s9273_s3 = sld [smem:[#allocation24_spill]] }
  0xd5   : > { %4005 = vmatpush3.bf16.msra.mxu0 %v4402_v0  ;;  %4020 = vmatprep.mubr.bf16.mxu0 %v4410_v4  ;;  %v4406_v5 = vld [vmem:[%s5091_s15 + $0x20] sm:$0xff]   ;;  %v4407_v6 = vld [vmem:[%s5091_s15 + $0x28] sm:$0xff]   ;;  %v4408_v7 = vld [vmem:[%s5091_s15 + $0x30] sm:$0xff]   ;;  %s450_s17 = scalar_select %p449_p12, 128, 512  ;;  %v5157_v44 = vshrl.u32 %v492_v40, 7 }
  0xd6   : > { %4006 = vmatprep.subr.bf16.mxu0 %v4403_v1  ;;  %v4409_v8 = vld [vmem:[%s5091_s15 + $0x38] sm:$0xff]   ;;  %v4411_v9 = vld [vmem:[%s5083_s28 + $0x8] sm:$0xff]   ;;  %v4412_v10 = vld [vmem:[%s5083_s28 + $0x10] sm:$0xff]   ;;  %s3411_s26 = scalar_lea.sflag [#allocation4], %s5079_s21  ;;  %s4763_s12 = smov [#allocation13]  }
  0xd7   : > { %v4413_v11 = vld [vmem:[%s5083_s28 + $0x18] sm:$0xff]   ;;  %v4414_v12 = vld [vmem:[%s5083_s28 + $0x20] sm:$0xff]   ;;  %v4415_v13 = vld [vmem:[%s5083_s28 + $0x28] sm:$0xff]   ;;  %8785 = vst [vmem:[#allocation26_spill] sm:$0xff] %v5157_v44  ;;  %s9285_s17 = smov (%p8786_p7, %s450_s17), 32  ;;  %v495_v49 = vadd.s32 16, %v5157_v44 }
  0xd8   : > { %v4416_v14 = vld [vmem:[%s5083_s28 + $0x30] sm:$0xff]   ;;  %v4417_v15 = vld [vmem:[%s5083_s28 + $0x38] sm:$0xff]   ;;  %v4418_v16 = vld [vmem:[%s5083_s28 + $0x40] sm:$0xff]   ;;  %v5175_v50 = vstv %s9285_s17  ;;  %v496_v51 = vadd.s32 24, %v5157_v44  ;;  %v494_v52 = vadd.s32 8, %v5157_v44  ;;  %v499_v57 = vadd.s32 48, %v5157_v44 }
  0xd9   : > { %4007 = vmatpush3.bf16.msra.mxu0 %v4403_v1  ;;  %v4419_v17 = vld [vmem:[%s5083_s28 + $0x48] sm:$0xff]   ;;  %v4420_v18 = vld [vmem:[%s5083_s28 + $0x50] sm:$0xff]   ;;  %v4421_v19 = vld [vmem:[%s5083_s28 + $0x58] sm:$0xff]   ;;  %vm560_vm0 = vcmp.lt.s32.totalorder %v495_v49, %v5175_v50  ;;  %vm558_vm1 = vcmp.lt.s32.totalorder %v5157_v44, %v5175_v50  ;;  %v497_v58 = vadd.s32 32, %v5157_v44  ;;  %v500_v59 = vadd.s32 56, %v5157_v44  ;;  %s3666_s30 = sshll.u32 %s9285_s17, 2 }
  0xda   : > { %4008 = vmatprep.subr.bf16.mxu0 %v4404_v2  ;;  %v4422_v20 = vld [vmem:[%s5083_s28 + $0x60] sm:$0xff]   ;;  %v4423_v21 = vld [vmem:[%s5083_s28 + $0x68] sm:$0xff]   ;;  %v4424_v22 = vld [vmem:[%s5083_s28 + $0x70] sm:$0xff]   ;;  %vm561_vm2 = vcmp.lt.s32.totalorder %v496_v51, %v5175_v50  ;;  %vm559_vm3 = vcmp.lt.s32.totalorder %v494_v52, %v5175_v50  ;;  %v498_v60 = vadd.s32 40, %v5157_v44  ;;  %v8575_v1 = vmov 0.0   ;;  %s751_s24 = scvt.s32.f32 %s3666_s30  ;;  %p9274_p10 = scmp.ne.s32.totalorder %s9273_s3, 0 }
  0xdb   : > { %v4425_v23 = vld [vmem:[%s5083_s28 + $0x78] sm:$0xff]   ;;  %v4426_v24 = vld [vmem:[%s5083_s28 + $0x80] sm:$0xff]   ;;  %v4427_v25 = vld [vmem:[%s5083_s28 + $0x88] sm:$0xff]   ;;  %v5219_v4 = vsel %vm558_vm1, 1.0, %v8575_v1  ;;  %vm564_vm4 = vcmp.lt.s32.totalorder %v499_v57, %v5175_v50  ;;  %vm562_vm5 = vcmp.lt.s32.totalorder %v497_v58, %v5175_v50  ;;  %vm565_vm6 = vcmp.lt.s32.totalorder %v500_v59, %v5175_v50  ;;  %4116 = vmatprep.mubr.msk.f32.mxu1 %vm4762_vm9, %v8575_v1  ;;  %s4674_s9 = sshll.u32 %s4763_s12, 4  ;;  %s4675_s9 = int_to_ptr.vmem [resolvable:$false] %s4674_s9 }
  0xdc   : > { %v4428_v26 = vld [vmem:[%s5083_s28 + $0x90] sm:$0xff]   ;;  %v4429_v27 = vld [vmem:[%s5083_s28 + $0x98] sm:$0xff]   ;;  %v4430_v28 = vld [vmem:[%s5083_s28 + $0xa0] sm:$0xff]   ;;  %8788 = vst [vmem:[#allocation28_spill] sm:$0xff] %v5219_v4  ;;  %vm563_vm7 = vcmp.lt.s32.totalorder %v498_v60, %v5175_v50  ;;  %s4676_s19 = scalar_lea.vmem %s4675_s9, 32768 }
  0xdd   : > { %4009 = vmatpush3.bf16.msra.mxu0 %v4404_v2  ;;  %v4431_v29 = vld [vmem:[%s5083_s28 + $0xa8] sm:$0xff]   ;;  %v4432_v30 = vld [vmem:[%s5083_s28 + $0xb0] sm:$0xff]   ;;  %v4433_v31 = vld [vmem:[%s5083_s28 + $0xb8] sm:$0xff]   ;;  %v5210_v2 = vsel %vm560_vm0, 1.0, %v8575_v1 }
  0xde   : > { %4010 = vmatprep.subr.bf16.mxu0 %v4405_v3  ;;  %v4434_v32 = vld [vmem:[%s5083_s28 + $0xc0] sm:$0xff]   ;;  %v4435_v33 = vld [vmem:[%s5083_s28 + $0xc8] sm:$0xff]   ;;  %v4436_v34 = vld [vmem:[%s5083_s28 + $0xd0] sm:$0xff]   ;;  %8787 = vst [vmem:[#allocation27_spill] sm:$0xff] %v5210_v2 }
  0xdf   : > { %v4437_v35 = vld [vmem:[%s5083_s28 + $0xd8] sm:$0xff]   ;;  %v4438_v36 = vld [vmem:[%s5083_s28 + $0xe0] sm:$0xff]   ;;  %v4439_v37 = vld [vmem:[%s5083_s28 + $0xe8] sm:$0xff]  }
  0xe0   : > { %v4440_v38 = vld [vmem:[%s5083_s28 + $0xf0] sm:$0xff]   ;;  %v4441_v39 = vld [vmem:[%s5083_s28 + $0xf8] sm:$0xff]   ;;  %v472_v41 = vld [vmem:[%s8549_s5] sm:$0xff] }
  0xe1   : > { %4011 = vmatpush3.bf16.msra.mxu0 %v4405_v3  ;;  %v473_v42 = vld [vmem:[%s8549_s5 + $0x8] sm:$0xff]  ;;  %v474_v46 = vld [vmem:[%s8549_s5 + $0x10] sm:$0xff]  ;;  %v475_v47 = vld [vmem:[%s8549_s5 + $0x18] sm:$0xff] }
  0xe2   : > { %4012 = vmatprep.subr.bf16.mxu0 %v4406_v5  ;;  %v4257_v43 = vpack.c.bf16 %v473_v42, %v472_v41  ;;  %v4260_v48 = vpack.c.bf16 %v475_v47, %v474_v46  ;;  %v476_v53 = vld [vmem:[%s8549_s5 + $0x20] sm:$0xff]  ;;  %v477_v54 = vld [vmem:[%s8549_s5 + $0x28] sm:$0xff]  ;;  %v478_v61 = vld [vmem:[%s8549_s5 + $0x30] sm:$0xff] }
  0xe3   : > { %v4263_v55 = vpack.c.bf16 %v477_v54, %v476_v53  ;;  %v5189_v56 = vld [vmem:[%s5098_s14] ss:$0 sm:$0xff]  ;;  %v479_v62 = vld [vmem:[%s8549_s5 + $0x38] sm:$0xff]  ;;  %v507_v54 = vadd.s32 112, %v5157_v44 }
  0xe4   : > { %4258 = vmatpush3.bf16.msra.mxu1 %v4257_v43  ;;  %v4266_v0 = vpack.c.bf16 %v479_v62, %v478_v61  ;;  %v487_v49 = vld [vmem:[%s8549_s5 + $0x78] sm:$0xff]  ;;  %v505_v62 = vadd.s32 96, %v5157_v44 }
  0xe5   : > { %4013 = vmatpush3.bf16.msra.mxu0 %v4406_v5  ;;  %4259 = vmatprep.subr.bf16.mxu1 %v8572_v45  ;;  %vm572_vm13 = vcmp.lt.s32.totalorder %v507_v54, %v5175_v50 }
  0xe6   : > { %4014 = vmatprep.subr.bf16.mxu0 %v4407_v6  ;;  %vm570_vm14 = vcmp.lt.s32.totalorder %v505_v62, %v5175_v50 }
  0xe8   : > { %4261 = vmatpush3.bf16.msra.mxu1 %v4260_v48 }
  0xe9   : > { %4015 = vmatpush3.bf16.msra.mxu0 %v4407_v6  ;;  %4262 = vmatprep.subr.bf16.mxu1 %v8572_v45  ;;  %v5224_v6 = vsel %vm561_vm2, 1.0, %v8575_v1 }
  0xea   : > { %4016 = vmatprep.subr.bf16.mxu0 %v4408_v7  ;;  %8789 = vst [vmem:[#allocation29_spill] sm:$0xff] %v5224_v6 }
  0xec   : > { %4264 = vmatpush3.bf16.msra.mxu1 %v4263_v55 }
  0xed   : > { %4017 = vmatpush3.bf16.msra.mxu0 %v4408_v7  ;;  %4265 = vmatprep.subr.bf16.mxu1 %v8572_v45 }
  0xee   : > { %4018 = vmatprep.subr.bf16.mxu0 %v4409_v8 }
  0xf0   : > { %4267 = vmatpush3.bf16.msra.mxu1 %v4266_v0 }
  0xf1   : > { %4019 = vmatpush3.bf16.msra.mxu0 %v4409_v8  ;;  %4268 = vmatprep.subr.bf16.mxu1 %v8572_v45 }
  0xf2   : > { %4286 = vmatprep.subr.bf16.mxu0 %v8572_v45 }
  0xf4   : > { %4021 = vmatmul.mubr.bf16.vlgmr.msra.gmra.mrb[0].mxu0 %v4411_v9  ;;  %v5232_v9 = vsel %vm559_vm3, 1.0, %v8575_v1 }
  0xf5   : > { %4024 = vmatprep.mubr.bf16.mxu0 %v4412_v10  ;;  %4288 = vmatpush3.bf16.msra.mxu0 %v4257_v43  ;;  %8790 = vst [vmem:[#allocation30_spill] sm:$0xff] %v5232_v9 }
  0xf6   : > { %4289 = vmatprep.subr.bf16.mxu0 %v8572_v45 }
  0xf9   : > { %4291 = vmatpush3.bf16.msra.mxu0 %v4260_v48  ;;  %v486_v48 = vld [vmem:[%s8549_s5 + $0x70] sm:$0xff] }
  0xfa   : > { %4292 = vmatprep.subr.bf16.mxu0 %v8572_v45 }
  0xfc   : > { %4025 = vmatmul.mubr.bf16.gmra.mrb[4].mxu0 %v4413_v11 }
  0xfd   : > { %4028 = vmatprep.mubr.bf16.mxu0 %v4414_v12  ;;  %4294 = vmatpush3.bf16.msra.mxu0 %v4263_v55  ;;  %v503_v12 = vadd.s32 80, %v5157_v44 }
  0xfe   : > { %4295 = vmatprep.subr.bf16.mxu0 %v8572_v45 }
  0xff   : > { %vm568_vm8 = vcmp.lt.s32.totalorder %v503_v12, %v5175_v50 }
 0x100   : > { %v5314_v47 = vsel %vm568_vm8, 1.0, %v8575_v1 }
 0x101   : > { %4297 = vmatpush3.bf16.msra.mxu0 %v4266_v0  ;;  %8795 = vst [vmem:[#allocation35_spill] sm:$0xff] %v5314_v47 }
 0x102   : > { %4298 = vmatprep.subr.bf16.mxu0 %v8572_v45 }
 0x104   : > { %4029 = vmatmul.mubr.bf16.gmra.mrb[8].mxu0 %v4415_v13  ;;  %v480_v13 = vld [vmem:[%s8549_s5 + $0x40] sm:$0xff] }
 0x105   : > { %4032 = vmatprep.mubr.bf16.mxu0 %v4416_v14  ;;  %v481_v14 = vld [vmem:[%s8549_s5 + $0x48] sm:$0xff] }
 0x10c   : > { %4033 = vmatmul.mubr.bf16.gmra.mrb[12].mxu0 %v4417_v15 }
 0x10d   : > { %4036 = vmatprep.mubr.bf16.mxu0 %v4418_v16 }
 0x114   : > { %4037 = vmatmul.mubr.bf16.gmra.mrb[16].mxu0 %v4419_v17  ;;  %v501_v17 = vadd.s32 64, %v5157_v44 }
 0x115   : > { %4040 = vmatprep.mubr.bf16.mxu0 %v4420_v18  ;;  %v4269_v18 = vpack.c.bf16 %v481_v14, %v480_v13 }
 0x116   : > { %vm566_vm10 = vcmp.lt.s32.totalorder %v501_v17, %v5175_v50 }
 0x117   : > { %4270 = vmatpush3.bf16.msra.mxu1 %v4269_v18  ;;  %4300 = vmatpush3.bf16.msra.mxu0 %v4269_v18  ;;  %v5339_v61 = vsel %vm566_vm10, 1.0, %v8575_v1 }
 0x118   : > { %4271 = vmatprep.subr.bf16.mxu1 %v8572_v45  ;;  %4301 = vmatprep.subr.bf16.mxu0 %v8572_v45  ;;  %8796 = vst [vmem:[#allocation36_spill] sm:$0xff] %v5339_v61 }
 0x11c   : > { %4041 = vmatmul.mubr.bf16.gmra.mrb[20].mxu0 %v4421_v19 }
 0x11d   : > { %4044 = vmatprep.mubr.bf16.mxu0 %v4422_v20  ;;  %v5261_v20 = vsel %vm564_vm4, 1.0, %v8575_v1 }
 0x11e   : > { %8791 = vst [vmem:[#allocation31_spill] sm:$0xff] %v5261_v20 }
 0x124   : > { %4045 = vmatmul.mubr.bf16.gmra.mrb[24].mxu0 %v4423_v21  ;;  %v5266_v21 = vsel %vm562_vm5, 1.0, %v8575_v1 }
 0x125   : > { %4048 = vmatprep.mubr.bf16.mxu0 %v4424_v22  ;;  %8792 = vst [vmem:[#allocation32_spill] sm:$0xff] %v5266_v21  ;;  %v504_v22 = vadd.s32 88, %v5157_v44 }
 0x127   : > { %vm569_vm11 = vcmp.lt.s32.totalorder %v504_v22, %v5175_v50 }
 0x128   : > { %v5349_v13 = vsel %vm569_vm11, 1.0, %v8575_v1 }
 0x129   : > { %8797 = vst [vmem:[#allocation37_spill] sm:$0xff] %v5349_v13 }
 0x12c   : > { %4049 = vmatmul.mubr.bf16.gmra.mrb[28].mxu0 %v4425_v23 }
 0x12d   : > { %4052 = vmatprep.mubr.bf16.mxu0 %v4426_v24  ;;  %v5274_v24 = vsel %vm565_vm6, 1.0, %v8575_v1 }
 0x12e   : > { %8793 = vst [vmem:[#allocation33_spill] sm:$0xff] %v5274_v24 }
 0x134   : > { %4053 = vmatmul.mubr.bf16.gmra.mrb[32].mxu0 %v4427_v25  ;;  %v5279_v25 = vsel %vm563_vm7, 1.0, %v8575_v1 }
 0x135   : > { %4056 = vmatprep.mubr.bf16.mxu0 %v4428_v26  ;;  %8794 = vst [vmem:[#allocation34_spill] sm:$0xff] %v5279_v25  ;;  %v482_v26 = vld [vmem:[%s8549_s5 + $0x50] sm:$0xff] }
 0x13c   : > { %4057 = vmatmul.mubr.bf16.gmra.mrb[36].mxu0 %v4429_v27  ;;  %v483_v27 = vld [vmem:[%s8549_s5 + $0x58] sm:$0xff] }
 0x13d   : > { %4060 = vmatprep.mubr.bf16.mxu0 %v4430_v28  ;;  %v484_v28 = vld [vmem:[%s8549_s5 + $0x60] sm:$0xff] }
 0x144   : > { %4061 = vmatmul.mubr.bf16.gmra.mrb[40].mxu0 %v4431_v29 }
 0x145   : > { %4064 = vmatprep.mubr.bf16.mxu0 %v4432_v30  ;;  %v502_v30 = vadd.s32 72, %v5157_v44 }
 0x147   : > { %vm567_vm12 = vcmp.lt.s32.totalorder %v502_v30, %v5175_v50 }
 0x148   : > { %v5354_v14 = vsel %vm567_vm12, 1.0, %v8575_v1 }
 0x149   : > { %8798 = vst [vmem:[#allocation38_spill] sm:$0xff] %v5354_v14 }
 0x14c   : > { %4065 = vmatmul.mubr.bf16.gmra.mrb[44].mxu0 %v4433_v31  ;;  %v4272_v31 = vpack.c.bf16 %v483_v27, %v482_v26  ;;  %v506_v27 = vadd.s32 104, %v5157_v44 }
 0x14d   : > { %4068 = vmatprep.mubr.bf16.mxu0 %v4434_v32  ;;  %v485_v32 = vld [vmem:[%s8549_s5 + $0x68] sm:$0xff] }
 0x14e   : > { %v4275_v40 = vpack.c.bf16 %v485_v32, %v484_v28  ;;  %4273 = vmatpush3.bf16.msra.mxu1 %v4272_v31  ;;  %4303 = vmatpush3.bf16.msra.mxu0 %v4272_v31  ;;  %v511_v28 = vadd.s32 144, %v5157_v44  ;;  %vm571_vm0 = vcmp.lt.s32.totalorder %v506_v27, %v5175_v50 }
 0x14f   : > { %4274 = vmatprep.subr.bf16.mxu1 %v8572_v45  ;;  %4304 = vmatprep.subr.bf16.mxu0 %v8572_v45  ;;  %v5412_v62 = vsel %vm571_vm0, 1.0, %v8575_v1 }
 0x150   : > { %vm576_vm1 = vcmp.lt.s32.totalorder %v511_v28, %v5175_v50  ;;  %8802 = vst [vmem:[#allocation42_spill] sm:$0xff] %v5412_v62 }
 0x152   : > { %4276 = vmatpush3.bf16.msra.mxu1 %v4275_v40  ;;  %4306 = vmatpush3.bf16.msra.mxu0 %v4275_v40 }
 0x153   : > { %4277 = vmatprep.subr.bf16.mxu1 %v8572_v45  ;;  %4307 = vmatprep.subr.bf16.mxu0 %v8572_v45 }
 0x154   : > { %4069 = vmatmul.mubr.bf16.gmra.mrb[48].mxu0 %v4435_v33 }
 0x155   : > { %4072 = vmatprep.mubr.bf16.mxu0 %v4436_v34 }
 0x15c   : > { %4073 = vmatmul.mubr.bf16.gmra.mrb[52].mxu0 %v4437_v35 }
 0x15d   : > { %4076 = vmatprep.mubr.bf16.mxu0 %v4438_v36 }
 0x164   : > { %4077 = vmatmul.mubr.bf16.gmra.mrb[56].mxu0 %v4439_v37 }
 0x165   : > { %4080 = vmatprep.mubr.bf16.mxu0 %v4440_v38 }
 0x16c   : > { %4081 = vmatmul.mubr.bf16.gmra.mrb[60].mxu0 %v4441_v39 }
 0x16d   : > { %4242 = vmatprep.mubr.msk.f32.mxu0 %vm4762_vm9, %v8575_v1 }
 0x1c7   : > { %v4022_v63 = vpop.f32.mrb[0].mxu0 }
 0x1c8   : > { %v5213_v3 = vadd.f32 %v4022_v63, %v5189_v56  ;;  %v1096_v5 = vpop.f32.mrb[1].mxu0  ;;  %v4278_v63 = vpack.c.bf16 %v487_v49, %v486_v48  ;;  %v509_v48 = vadd.s32 128, %v5157_v44 }
 0x1c9   : > { %v5227_v7 = vadd.f32 %v5189_v56, %v1096_v5  ;;  %v4023_v8 = vpop.f32.mrb[2].mxu0 }
 0x1ca   : > { %v5237_v10 = vadd.f32 %v4023_v8, %v5189_v56  ;;  %v1099_v11 = vpop.f32.mrb[3].mxu0  ;;  %v1353_v19 = vmul.f32 %v5210_v2, %v5213_v3  ;;  %4279 = vmatpush3.bf16.msra.mxu1 %v4278_v63  ;;  %4309 = vmatpush3.bf16.msra.mxu0 %v4278_v63  ;;  %vm574_vm2 = vcmp.lt.s32.totalorder %v509_v48, %v5175_v50 }
 0x1cb   : > { %v1351_v15 = vmul.f32 %v5219_v4, %v5227_v7  ;;  %v5253_v16 = vadd.f32 %v5189_v56, %v1099_v11  ;;  %4280 = vmatprep.subr.bf16.mxu1 %v8572_v45  ;;  %4310 = vmatprep.subr.bf16.mxu0 %v8572_v45  ;;  %v520_v45 = vadd.s32 216, %v5157_v44 }
 0x1cc   : > { %v1354_v29 = vmul.f32 %v5224_v6, %v5237_v10  ;;  %v1486_v37 = vmul.f32 %v1353_v19, %v1353_v19 }
 0x1cd   : > { %v1352_v23 = vmul.f32 %v5232_v9, %v5253_v16  ;;  %v1484_v33 = vmul.f32 %v1351_v15, %v1351_v15  ;;  %vm585_vm12 = vcmp.lt.s32.totalorder %v520_v45, %v5175_v50  ;;  %v524_v45 = vadd.s32 248, %v5157_v44 }
 0x1ce   : > { %v1487_v51 = vmul.f32 %v1354_v29, %v1354_v29 }
 0x1cf   : > { %v1415_v34 = vadd.f32 %v1352_v23, %v1351_v15  ;;  %v1485_v35 = vmul.f32 %v1352_v23, %v1352_v23  ;;  %v4026_v36 = vpop.f32.mrb[4].mxu0  ;;  %v508_v15 = vadd.s32 120, %v5157_v44  ;;  %vm589_vm0 = vcmp.lt.s32.totalorder %v524_v45, %v5175_v50 }
 0x1d0   : > { %v5303_v38 = vadd.f32 %v4026_v36, %v5189_v56  ;;  %v1112_v39 = vpop.f32.mrb[5].mxu0 }
 0x1d1   : > { %v1416_v41 = vadd.f32 %v1415_v34, %v1353_v19  ;;  %v1548_v42 = vadd.f32 %v1485_v35, %v1484_v33  ;;  %v5309_v43 = vadd.f32 %v5189_v56, %v1112_v39  ;;  %v4027_v46 = vpop.f32.mrb[6].mxu0  ;;  %vm573_vm15 = vcmp.lt.s32.totalorder %v508_v15, %v5175_v50 }
 0x1d2   : > { %v5323_v52 = vadd.f32 %v4027_v46, %v5189_v56  ;;  %v1115_v53 = vpop.f32.mrb[7].mxu0  ;;  %v1357_v60 = vmul.f32 %v5261_v20, %v5303_v38 }
 0x1d3   : > { %v1549_v55 = vadd.f32 %v1548_v42, %v1486_v37  ;;  %v1355_v57 = vmul.f32 %v5266_v21, %v5309_v43  ;;  %v1417_v58 = vadd.f32 %v1416_v41, %v1354_v29  ;;  %v5332_v59 = vadd.f32 %v5189_v56, %v1115_v53 }
 0x1d4   : > { %v1358_v12 = vmul.f32 %v5274_v24, %v5323_v52  ;;  %v1490_v29 = vmul.f32 %v1357_v60, %v1357_v60  ;;  %v5375_v37 = vsel %vm572_vm13, 1.0, %v8575_v1 }
 0x1d5   : > { %v1418_v0 = vadd.f32 %v1417_v58, %v1355_v57  ;;  %v1488_v5 = vmul.f32 %v1355_v57, %v1355_v57  ;;  %v1550_v8 = vadd.f32 %v1549_v55, %v1487_v51  ;;  %v1356_v11 = vmul.f32 %v5279_v25, %v5332_v59  ;;  %8799 = vst [vmem:[#allocation39_spill] sm:$0xff] %v5375_v37 }
 0x1d6   : > { %v1491_v34 = vmul.f32 %v1358_v12, %v1358_v12  ;;  %v5397_v57 = vsel %vm570_vm14, 1.0, %v8575_v1  ;;  %v512_v58 = vadd.s32 152, %v5157_v44 }
 0x1d7   : > { %v1551_v17 = vadd.f32 %v1550_v8, %v1488_v5  ;;  %v1419_v18 = vadd.f32 %v1418_v0, %v1356_v11  ;;  %v1489_v19 = vmul.f32 %v1356_v11, %v1356_v11  ;;  %v4030_v23 = vpop.f32.mrb[8].mxu0  ;;  %8800 = vst [vmem:[#allocation40_spill] sm:$0xff] %v5397_v57  ;;  %v5404_v11 = vsel %vm573_vm15, 1.0, %v8575_v1 }
 0x1d8   : > { %v5361_v22 = vadd.f32 %v4030_v23, %v5189_v56  ;;  %v1128_v26 = vpop.f32.mrb[9].mxu0  ;;  %8801 = vst [vmem:[#allocation41_spill] sm:$0xff] %v5404_v11  ;;  %vm577_vm3 = vcmp.lt.s32.totalorder %v512_v58, %v5175_v50 }
 0x1d9   : > { %v1420_v30 = vadd.f32 %v1419_v18, %v1357_v60  ;;  %v1552_v31 = vadd.f32 %v1551_v17, %v1489_v19  ;;  %v5367_v32 = vadd.f32 %v5189_v56, %v1128_v26  ;;  %v4031_v33 = vpop.f32.mrb[10].mxu0  ;;  %v510_v60 = vadd.s32 136, %v5157_v44 }
 0x1da   : > { %v5370_v35 = vadd.f32 %v4031_v33, %v5189_v56  ;;  %v1131_v36 = vpop.f32.mrb[11].mxu0  ;;  %v1361_v46 = vmul.f32 %v5314_v47, %v5361_v22  ;;  %v5417_v18 = vsel %vm576_vm1, 1.0, %v8575_v1 }
 0x1db   : > { %v1553_v39 = vadd.f32 %v1552_v31, %v1490_v29  ;;  %v1359_v40 = vmul.f32 %v5339_v61, %v5367_v32  ;;  %v1421_v41 = vadd.f32 %v1420_v30, %v1358_v12  ;;  %v5382_v42 = vadd.f32 %v5189_v56, %v1131_v36  ;;  %8803 = vst [vmem:[#allocation43_spill] sm:$0xff] %v5417_v18 }
 0x1dc   : > { %v1362_v55 = vmul.f32 %v5349_v13, %v5370_v35  ;;  %v1494_v19 = vmul.f32 %v1361_v46, %v1361_v46  ;;  %vm575_vm4 = vcmp.lt.s32.totalorder %v510_v60, %v5175_v50  ;;  %v531_v61 = vadd.s32 304, %v5157_v44 }
 0x1dd   : > { %v1422_v49 = vadd.f32 %v1421_v41, %v1359_v40  ;;  %v1492_v51 = vmul.f32 %v1359_v40, %v1359_v40  ;;  %v1554_v53 = vadd.f32 %v1553_v39, %v1491_v34  ;;  %v1360_v54 = vmul.f32 %v5354_v14, %v5382_v42 }
 0x1de   : > { %v1495_v30 = vmul.f32 %v1362_v55, %v1362_v55  ;;  %v515_v40 = vadd.s32 176, %v5157_v44  ;;  %v513_v41 = vadd.s32 160, %v5157_v44 }
 0x1df   : > { %v1555_v63 = vadd.f32 %v1554_v53, %v1492_v51  ;;  %v1423_v0 = vadd.f32 %v1422_v49, %v1360_v54  ;;  %v1493_v5 = vmul.f32 %v1360_v54, %v1360_v54  ;;  %v4034_v8 = vpop.f32.mrb[12].mxu0 }
 0x1e0   : > { %v5407_v12 = vadd.f32 %v4034_v8, %v5189_v56  ;;  %v1144_v17 = vpop.f32.mrb[13].mxu0  ;;  %vm580_vm5 = vcmp.lt.s32.totalorder %v515_v40, %v5175_v50  ;;  %vm578_vm6 = vcmp.lt.s32.totalorder %v513_v41, %v5175_v50  ;;  %v517_v41 = vadd.s32 192, %v5157_v44 }
 0x1e1   : > { %v1424_v15 = vadd.f32 %v1423_v0, %v1361_v46  ;;  %v1556_v23 = vadd.f32 %v1555_v63, %v1493_v5  ;;  %v5421_v26 = vadd.f32 %v5189_v56, %v1144_v17  ;;  %v4035_v29 = vpop.f32.mrb[14].mxu0  ;;  %v516_v46 = vadd.s32 184, %v5157_v44 }
 0x1e2   : > { %v5424_v31 = vadd.f32 %v4035_v29, %v5189_v56  ;;  %v1147_v27 = vpop.f32.mrb[15].mxu0  ;;  %v1365_v39 = vmul.f32 %v5375_v37, %v5407_v12  ;;  %v5445_v63 = vsel %vm574_vm2, 1.0, %v8575_v1  ;;  %v5450_v0 = vsel %vm577_vm3, 1.0, %v8575_v1 }
 0x1e3   : > { %v1557_v28 = vadd.f32 %v1556_v23, %v1494_v19  ;;  %v1363_v33 = vmul.f32 %v5397_v57, %v5421_v26  ;;  %v1425_v34 = vadd.f32 %v1424_v15, %v1362_v55  ;;  %v5431_v36 = vadd.f32 %v5189_v56, %v1147_v27  ;;  %8804 = vst [vmem:[#allocation44_spill] sm:$0xff] %v5445_v63 }
 0x1e4   : > { %v1366_v55 = vmul.f32 %v5404_v11, %v5424_v31  ;;  %8805 = vst [vmem:[#allocation45_spill] sm:$0xff] %v5450_v0  ;;  %v514_v5 = vadd.s32 168, %v5157_v44  ;;  %v5456_v23 = vsel %vm575_vm4, 1.0, %v8575_v1  ;;  %vm581_vm7 = vcmp.lt.s32.totalorder %v516_v46, %v5175_v50 }
 0x1e5   : > { %v1426_v49 = vadd.f32 %v1425_v34, %v1363_v33  ;;  %v1496_v51 = vmul.f32 %v1363_v33, %v1363_v33  ;;  %v1558_v53 = vadd.f32 %v1557_v28, %v1495_v30  ;;  %v1364_v54 = vmul.f32 %v5412_v62, %v5431_v36  ;;  %8806 = vst [vmem:[#allocation46_spill] sm:$0xff] %v5456_v23 }
 0x1e6   : > { %v1498_v58 = vmul.f32 %v1365_v39, %v1365_v39  ;;  %v1499_v60 = vmul.f32 %v1366_v55, %v1366_v55  ;;  %vm579_vm8 = vcmp.lt.s32.totalorder %v514_v5, %v5175_v50  ;;  %v5487_v5 = vsel %vm578_vm6, 1.0, %v8575_v1 }
 0x1e7   : > { %v1559_v8 = vadd.f32 %v1558_v53, %v1496_v51  ;;  %v1427_v17 = vadd.f32 %v1426_v49, %v1364_v54  ;;  %v1497_v19 = vmul.f32 %v1364_v54, %v1364_v54  ;;  %v4038_v15 = vpop.f32.mrb[16].mxu0  ;;  %v519_v51 = vadd.s32 208, %v5157_v44  ;;  %8808 = vst [vmem:[#allocation48_spill] sm:$0xff] %v5487_v5 }
 0x1e8   : > { %v5459_v48 = vadd.f32 %v4038_v15, %v5189_v56  ;;  %v1160_v29 = vpop.f32.mrb[17].mxu0  ;;  %v5496_v40 = vsel %vm581_vm7, 1.0, %v8575_v1  ;;  %v518_v46 = vadd.s32 200, %v5157_v44  ;;  %vm582_vm11 = vcmp.lt.s32.totalorder %v517_v41, %v5175_v50 }
 0x1e9   : > { %v1428_v30 = vadd.f32 %v1427_v17, %v1365_v39  ;;  %v1560_v27 = vadd.f32 %v1559_v8, %v1497_v19  ;;  %v5465_v28 = vadd.f32 %v5189_v56, %v1160_v29  ;;  %v4039_v33 = vpop.f32.mrb[18].mxu0  ;;  %v5482_v17 = vsel %vm580_vm5, 1.0, %v8575_v1  ;;  %8809 = vst [vmem:[#allocation49_spill] sm:$0xff] %v5496_v40 }
 0x1ea   : > { %v5468_v34 = vadd.f32 %v4039_v33, %v5189_v56  ;;  %v1163_v49 = vpop.f32.mrb[19].mxu0  ;;  %v1369_v8 = vmul.f32 %v5417_v18, %v5459_v48  ;;  %8807 = vst [vmem:[#allocation47_spill] sm:$0xff] %v5482_v17  ;;  %vm584_vm10 = vcmp.lt.s32.totalorder %v519_v51, %v5175_v50  ;;  %vm583_vm13 = vcmp.lt.s32.totalorder %v518_v46, %v5175_v50 }
 0x1eb   : > { %v1561_v53 = vadd.f32 %v1560_v27, %v1498_v58  ;;  %v1367_v54 = vmul.f32 %v5445_v63, %v5465_v28  ;;  %v1429_v15 = vadd.f32 %v1428_v30, %v1366_v55  ;;  %v5475_v39 = vadd.f32 %v5189_v56, %v1163_v49 }
 0x1ec   : > { %v1370_v30 = vmul.f32 %v5450_v0, %v5468_v34  ;;  %v5499_v27 = vsel %vm579_vm8, 1.0, %v8575_v1  ;;  %v523_v0 = vadd.s32 240, %v5157_v44  ;;  %v1502_v1 = vmul.f32 %v1369_v8, %v1369_v8 }
 0x1ed   : > { %v1430_v19 = vadd.f32 %v1429_v15, %v1367_v54  ;;  %v1500_v29 = vmul.f32 %v1367_v54, %v1367_v54  ;;  %v1562_v58 = vadd.f32 %v1561_v53, %v1499_v60  ;;  %v1368_v55 = vmul.f32 %v5456_v23, %v5475_v39  ;;  %8810 = vst [vmem:[#allocation50_spill] sm:$0xff] %v5499_v27 }
 0x1ee   : > { %vm588_vm14 = vcmp.lt.s32.totalorder %v523_v0, %v5175_v50  ;;  %vm596_vm6 = vcmp.lt.s32.totalorder %v531_v61, %v5175_v50 }
 0x1ef   : > { %v1563_v33 = vadd.f32 %v1562_v58, %v1500_v29  ;;  %v1431_v49 = vadd.f32 %v1430_v19, %v1368_v55  ;;  %v1501_v54 = vmul.f32 %v1368_v55, %v1368_v55  ;;  %v4042_v60 = vpop.f32.mrb[20].mxu0  ;;  %v1503_v58 = vmul.f32 %v1370_v30, %v1370_v30 }
 0x1f0   : > { %v5504_v53 = vadd.f32 %v4042_v60, %v5189_v56  ;;  %v1176_v15 = vpop.f32.mrb[21].mxu0  ;;  %v8811_v60 = vmov 0.0  }
 0x1f1   : > { %v1432_v18 = vadd.f32 %v1431_v49, %v1369_v8  ;;  %v1564_v23 = vadd.f32 %v1563_v33, %v1501_v54  ;;  %v5510_v29 = vadd.f32 %v5189_v56, %v1176_v15  ;;  %v4043_v19 = vpop.f32.mrb[22].mxu0  ;;  %v5516_v63 = vsel %vm584_vm10, 1.0, %v8811_v60 }
 0x1f2   : > { %v5513_v51 = vadd.f32 %v4043_v19, %v5189_v56  ;;  %v1179_v55 = vpop.f32.mrb[23].mxu0  ;;  %8812 = vst [vmem:[#allocation51_spill] sm:$0xff] %v5516_v63  ;;  %v1373_v49 = vmul.f32 %v5482_v17, %v5504_v53 }
 0x1f3   : > { %v1565_v11 = vadd.f32 %v1564_v23, %v1502_v1  ;;  %v1371_v37 = vmul.f32 %v5487_v5, %v5510_v29  ;;  %v1433_v8 = vadd.f32 %v1432_v18, %v1370_v30  ;;  %v5522_v33 = vadd.f32 %v5189_v56, %v1179_v55 }
 0x1f4   : > { %v1374_v18 = vmul.f32 %v5496_v40, %v5513_v51  ;;  %v5534_v23 = vsel %vm582_vm11, 1.0, %v8811_v60  ;;  %v521_v30 = vadd.s32 224, %v5157_v44  ;;  %v5552_v40 = vsel %vm588_vm14, 1.0, %v8811_v60 }
 0x1f5   : > { %v1434_v54 = vadd.f32 %v1433_v8, %v1371_v37  ;;  %v1504_v15 = vmul.f32 %v1371_v37, %v1371_v37  ;;  %v1566_v41 = vadd.f32 %v1565_v11, %v1503_v58  ;;  %v1372_v1 = vmul.f32 %v5499_v27, %v5522_v33  ;;  %8813 = vst [vmem:[#allocation52_spill] sm:$0xff] %v5534_v23 }
 0x1f6   : > { %v5539_v37 = vsel %vm585_vm12, 1.0, %v8811_v60  ;;  %v5547_v8 = vsel %vm583_vm13, 1.0, %v8811_v60  ;;  %8816 = vst [vmem:[#allocation55_spill] sm:$0xff] %v5552_v40  ;;  %v1507_v62 = vmul.f32 %v1374_v18, %v1374_v18  ;;  %vm586_vm15 = vcmp.lt.s32.totalorder %v521_v30, %v5175_v50 }
 0x1f7   : > { %v1567_v19 = vadd.f32 %v1566_v41, %v1504_v15  ;;  %v1435_v55 = vadd.f32 %v1434_v54, %v1372_v1  ;;  %v1505_v17 = vmul.f32 %v1372_v1, %v1372_v1  ;;  %v4046_v5 = vpop.f32.mrb[24].mxu0  ;;  %8814 = vst [vmem:[#allocation53_spill] sm:$0xff] %v5539_v37  ;;  %8815 = vst [vmem:[#allocation54_spill] sm:$0xff] %v5547_v8  ;;  %v522_v54 = vadd.s32 232, %v5157_v44 }
 0x1f8   : > { %v5542_v11 = vadd.f32 %v4046_v5, %v5189_v56  ;;  %v1192_v58 = vpop.f32.mrb[25].mxu0  ;;  %v1506_v15 = vmul.f32 %v1373_v49, %v1373_v49 }
 0x1f9   : > { %v1436_v41 = vadd.f32 %v1435_v55, %v1373_v49  ;;  %v1568_v1 = vadd.f32 %v1567_v19, %v1505_v17  ;;  %v5556_v27 = vadd.f32 %v5189_v56, %v1192_v58  ;;  %v4047_v5 = vpop.f32.mrb[26].mxu0  ;;  %vm587_vm1 = vcmp.lt.s32.totalorder %v522_v54, %v5175_v50 }
 0x1fa   : > { %v5559_v57 = vadd.f32 %v4047_v5, %v5189_v56  ;;  %v1195_v46 = vpop.f32.mrb[27].mxu0  ;;  %v1377_v49 = vmul.f32 %v5516_v63, %v5542_v11  ;;  %v527_v19 = vadd.s32 272, %v5157_v44  ;;  %v525_v55 = vadd.s32 256, %v5157_v44 }
 0x1fb   : > { %v1569_v0 = vadd.f32 %v1568_v1, %v1506_v15  ;;  %v1375_v13 = vmul.f32 %v5534_v23, %v5556_v27  ;;  %v1437_v47 = vadd.f32 %v1436_v41, %v1374_v18  ;;  %v5566_v17 = vadd.f32 %v5189_v56, %v1195_v46 }
 0x1fc   : > { %v1378_v18 = vmul.f32 %v5539_v37, %v5559_v57  ;;  %v5578_v41 = vsel %vm586_vm15, 1.0, %v8811_v60  ;;  %v5581_v1 = vsel %vm589_vm0, 1.0, %v8811_v60  ;;  %v528_v54 = vadd.s32 280, %v5157_v44 }
 0x1fd   : > { %v1438_v30 = vadd.f32 %v1437_v47, %v1375_v13  ;;  %v1508_v58 = vmul.f32 %v1375_v13, %v1375_v13  ;;  %v1570_v45 = vadd.f32 %v1569_v0, %v1507_v62  ;;  %v1376_v15 = vmul.f32 %v5547_v8, %v5566_v17  ;;  %8817 = vst [vmem:[#allocation56_spill] sm:$0xff] %v5578_v41 }
 0x1fe   : > { %8818 = vst [vmem:[#allocation57_spill] sm:$0xff] %v5581_v1  ;;  %v5585_v13 = vsel %vm587_vm1, 1.0, %v8811_v60  ;;  %vm592_vm2 = vcmp.lt.s32.totalorder %v527_v19, %v5175_v50  ;;  %vm590_vm3 = vcmp.lt.s32.totalorder %v525_v55, %v5175_v50  ;;  %v526_v37 = vadd.s32 264, %v5157_v44 }
 0x1ff   : > { %v1571_v5 = vadd.f32 %v1570_v45, %v1508_v58  ;;  %v1439_v46 = vadd.f32 %v1438_v30, %v1376_v15  ;;  %v1509_v63 = vmul.f32 %v1376_v15, %v1376_v15  ;;  %v4050_v47 = vpop.f32.mrb[28].mxu0  ;;  %8819 = vst [vmem:[#allocation58_spill] sm:$0xff] %v5585_v13  ;;  %v1510_v8 = vmul.f32 %v1377_v49, %v1377_v49 }
 0x200   : > { %v5588_v62 = vadd.f32 %v4050_v47, %v5189_v56  ;;  %v1208_v0 = vpop.f32.mrb[29].mxu0  ;;  %v1511_v45 = vmul.f32 %v1378_v18, %v1378_v18  ;;  %vm593_vm4 = vcmp.lt.s32.totalorder %v528_v54, %v5175_v50  ;;  %vm591_vm5 = vcmp.lt.s32.totalorder %v526_v37, %v5175_v50 }
 0x201   : > { %v1440_v23 = vadd.f32 %v1439_v46, %v1377_v49  ;;  %v1572_v14 = vadd.f32 %v1571_v5, %v1509_v63  ;;  %v5594_v30 = vadd.f32 %v5189_v56, %v1208_v0  ;;  %v4051_v58 = vpop.f32.mrb[30].mxu0  ;;  %v5611_v5 = vsel %vm592_vm2, 1.0, %v8811_v60 }
 0x202   : > { %v5597_v15 = vadd.f32 %v4051_v58, %v5189_v56  ;;  %v1211_v47 = vpop.f32.mrb[31].mxu0  ;;  %v1381_v49 = vmul.f32 %v5552_v40, %v5588_v62  ;;  %8820 = vst [vmem:[#allocation59_spill] sm:$0xff] %v5611_v5  ;;  %v5624_v19 = vsel %vm593_vm4, 1.0, %v8811_v60  ;;  %v529_v0 = vadd.s32 288, %v5157_v44 }
 0x203   : > { %v1573_v24 = vadd.f32 %v1572_v14, %v1510_v8  ;;  %v1379_v20 = vmul.f32 %v5578_v41, %v5594_v30  ;;  %v1441_v25 = vadd.f32 %v1440_v23, %v1378_v18  ;;  %v5604_v63 = vadd.f32 %v5189_v56, %v1211_v47  ;;  %8822 = vst [vmem:[#allocation61_spill] sm:$0xff] %v5624_v19 }
 0x204   : > { %v1382_v23 = vmul.f32 %v5581_v1, %v5597_v15  ;;  %v5621_v18 = vsel %vm590_vm3, 1.0, %v8811_v60  ;;  %v5634_v55 = vsel %vm591_vm5, 1.0, %v8811_v60  ;;  %v532_v1 = vadd.s32 312, %v5157_v44 }
 0x205   : > { %v1442_v54 = vadd.f32 %v1441_v25, %v1379_v20  ;;  %v1512_v46 = vmul.f32 %v1379_v20, %v1379_v20  ;;  %v1574_v14 = vadd.f32 %v1573_v24, %v1511_v45  ;;  %v1380_v8 = vmul.f32 %v5585_v13, %v5604_v63  ;;  %8821 = vst [vmem:[#allocation60_spill] sm:$0xff] %v5621_v18 }
 0x206   : > { %8824 = vst [vmem:[#allocation63_spill] sm:$0xff] %v5634_v55  ;;  %v530_v40 = vadd.s32 296, %v5157_v44  ;;  %v1514_v13 = vmul.f32 %v1381_v49, %v1381_v49  ;;  %v5645_v37 = vsel %vm596_vm6, 1.0, %v8811_v60  ;;  %vm594_vm7 = vcmp.lt.s32.totalorder %v529_v0, %v5175_v50 }
 0x207   : > { %v1575_v58 = vadd.f32 %v1574_v14, %v1512_v46  ;;  %v1443_v25 = vadd.f32 %v1442_v54, %v1380_v8  ;;  %v1513_v20 = vmul.f32 %v1380_v8, %v1380_v8  ;;  %v4054_v24 = vpop.f32.mrb[32].mxu0  ;;  %v1515_v8 = vmul.f32 %v1382_v23, %v1382_v23  ;;  %8826 = vst [vmem:[#allocation65_spill] sm:$0xff] %v5645_v37 }
 0x208   : > { %v5629_v45 = vadd.f32 %v4054_v24, %v5189_v56  ;;  %v1224_v47 = vpop.f32.mrb[33].mxu0  ;;  %vm597_vm8 = vcmp.lt.s32.totalorder %v532_v1, %v5175_v50  ;;  %vm595_vm10 = vcmp.lt.s32.totalorder %v530_v40, %v5175_v50  ;;  %v536_v1 = vadd.s32 344, %v5157_v44 }
 0x209   : > { %v1444_v46 = vadd.f32 %v1443_v25, %v1381_v49  ;;  %v1576_v54 = vadd.f32 %v1575_v58, %v1513_v20  ;;  %v5639_v14 = vadd.f32 %v5189_v56, %v1224_v47  ;;  %v4055_v61 = vpop.f32.mrb[34].mxu0  ;;  %v535_v20 = vadd.s32 336, %v5157_v44 }
 0x20a   : > { %8823 = vst [vmem:[#allocation62_spill] sm:$0xff] %v5629_v45  ;;  %v5642_v24 = vadd.f32 %v4055_v61, %v5189_v56  ;;  %v1227_v41 = vpop.f32.mrb[35].mxu0  ;;  %v1385_v25 = vmul.f32 %v5611_v5, %v5629_v45  ;;  %vm601_vm13 = vcmp.lt.s32.totalorder %v536_v1, %v5175_v50 }
 0x20b   : > { %v1577_v21 = vadd.f32 %v1576_v54, %v1514_v13  ;;  %v1383_v6 = vmul.f32 %v5621_v18, %v5639_v14  ;;  %v1445_v49 = vadd.f32 %v1444_v46, %v1382_v23  ;;  %v5651_v58 = vadd.f32 %v5189_v56, %v1227_v41 }
 0x20c   : > { %8825 = vst [vmem:[#allocation64_spill] sm:$0xff] %v5642_v24  ;;  %v1386_v23 = vmul.f32 %v5624_v19, %v5642_v24  ;;  %v5663_v41 = vsel %vm594_vm7, 1.0, %v8811_v60  ;;  %v533_v46 = vadd.s32 320, %v5157_v44  ;;  %vm600_vm11 = vcmp.lt.s32.totalorder %v535_v20, %v5175_v50 }
 0x20d   : > { %8827 = vst [vmem:[#allocation66_spill] sm:$0xff] %v5651_v58  ;;  %v1446_v47 = vadd.f32 %v1445_v49, %v1383_v6  ;;  %v1516_v61 = vmul.f32 %v1383_v6, %v1383_v6  ;;  %v1578_v0 = vadd.f32 %v1577_v21, %v1515_v8  ;;  %v1384_v13 = vmul.f32 %v5634_v55, %v5651_v58 }
 0x20e   : > { %8828 = vst [vmem:[#allocation67_spill] sm:$0xff] %v5663_v41  ;;  %v5668_v6 = vsel %vm597_vm8, 1.0, %v8811_v60  ;;  %v5676_v49 = vsel %vm595_vm10, 1.0, %v8811_v60  ;;  %v534_v19 = vadd.s32 328, %v5157_v44  ;;  %v1519_v9 = vmul.f32 %v1386_v23, %v1386_v23 }
 0x20f   : > { %v1579_v54 = vadd.f32 %v1578_v0, %v1516_v61  ;;  %v1447_v5 = vadd.f32 %v1446_v47, %v1384_v13  ;;  %v1517_v18 = vmul.f32 %v1384_v13, %v1384_v13  ;;  %v4058_v2 = vpop.f32.mrb[36].mxu0  ;;  %8829 = vst [vmem:[#allocation68_spill] sm:$0xff] %v5668_v6  ;;  %8831 = vst [vmem:[#allocation70_spill] sm:$0xff] %v5676_v49 }
 0x210   : > { %v5671_v21 = vadd.f32 %v4058_v2, %v5189_v56  ;;  %v1240_v8 = vpop.f32.mrb[37].mxu0  ;;  %v1518_v61 = vmul.f32 %v1385_v25, %v1385_v25  ;;  %vm598_vm12 = vcmp.lt.s32.totalorder %v533_v46, %v5175_v50  ;;  %vm599_vm14 = vcmp.lt.s32.totalorder %v534_v19, %v5175_v50 }
 0x211   : > { %v1448_v47 = vadd.f32 %v1447_v5, %v1385_v25  ;;  %v1580_v0 = vadd.f32 %v1579_v54, %v1517_v18  ;;  %v5681_v13 = vadd.f32 %v5189_v56, %v1240_v8  ;;  %v4059_v55 = vpop.f32.mrb[38].mxu0  ;;  %v537_v25 = vadd.s32 352, %v5157_v44 }
 0x212   : > { %8830 = vst [vmem:[#allocation69_spill] sm:$0xff] %v5671_v21  ;;  %v5684_v2 = vadd.f32 %v4059_v55, %v5189_v56  ;;  %v1243_v4 = vpop.f32.mrb[39].mxu0  ;;  %v1389_v18 = vmul.f32 %v5645_v37, %v5671_v21  ;;  %v539_v55 = vadd.s32 368, %v5157_v44  ;;  %v5724_v46 = vsel %vm599_vm14, 1.0, %v8811_v60 }
 0x213   : > { %v1581_v40 = vadd.f32 %v1580_v0, %v1518_v61  ;;  %v1387_v24 = vmul.f32 %v5663_v41, %v5681_v13  ;;  %v1449_v45 = vadd.f32 %v1448_v47, %v1386_v23  ;;  %v5691_v5 = vadd.f32 %v5189_v56, %v1243_v4  ;;  %8838 = vst [vmem:[#allocation77_spill] sm:$0xff] %v5724_v46 }
 0x214   : > { %8832 = vst [vmem:[#allocation71_spill] sm:$0xff] %v5684_v2  ;;  %v1390_v23 = vmul.f32 %v5668_v6, %v5684_v2  ;;  %v5705_v4 = vsel %vm600_vm11, 1.0, %v8811_v60  ;;  %v5710_v47 = vsel %vm598_vm12, 1.0, %v8811_v60  ;;  %v5716_v6 = vsel %vm601_vm13, 1.0, %v8811_v60 }
 0x215   : > { %8833 = vst [vmem:[#allocation72_spill] sm:$0xff] %v5691_v5  ;;  %v1450_v54 = vadd.f32 %v1449_v45, %v1387_v24  ;;  %v1520_v8 = vmul.f32 %v1387_v24, %v1387_v24  ;;  %v1582_v58 = vadd.f32 %v1581_v40, %v1519_v9  ;;  %v1388_v61 = vmul.f32 %v5676_v49, %v5691_v5 }
 0x216   : > { %8834 = vst [vmem:[#allocation73_spill] sm:$0xff] %v5705_v4  ;;  %8835 = vst [vmem:[#allocation74_spill] sm:$0xff] %v5710_v47  ;;  %v540_v45 = vadd.s32 376, %v5157_v44  ;;  %vm604_vm15 = vcmp.lt.s32.totalorder %v539_v55, %v5175_v50  ;;  %vm602_vm0 = vcmp.lt.s32.totalorder %v537_v25, %v5175_v50  ;;  %v1523_v49 = vmul.f32 %v1390_v23, %v1390_v23 }
 0x217   : > { %v1583_v24 = vadd.f32 %v1582_v58, %v1520_v8  ;;  %v1451_v9 = vadd.f32 %v1450_v54, %v1388_v61  ;;  %v1521_v0 = vmul.f32 %v1388_v61, %v1388_v61  ;;  %v4062_v40 = vpop.f32.mrb[40].mxu0  ;;  %8836 = vst [vmem:[#allocation75_spill] sm:$0xff] %v5716_v6  ;;  %v1522_v58 = vmul.f32 %v1389_v18, %v1389_v18 }
 0x218   : > { %v5719_v20 = vadd.f32 %v4062_v40, %v5189_v56  ;;  %v1256_v37 = vpop.f32.mrb[41].mxu0  ;;  %vm605_vm1 = vcmp.lt.s32.totalorder %v540_v45, %v5175_v50  ;;  %v538_v19 = vadd.s32 360, %v5157_v44  ;;  %v543_v45 = vadd.s32 400, %v5157_v44 }
 0x219   : > { %v1452_v54 = vadd.f32 %v1451_v9, %v1389_v18  ;;  %v1584_v8 = vadd.f32 %v1583_v24, %v1521_v0  ;;  %v5729_v1 = vadd.f32 %v5189_v56, %v1256_v37  ;;  %v4063_v61 = vpop.f32.mrb[42].mxu0  ;;  %v5746_v24 = vsel %vm604_vm15, 1.0, %v8811_v60 }
 0x21a   : > { %8837 = vst [vmem:[#allocation76_spill] sm:$0xff] %v5719_v20  ;;  %v5732_v40 = vadd.f32 %v4063_v61, %v5189_v56  ;;  %v1259_v41 = vpop.f32.mrb[43].mxu0  ;;  %v1393_v37 = vmul.f32 %v5705_v4, %v5719_v20  ;;  %8842 = vst [vmem:[#allocation81_spill] sm:$0xff] %v5746_v24  ;;  %v5759_v55 = vsel %vm605_vm1, 1.0, %v8811_v60  ;;  %vm603_vm2 = vcmp.lt.s32.totalorder %v538_v19, %v5175_v50 }
 0x21b   : > { %8839 = vst [vmem:[#allocation78_spill] sm:$0xff] %v5729_v1  ;;  %v1585_v2 = vadd.f32 %v1584_v8, %v1522_v58  ;;  %v1391_v21 = vmul.f32 %v5710_v47, %v5729_v1  ;;  %v1453_v5 = vadd.f32 %v1452_v54, %v1390_v23  ;;  %v5739_v18 = vadd.f32 %v5189_v56, %v1259_v41 }
 0x21c   : > { %8840 = vst [vmem:[#allocation79_spill] sm:$0xff] %v5732_v40  ;;  %v1394_v41 = vmul.f32 %v5716_v6, %v5732_v40  ;;  %v5756_v23 = vsel %vm602_vm0, 1.0, %v8811_v60  ;;  %8844 = vst [vmem:[#allocation83_spill] sm:$0xff] %v5759_v55  ;;  %v541_v54 = vadd.s32 384, %v5157_v44  ;;  %vm608_vm3 = vcmp.lt.s32.totalorder %v543_v45, %v5175_v50 }
 0x21d   : > { %8841 = vst [vmem:[#allocation80_spill] sm:$0xff] %v5739_v18  ;;  %v1454_v9 = vadd.f32 %v1453_v5, %v1391_v21  ;;  %v1524_v0 = vmul.f32 %v1391_v21, %v1391_v21  ;;  %v1586_v58 = vadd.f32 %v1585_v2, %v1523_v49  ;;  %v1392_v8 = vmul.f32 %v5724_v46, %v5739_v18 }
 0x21e   : > { %8843 = vst [vmem:[#allocation82_spill] sm:$0xff] %v5756_v23  ;;  %v544_v25 = vadd.s32 408, %v5157_v44  ;;  %v542_v4 = vadd.s32 392, %v5157_v44  ;;  %v1526_v46 = vmul.f32 %v1393_v37, %v1393_v37  ;;  %vm606_vm4 = vcmp.lt.s32.totalorder %v541_v54, %v5175_v50 }
 0x21f   : > { %v1587_v61 = vadd.f32 %v1586_v58, %v1524_v0  ;;  %v1455_v5 = vadd.f32 %v1454_v9, %v1392_v8  ;;  %v1525_v21 = vmul.f32 %v1392_v8, %v1392_v8  ;;  %v4066_v49 = vpop.f32.mrb[44].mxu0  ;;  %v1527_v58 = vmul.f32 %v1394_v41, %v1394_v41 }
 0x220   : > { %v5764_v2 = vadd.f32 %v4066_v49, %v5189_v56  ;;  %v1272_v6 = vpop.f32.mrb[45].mxu0  ;;  %v5776_v8 = vsel %vm603_vm2, 1.0, %v8811_v60  ;;  %vm609_vm5 = vcmp.lt.s32.totalorder %v544_v25, %v5175_v50  ;;  %vm607_vm6 = vcmp.lt.s32.totalorder %v542_v4, %v5175_v50 }
 0x221   : > { %v1456_v47 = vadd.f32 %v1455_v5, %v1393_v37  ;;  %v1588_v40 = vadd.f32 %v1587_v61, %v1525_v21  ;;  %v5770_v0 = vadd.f32 %v5189_v56, %v1272_v6  ;;  %v4067_v9 = vpop.f32.mrb[46].mxu0  ;;  %8848 = vst [vmem:[#allocation87_spill] sm:$0xff] %v5776_v8  ;;  %v5789_v5 = vsel %vm608_vm3, 1.0, %v8811_v60 }
 0x222   : > { %8845 = vst [vmem:[#allocation84_spill] sm:$0xff] %v5764_v2  ;;  %v5773_v19 = vadd.f32 %v4067_v9, %v5189_v56  ;;  %v1275_v49 = vpop.f32.mrb[47].mxu0  ;;  %v1397_v6 = vmul.f32 %v5746_v24, %v5764_v2  ;;  %8850 = vst [vmem:[#allocation89_spill] sm:$0xff] %v5789_v5  ;;  %v5798_v21 = vsel %vm606_vm4, 1.0, %v8811_v60  ;;  %v547_v45 = vadd.s32 432, %v5157_v44 }
 0x223   : > { %8846 = vst [vmem:[#allocation85_spill] sm:$0xff] %v5770_v0  ;;  %v1589_v20 = vadd.f32 %v1588_v40, %v1526_v46  ;;  %v1395_v18 = vmul.f32 %v5756_v23, %v5770_v0  ;;  %v1457_v37 = vadd.f32 %v1456_v47, %v1394_v41  ;;  %v5782_v61 = vadd.f32 %v5189_v56, %v1275_v49 }
 0x224   : > { %8847 = vst [vmem:[#allocation86_spill] sm:$0xff] %v5773_v19  ;;  %v1398_v41 = vmul.f32 %v5759_v55, %v5773_v19  ;;  %8851 = vst [vmem:[#allocation90_spill] sm:$0xff] %v5798_v21  ;;  %v545_v9 = vadd.s32 416, %v5157_v44  ;;  %v548_v55 = vadd.s32 440, %v5157_v44  ;;  %vm612_vm7 = vcmp.lt.s32.totalorder %v547_v45, %v5175_v50 }
 0x225   : > { %8849 = vst [vmem:[#allocation88_spill] sm:$0xff] %v5782_v61  ;;  %v1458_v46 = vadd.f32 %v1457_v37, %v1395_v18  ;;  %v1528_v40 = vmul.f32 %v1395_v18, %v1395_v18  ;;  %v1590_v54 = vadd.f32 %v1589_v20, %v1527_v58  ;;  %v1396_v47 = vmul.f32 %v5776_v8, %v5782_v61 }
 0x226   : > { %v5803_v18 = vsel %vm609_vm5, 1.0, %v8811_v60  ;;  %v5811_v37 = vsel %vm607_vm6, 1.0, %v8811_v60  ;;  %v546_v8 = vadd.s32 424, %v5157_v44  ;;  %v1531_v2 = vmul.f32 %v1398_v41, %v1398_v41 }
 0x227   : > { %v1591_v49 = vadd.f32 %v1590_v54, %v1528_v40  ;;  %v1459_v25 = vadd.f32 %v1458_v46, %v1396_v47  ;;  %v1529_v24 = vmul.f32 %v1396_v47, %v1396_v47  ;;  %v4070_v23 = vpop.f32.mrb[48].mxu0  ;;  %8852 = vst [vmem:[#allocation91_spill] sm:$0xff] %v5803_v18  ;;  %8854 = vst [vmem:[#allocation93_spill] sm:$0xff] %v5811_v37  ;;  %vm1617_vm4 = vcmask 1040384  }
 0x228   : > { %v5806_v20 = vadd.f32 %v4070_v23, %v5189_v56  ;;  %v1288_v58 = vpop.f32.mrb[49].mxu0  ;;  %v1530_v40 = vmul.f32 %v1397_v6, %v1397_v6  ;;  %vm610_vm8 = vcmp.lt.s32.totalorder %v545_v9, %v5175_v50  ;;  %vm613_vm10 = vcmp.lt.s32.totalorder %v548_v55, %v5175_v50 }
 0x229   : > { %v1460_v46 = vadd.f32 %v1459_v25, %v1397_v6  ;;  %v1592_v54 = vadd.f32 %v1591_v49, %v1529_v24  ;;  %v5816_v47 = vadd.f32 %v5189_v56, %v1288_v58  ;;  %v4071_v19 = vpop.f32.mrb[50].mxu0  ;;  %vm611_vm11 = vcmp.lt.s32.totalorder %v546_v8, %v5175_v50 }
 0x22a   : > { %8853 = vst [vmem:[#allocation92_spill] sm:$0xff] %v5806_v20  ;;  %v5819_v23 = vadd.f32 %v4071_v19, %v5189_v56  ;;  %v1291_v61 = vpop.f32.mrb[51].mxu0  ;;  %v1401_v6 = vmul.f32 %v5789_v5, %v5806_v20  ;;  %v551_v19 = vadd.s32 464, %v5157_v44  ;;  %v5841_v58 = vsel %vm610_vm8, 1.0, %v8811_v60 }
 0x22b   : > { %8855 = vst [vmem:[#allocation94_spill] sm:$0xff] %v5816_v47  ;;  %v1593_v4 = vadd.f32 %v1592_v54, %v1530_v40  ;;  %v1399_v0 = vmul.f32 %v5798_v21, %v5816_v47  ;;  %v1461_v1 = vadd.f32 %v1460_v46, %v1398_v41  ;;  %v5826_v24 = vadd.f32 %v5189_v56, %v1291_v61 }
 0x22c   : > { %8856 = vst [vmem:[#allocation95_spill] sm:$0xff] %v5819_v23  ;;  %v1402_v41 = vmul.f32 %v5803_v18, %v5819_v23  ;;  %v5838_v61 = vsel %vm612_vm7, 1.0, %v8811_v60  ;;  %8859 = vst [vmem:[#allocation98_spill] sm:$0xff] %v5841_v58  ;;  %v549_v55 = vadd.s32 448, %v5157_v44  ;;  %v5853_v18 = vsel %vm611_vm11, 1.0, %v8811_v60 }
 0x22d   : > { %8857 = vst [vmem:[#allocation96_spill] sm:$0xff] %v5826_v24  ;;  %v1462_v45 = vadd.f32 %v1461_v1, %v1399_v0  ;;  %v1532_v49 = vmul.f32 %v1399_v0, %v1399_v0  ;;  %v1594_v9 = vadd.f32 %v1593_v4, %v1531_v2  ;;  %v1400_v25 = vmul.f32 %v5811_v37, %v5826_v24 }
 0x22e   : > { %8858 = vst [vmem:[#allocation97_spill] sm:$0xff] %v5838_v61  ;;  %v5845_v2 = vsel %vm613_vm10, 1.0, %v8811_v60  ;;  %8862 = vst [vmem:[#allocation101_spill] sm:$0xff] %v5853_v18  ;;  %vm616_vm12 = vcmp.lt.s32.totalorder %v551_v19, %v5175_v50  ;;  %v552_v5 = vadd.s32 472, %v5157_v44  ;;  %vm614_vm13 = vcmp.lt.s32.totalorder %v549_v55, %v5175_v50 }
 0x22f   : > { %v1595_v40 = vadd.f32 %v1594_v9, %v1532_v49  ;;  %v1463_v46 = vadd.f32 %v1462_v45, %v1400_v25  ;;  %v1533_v1 = vmul.f32 %v1400_v25, %v1400_v25  ;;  %v4074_v0 = vpop.f32.mrb[52].mxu0  ;;  %8860 = vst [vmem:[#allocation99_spill] sm:$0xff] %v5845_v2  ;;  %v1534_v49 = vmul.f32 %v1401_v6, %v1401_v6  ;;  %v5858_v25 = vld [vmem:[%s5098_s14] ss:$0 sm:$0xff] }
 0x230   : > { %v5848_v54 = vadd.f32 %v4074_v0, %v5189_v56  ;;  %v1304_v4 = vpop.f32.mrb[53].mxu0  ;;  %v1535_v0 = vmul.f32 %v1402_v41, %v1402_v41  ;;  %v550_v23 = vadd.s32 456, %v5157_v44  ;;  %vm617_vm14 = vcmp.lt.s32.totalorder %v552_v5, %v5175_v50 }
 0x231   : > { %v1464_v45 = vadd.f32 %v1463_v46, %v1401_v6  ;;  %v1596_v9 = vadd.f32 %v1595_v40, %v1533_v1  ;;  %v5861_v37 = vadd.f32 %v5858_v25, %v1304_v4  ;;  %v4075_v56 = vpop.f32.mrb[54].mxu0  ;;  %v555_v19 = vadd.s32 496, %v5157_v44 }
 0x232   : > { %8861 = vst [vmem:[#allocation100_spill] sm:$0xff] %v5848_v54  ;;  %v5864_v21 = vadd.f32 %v5858_v25, %v4075_v56  ;;  %v1307_v8 = vpop.f32.mrb[55].mxu0  ;;  %v1405_v1 = vmul.f32 %v5838_v61, %v5848_v54  ;;  %vm615_vm15 = vcmp.lt.s32.totalorder %v550_v23, %v5175_v50  ;;  %vm1701_vm5 = vcmask 261120  }
 0x233   : > { %8863 = vst [vmem:[#allocation102_spill] sm:$0xff] %v5861_v37  ;;  %v1597_v20 = vadd.f32 %v1596_v9, %v1534_v49  ;;  %v1403_v6 = vmul.f32 %v5841_v58, %v5861_v37  ;;  %v1465_v40 = vadd.f32 %v1464_v45, %v1402_v41  ;;  %v5871_v46 = vadd.f32 %v5858_v25, %v1307_v8 }
 0x234   : > { %8864 = vst [vmem:[#allocation103_spill] sm:$0xff] %v5864_v21  ;;  %v1406_v49 = vmul.f32 %v5845_v2, %v5864_v21  ;;  %v5883_v41 = vsel %vm616_vm12, 1.0, %v8811_v60  ;;  %v5886_v45 = vsel %vm614_vm13, 1.0, %v8811_v60  ;;  %v553_v2 = vadd.s32 480, %v5157_v44 }
 0x235   : > { %8865 = vst [vmem:[#allocation104_spill] sm:$0xff] %v5871_v46  ;;  %v1466_v4 = vadd.f32 %v1465_v40, %v1403_v6  ;;  %v1536_v56 = vmul.f32 %v1403_v6, %v1403_v6  ;;  %v1598_v24 = vadd.f32 %v1597_v20, %v1535_v0  ;;  %v1404_v55 = vmul.f32 %v5853_v18, %v5871_v46 }
 0x236   : > { %8866 = vst [vmem:[#allocation105_spill] sm:$0xff] %v5883_v41  ;;  %8867 = vst [vmem:[#allocation106_spill] sm:$0xff] %v5886_v45  ;;  %v5893_v6 = vsel %vm617_vm14, 1.0, %v8811_v60  ;;  %v1538_v61 = vmul.f32 %v1405_v1, %v1405_v1  ;;  %v554_v21 = vadd.s32 488, %v5157_v44  ;;  %vm620_vm0 = vcmp.lt.s32.totalorder %v555_v19, %v5175_v50 }
 0x237   : > { %v1599_v9 = vadd.f32 %v1598_v24, %v1536_v56  ;;  %v1467_v8 = vadd.f32 %v1466_v4, %v1404_v55  ;;  %v1537_v5 = vmul.f32 %v1404_v55, %v1404_v55  ;;  %v4078_v40 = vpop.f32.mrb[56].mxu0  ;;  %8869 = vst [vmem:[#allocation108_spill] sm:$0xff] %v5893_v6  ;;  %v1539_v56 = vmul.f32 %v1406_v49, %v1406_v49 }
 0x238   : > { %v5890_v20 = vadd.f32 %v5858_v25, %v4078_v40  ;;  %v1320_v0 = vpop.f32.mrb[57].mxu0  ;;  %v5904_v55 = vsel %vm615_vm15, 1.0, %v8811_v60  ;;  %vm618_vm1 = vcmp.lt.s32.totalorder %v553_v2, %v5175_v50  ;;  %vm619_vm2 = vcmp.lt.s32.totalorder %v554_v21, %v5175_v50 }
 0x239   : > { %v1468_v18 = vadd.f32 %v1467_v8, %v1405_v1  ;;  %v1600_v58 = vadd.f32 %v1599_v9, %v1537_v5  ;;  %v5898_v24 = vadd.f32 %v5858_v25, %v1320_v0  ;;  %v4079_v4 = vpop.f32.mrb[58].mxu0  ;;  %8871 = vst [vmem:[#allocation110_spill] sm:$0xff] %v5904_v55  ;;  %v556_v5 = vadd.s32 504, %v5157_v44 }
 0x23a   : > { %8868 = vst [vmem:[#allocation107_spill] sm:$0xff] %v5890_v20  ;;  %v5901_v23 = vadd.f32 %v5858_v25, %v4079_v4  ;;  %v1323_v40 = vpop.f32.mrb[59].mxu0  ;;  %v1409_v8 = vmul.f32 %v5883_v41, %v5890_v20  ;;  %v5923_v19 = vsel %vm620_vm0, 1.0, %v8811_v60 }
 0x23b   : > { %v1601_v54 = vadd.f32 %v1600_v58, %v1538_v61  ;;  %v1407_v46 = vmul.f32 %v5886_v45, %v5898_v24  ;;  %v1469_v1 = vadd.f32 %v1468_v18, %v1406_v49  ;;  %v5910_v9 = vadd.f32 %v5858_v25, %v1323_v40  ;;  %8873 = vst [vmem:[#allocation112_spill] sm:$0xff] %v5923_v19 }
 0x23c   : > { %8870 = vst [vmem:[#allocation109_spill] sm:$0xff] %v5901_v23  ;;  %v1410_v18 = vmul.f32 %v5893_v6, %v5901_v23  ;;  %vm621_vm3 = vcmp.lt.s32.totalorder %v556_v5, %v5175_v50 }
 0x23d   : > { %8872 = vst [vmem:[#allocation111_spill] sm:$0xff] %v5910_v9  ;;  %v1470_v0 = vadd.f32 %v1469_v1, %v1407_v46  ;;  %v1540_v4 = vmul.f32 %v1407_v46, %v1407_v46  ;;  %v1602_v37 = vadd.f32 %v1601_v54, %v1539_v56  ;;  %v1408_v61 = vmul.f32 %v5904_v55, %v5910_v9 }
 0x23e   : > { %v5929_v54 = vsel %vm618_vm1, 1.0, %v8811_v60  ;;  %v1542_v56 = vmul.f32 %v1409_v8, %v1409_v8  ;;  %v1543_v21 = vmul.f32 %v1410_v18, %v1410_v18 }
 0x23f   : > { %v1603_v58 = vadd.f32 %v1602_v37, %v1540_v4  ;;  %v1471_v49 = vadd.f32 %v1470_v0, %v1408_v61  ;;  %v1541_v40 = vmul.f32 %v1408_v61, %v1408_v61  ;;  %v4082_v45 = vpop.f32.mrb[60].mxu0  ;;  %8875 = vst [vmem:[#allocation114_spill] sm:$0xff] %v5929_v54 }
 0x240   : > { %v5926_v2 = vadd.f32 %v5858_v25, %v4082_v45  ;;  %v1336_v46 = vpop.f32.mrb[61].mxu0  ;;  %v5939_v45 = vsel %vm619_vm2, 1.0, %v8811_v60 }
 0x241   : > { %v1472_v1 = vadd.f32 %v1471_v49, %v1409_v8  ;;  %v1604_v37 = vadd.f32 %v1603_v58, %v1541_v40  ;;  %v5933_v0 = vadd.f32 %v5858_v25, %v1336_v46  ;;  %v4083_v4 = vpop.f32.mrb[62].mxu0  ;;  %8877 = vst [vmem:[#allocation116_spill] sm:$0xff] %v5939_v45  ;;  %v5949_v58 = vsel %vm621_vm3, 1.0, %v8811_v60 }
 0x242   : > { %8874 = vst [vmem:[#allocation113_spill] sm:$0xff] %v5926_v2  ;;  %v5936_v61 = vadd.f32 %v5858_v25, %v4083_v4  ;;  %v1339_v6 = vpop.f32.mrb[63].mxu0  ;;  %v1413_v5 = vmul.f32 %v5923_v19, %v5926_v2  ;;  %8879 = vst [vmem:[#allocation118_spill] sm:$0xff] %v5949_v58 }
 0x243   : > { %8876 = vst [vmem:[#allocation115_spill] sm:$0xff] %v5933_v0  ;;  %v1605_v41 = vadd.f32 %v1604_v37, %v1542_v56  ;;  %v1411_v55 = vmul.f32 %v5929_v54, %v5933_v0  ;;  %v1473_v50 = vadd.f32 %v1472_v1, %v1410_v18  ;;  %v5944_v8 = vadd.f32 %v5858_v25, %v1339_v6 }
 0x244   : > { %v1414_v37 = vmul.f32 %v5949_v58, %v5936_v61  ;;  %v1546_v25 = vmul.f32 %v1413_v5, %v1413_v5  ;;  %v8907_v58 = vld [vmem:[#allocation109_spill] sm:$0xff] }
 0x245   : > { %8878 = vst [vmem:[#allocation117_spill] sm:$0xff] %v5944_v8  ;;  %v1474_v49 = vadd.f32 %v1473_v50, %v1411_v55  ;;  %v1544_v40 = vmul.f32 %v1411_v55, %v1411_v55  ;;  %v1606_v46 = vadd.f32 %v1605_v41, %v1543_v21  ;;  %v1412_v4 = vmul.f32 %v5939_v45, %v5944_v8 }
 0x246   : > { %v1547_v0 = vmul.f32 %v1414_v37, %v1414_v37 }
 0x247   : > { %v1607_v56 = vadd.f32 %v1606_v46, %v1544_v40  ;;  %v1475_v18 = vadd.f32 %v1474_v49, %v1412_v4  ;;  %v1545_v1 = vmul.f32 %v1412_v4, %v1412_v4 }
 0x249   : > { %v1476_v6 = vadd.f32 %v1475_v18, %v1413_v5  ;;  %v1608_v54 = vadd.f32 %v1607_v56, %v1545_v1  ;;  %v8910_v47 = vld [vmem:[#allocation113_spill] sm:$0xff] }
 0x24b   : > { %v1477_v19 = vadd.f32 %v1476_v6, %v1414_v37  ;;  %v1609_v2 = vadd.f32 %v1608_v54, %v1546_v25  ;;  %v490_v54 = vld [vmem:[#allocation11 + $0x10] sm:$0xff] }
 0x24d   : > { %v1478_v23 = vrot.slane %v1477_v19, 4  ;;  %v1610_v20 = vadd.f32 %v1609_v2, %v1547_v0  ;;  %v491_v0 = vld [vmem:[#allocation11 + $0x18] sm:$0xff] }
 0x24f   : > { %v1479_v50 = vadd.f32 %v1478_v23, %v1477_v19  ;;  %v1611_v55 = vrot.slane %v1610_v20, 4  ;;  %v488_v23 = vld [vmem:[#allocation11] sm:$0xff]  ;;  %v489_v19 = vld [vmem:[#allocation11 + $0x8] sm:$0xff] }
 0x250   : > { %v5958_v2 = vpack.c.bf16 %v489_v19, %v488_v23  ;;  %v4485_v23 = vld [vmem:[%s5091_s15 + $0x20] sm:$0xff]   ;;  %v4486_v19 = vld [vmem:[%s5091_s15 + $0x28] sm:$0xff]  }
 0x251   : > { %v1480_v41 = vrot.slane %v1479_v50, 2  ;;  %v1612_v21 = vadd.f32 %v1611_v55, %v1610_v20  ;;  %v8881_v20 = vmov 0.0|0.0  }
 0x252   : > { %8880 = vst [vmem:[#allocation119_spill] sm:$0xff] %v5958_v2 }
 0x253   : > { %v1481_v9 = vadd.f32 %v1480_v41, %v1479_v50  ;;  %v1613_v45 = vrot.slane %v1612_v21, 2 }
 0x255   : > { %v1482_v40 = vrot.slane %v1481_v9, 1  ;;  %v1614_v46 = vadd.f32 %v1613_v45, %v1612_v21  ;;  %v5962_v45 = vpack.c.bf16 %v491_v0, %v490_v54  ;;  %v4442_v21 = vld [vmem:[%s5083_s28 + $0x100] sm:$0xff]   ;;  %v4487_v54 = vld [vmem:[%s5091_s15 + $0x30] sm:$0xff]   ;;  %v4488_v0 = vld [vmem:[%s5091_s15 + $0x38] sm:$0xff]  }
 0x257   : > { %v1615_v8 = vrot.slane %v1614_v46, 1  ;;  %v1483_v49 = vadd.f32 %v1482_v40, %v1481_v9  ;;  %8882 = vst [vmem:[#allocation120_spill] sm:$0xff] %v5962_v45  ;;  %v4481_v9 = vld [vmem:[%s5091_s15] sm:$0xff]  }
 0x259   : > { %v1616_v5 = vadd.f32 %v1615_v8, %v1614_v46  ;;  %v1689_v8 = vstv %s751_s24 }
 0x25a   : > { %4474 = vrcp.f32 %v1689_v8  ;;  %v4444_v8 = vld [vmem:[%s5083_s28 + $0x110] sm:$0xff]  }
 0x25b   : > { %v1618_v4 = vsel %vm1617_vm4, %v1483_v49, %v1616_v5  ;;  %v4482_v49 = vld [vmem:[%s5091_s15 + $0x8] sm:$0xff]   ;;  %v4483_v5 = vld [vmem:[%s5091_s15 + $0x10] sm:$0xff]  }
 0x25c   : > { %4117 = vmatmul.mubr.f32.vlgmr.msra.gmra.mrb[0].mxu1 %v1618_v4  ;;  %v4484_v4 = vld [vmem:[%s5091_s15 + $0x18] sm:$0xff]  }
 0x25d   : > { %4127 = vmatprep.mubr.msk.f32.mxu1 %vm4762_vm9, %v8811_v60  ;;  %4282 = vmatpush3.bf16.msra.mxu1 %v5958_v2  ;;  %v8905_v60 = vld [vmem:[#allocation111_spill] sm:$0xff] }
 0x25e   : > { %4283 = vmatprep.subr.bf16.mxu1 %v8881_v20  ;;  %v8906_v2 = vld [vmem:[#allocation107_spill] sm:$0xff] }
 0x261   : > { %4285 = vmatpush3.bf16.msra.mxu1 %v5962_v45 }
 0x262   : > { %4130 = vmatprep.subr.bf16.mxu1 %v4481_v9 }
 0x264   : > { %v5967_v56 = vpop.eup %4474 }
 0x265   : > { %8883 = vst [vmem:[#allocation121_spill] sm:$0xff] %v5967_v56 }
 0x32f   : > { %v1685_v37 = vpop.f32.mrb[0].mxu1 }
 0x330   : > { %v1691_v18 = vmul.f32 %v5967_v56, %v1685_v37  ;;  %v4118_v1 = vpop.f32.mrb[1].mxu1  ;;  %v4445_v37 = vld [vmem:[%s5083_s28 + $0x118] sm:$0xff]  }
 0x331   : > { %v4447_v1 = vld [vmem:[%s5083_s28 + $0x128] sm:$0xff]  }
 0x332   : > { %v1692_v25 = vmul.f32 %v1691_v18, %v1691_v18 }
 0x334   : > { %v1694_v6 = vrot.slane %v1692_v25, 7  ;;  %v4448_v25 = vld [vmem:[%s5083_s28 + $0x130] sm:$0xff]  }
 0x336   : > { %v1696_v50 = vsub.f32 %v1691_v18, %v1694_v6  ;;  %v4449_v6 = vld [vmem:[%s5083_s28 + $0x138] sm:$0xff]  }
 0x338   : > { %v1697_v55 = vmax.f32 %v1696_v50, 0.0  ;;  %v4450_v50 = vld [vmem:[%s5083_s28 + $0x140] sm:$0xff]  }
 0x33a   : > { %v1698_v41 = vadd.f32 1e-05, %v1697_v55  ;;  %v4451_v55 = vld [vmem:[%s5083_s28 + $0x148] sm:$0xff]  }
 0x33c   : > { %4476 = vrsqrt.f32 %v1698_v41  ;;  %v4452_v41 = vld [vmem:[%s5083_s28 + $0x150] sm:$0xff]  }
 0x346   : > { %v4477_v40 = vpop.eup %4476 }
 0x347   : > { %v1700_v46 = vsel %vm1617_vm4, %v1691_v18, %v4477_v40  ;;  %v4446_v18 = vld [vmem:[%s5083_s28 + $0x120] sm:$0xff]  }
 0x348   : > { %4128 = vmatmul.mubr.msk.f32.vlgmr.msra.gmra.mrb[2].mxu1 %vm1701_vm5, %v1700_v46  ;;  %v4454_v40 = vld [vmem:[%s5083_s28 + $0x160] sm:$0xff]   ;;  %v4455_v46 = vld [vmem:[%s5083_s28 + $0x168] sm:$0xff]  }
 0x349   : > { %4131 = vmatpush3.bf16.msra.mxu1 %v4481_v9  ;;  %4146 = vmatprep.mubr.bf16.mxu1 %v4442_v21  ;;  %v4443_v9 = vld [vmem:[%s5083_s28 + $0x108] sm:$0xff]   ;;  %v4453_v21 = vld [vmem:[%s5083_s28 + $0x158] sm:$0xff]  }
 0x34a   : > { %4132 = vmatprep.subr.bf16.mxu1 %v4482_v49 }
 0x34d   : > { %4133 = vmatpush3.bf16.msra.mxu1 %v4482_v49  ;;  %v4456_v49 = vld [vmem:[%s5083_s28 + $0x170] sm:$0xff]  }
 0x34e   : > { %4134 = vmatprep.subr.bf16.mxu1 %v4483_v5 }
 0x351   : > { %4135 = vmatpush3.bf16.msra.mxu1 %v4483_v5  ;;  %v4457_v5 = vld [vmem:[%s5083_s28 + $0x178] sm:$0xff]  }
 0x352   : > { %4136 = vmatprep.subr.bf16.mxu1 %v4484_v4 }
 0x355   : > { %4137 = vmatpush3.bf16.msra.mxu1 %v4484_v4  ;;  %v4458_v4 = vld [vmem:[%s5083_s28 + $0x180] sm:$0xff]  }
 0x356   : > { %4138 = vmatprep.subr.bf16.mxu1 %v4485_v23 }
 0x359   : > { %4139 = vmatpush3.bf16.msra.mxu1 %v4485_v23  ;;  %v4459_v23 = vld [vmem:[%s5083_s28 + $0x188] sm:$0xff]  }
 0x35a   : > { %4140 = vmatprep.subr.bf16.mxu1 %v4486_v19 }
 0x35d   : > { %4141 = vmatpush3.bf16.msra.mxu1 %v4486_v19  ;;  %v4460_v19 = vld [vmem:[%s5083_s28 + $0x190] sm:$0xff]  }
 0x35e   : > { %4142 = vmatprep.subr.bf16.mxu1 %v4487_v54 }
 0x361   : > { %4143 = vmatpush3.bf16.msra.mxu1 %v4487_v54  ;;  %v4461_v54 = vld [vmem:[%s5083_s28 + $0x198] sm:$0xff]  }
 0x362   : > { %4144 = vmatprep.subr.bf16.mxu1 %v4488_v0 }
 0x365   : > { %4145 = vmatpush3.bf16.msra.mxu1 %v4488_v0  ;;  %v4462_v0 = vld [vmem:[%s5083_s28 + $0x1a0] sm:$0xff]  }
 0x368   : > { %4147 = vmatmul.mubr.bf16.vlgmr.msra.gmra.mrb[4].mxu1 %v4443_v9  ;;  %v4463_v9 = vld [vmem:[%s5083_s28 + $0x1a8] sm:$0xff]  }
 0x369   : > { %4150 = vmatprep.mubr.bf16.mxu1 %v4444_v8  ;;  %v4464_v8 = vld [vmem:[%s5083_s28 + $0x1b0] sm:$0xff]  }
 0x370   : > { %4151 = vmatmul.mubr.bf16.gmra.mrb[8].mxu1 %v4445_v37  ;;  %v4465_v37 = vld [vmem:[%s5083_s28 + $0x1b8] sm:$0xff]  }
 0x371   : > { %4154 = vmatprep.mubr.bf16.mxu1 %v4446_v18  ;;  %v4466_v18 = vld [vmem:[%s5083_s28 + $0x1c0] sm:$0xff]  }
 0x378   : > { %4155 = vmatmul.mubr.bf16.gmra.mrb[12].mxu1 %v4447_v1  ;;  %v4467_v1 = vld [vmem:[%s5083_s28 + $0x1c8] sm:$0xff]  }
 0x379   : > { %4158 = vmatprep.mubr.bf16.mxu1 %v4448_v25  ;;  %v4468_v25 = vld [vmem:[%s5083_s28 + $0x1d0] sm:$0xff]  }
 0x380   : > { %4159 = vmatmul.mubr.bf16.gmra.mrb[16].mxu1 %v4449_v6  ;;  %v4469_v6 = vld [vmem:[%s5083_s28 + $0x1d8] sm:$0xff]  }
 0x381   : > { %4162 = vmatprep.mubr.bf16.mxu1 %v4450_v50  ;;  %v4470_v50 = vld [vmem:[%s5083_s28 + $0x1e0] sm:$0xff]  }
 0x388   : > { %4163 = vmatmul.mubr.bf16.gmra.mrb[20].mxu1 %v4451_v55  ;;  %v4471_v55 = vld [vmem:[%s5083_s28 + $0x1e8] sm:$0xff]  }
 0x389   : > { %4166 = vmatprep.mubr.bf16.mxu1 %v4452_v41  ;;  %v4472_v41 = vld [vmem:[%s5083_s28 + $0x1f0] sm:$0xff]  }
 0x390   : > { %4167 = vmatmul.mubr.bf16.gmra.mrb[24].mxu1 %v4453_v21  ;;  %v4473_v21 = vld [vmem:[%s5083_s28 + $0x1f8] sm:$0xff]   ;;  %s3601_s28 = sshll.u32 %s5079_s21, 10 }
 0x391   : > { %4170 = vmatprep.mubr.bf16.mxu1 %v4454_v40  ;;  %v8694_v40 = vsub.s32 0, %v5157_v44  ;;  %s6848_s15 = scalar_lea.vmem [#allocation13], %s3601_s28 }
 0x398   : > { %4171 = vmatmul.mubr.bf16.gmra.mrb[28].mxu1 %v4455_v46  ;;  %v8693_v46 = vsub.s32 1, %v5157_v44 }
 0x399   : > { %4174 = vmatprep.mubr.bf16.mxu1 %v4456_v49 }
 0x3a0   : > { %4175 = vmatmul.mubr.bf16.gmra.mrb[32].mxu1 %v4457_v5 }
 0x3a1   : > { %4178 = vmatprep.mubr.bf16.mxu1 %v4458_v4 }
 0x3a8   : > { %4179 = vmatmul.mubr.bf16.gmra.mrb[36].mxu1 %v4459_v23 }
 0x3a9   : > { %4182 = vmatprep.mubr.bf16.mxu1 %v4460_v19 }
 0x3b0   : > { %4183 = vmatmul.mubr.bf16.gmra.mrb[40].mxu1 %v4461_v54 }
 0x3b1   : > { %4186 = vmatprep.mubr.bf16.mxu1 %v4462_v0  ;;  %v8898_v0 = vld [vmem:[#allocation96_spill] sm:$0xff] }
 0x3b8   : > { %4187 = vmatmul.mubr.bf16.gmra.mrb[44].mxu1 %v4463_v9 }
 0x3b9   : > { %4190 = vmatprep.mubr.bf16.mxu1 %v4464_v8  ;;  %v8909_v8 = vld [vmem:[#allocation117_spill] sm:$0xff] }
 0x3c0   : > { %4191 = vmatmul.mubr.bf16.gmra.mrb[48].mxu1 %v4465_v37  ;;  %v8908_v37 = vld [vmem:[#allocation115_spill] sm:$0xff] }
 0x3c1   : > { %4194 = vmatprep.mubr.bf16.mxu1 %v4466_v18  ;;  %v8895_v18 = vld [vmem:[#allocation88_spill] sm:$0xff] }
 0x3c8   : > { %4195 = vmatmul.mubr.bf16.gmra.mrb[52].mxu1 %v4467_v1  ;;  %v8894_v1 = vld [vmem:[#allocation85_spill] sm:$0xff] }
 0x3c9   : > { %4198 = vmatprep.mubr.bf16.mxu1 %v4468_v25  ;;  %v8892_v25 = vld [vmem:[#allocation76_spill] sm:$0xff] }
 0x3d0   : > { %4199 = vmatmul.mubr.bf16.gmra.mrb[56].mxu1 %v4469_v6  ;;  %v8891_v6 = vld [vmem:[#allocation80_spill] sm:$0xff] }
 0x3d1   : > { %4202 = vmatprep.mubr.bf16.mxu1 %v4470_v50  ;;  %v8890_v50 = vld [vmem:[#allocation78_spill] sm:$0xff] }
 0x3d8   : > { %4203 = vmatmul.mubr.bf16.gmra.mrb[60].mxu1 %v4471_v55  ;;  %v8889_v55 = vld [vmem:[#allocation71_spill] sm:$0xff] }
 0x3d9   : > { %4206 = vmatprep.mubr.bf16.mxu1 %v4472_v41  ;;  %v8884_v41 = vld [vmem:[#allocation66_spill] sm:$0xff] }
 0x3e0   : > { %4207 = vmatmul.mubr.bf16.gmra.mrb[64].mxu1 %v4473_v21  ;;  %v8885_v21 = vld [vmem:[#allocation62_spill] sm:$0xff] }
 0x41b   : > { %v1771_v49 = vpop.f32.mrb[2].mxu1 }
 0x41c   : > { %v6015_v5 = vrot.slane %v1771_v49, %v8694_v40  ;;  %v4129_v4 = vpop.f32.mrb[3].mxu1  ;;  %v6019_v23 = vrot.slane %v1771_v49, %v8693_v46  ;;  %v8886_v49 = vld [vmem:[#allocation64_spill] sm:$0xff]  ;;  %v8888_v40 = vld [vmem:[#allocation69_spill] sm:$0xff] }
 0x41d   : > { %v8887_v46 = vld [vmem:[#allocation72_spill] sm:$0xff]  ;;  %v8893_v4 = vld [vmem:[#allocation79_spill] sm:$0xff] }
 0x41e   : > { %v8911_v54 = vsub.f32 %v5227_v7, %v6015_v5  ;;  %v8912_v44 = vsub.f32 %v5253_v16, %v6015_v5  ;;  %v8913_v45 = vsub.f32 %v5213_v3, %v6015_v5  ;;  %v8914_v20 = vsub.f32 %v5237_v10, %v6015_v5 }
 0x420   : > { %v6153_v19 = vmul.f32 %v6019_v23, %v8911_v54  ;;  %v6159_v56 = vmul.f32 %v6019_v23, %v8912_v44  ;;  %v6165_v9 = vmul.f32 %v6019_v23, %v8913_v45  ;;  %v6171_v7 = vmul.f32 %v6019_v23, %v8914_v20 }
 0x421   : > { %v8915_v54 = vsub.f32 %v5309_v43, %v6015_v5  ;;  %v8916_v44 = vsub.f32 %v5332_v59, %v6015_v5  ;;  %v8917_v45 = vsub.f32 %v5303_v38, %v6015_v5  ;;  %v8918_v20 = vsub.f32 %v5323_v52, %v6015_v5 }
 0x423   : > { %v6177_v16 = vmul.f32 %v6019_v23, %v8915_v54  ;;  %v6183_v3 = vmul.f32 %v6019_v23, %v8916_v44  ;;  %v6189_v10 = vmul.f32 %v6019_v23, %v8917_v45  ;;  %v6195_v43 = vmul.f32 %v6019_v23, %v8918_v20 }
 0x424   : > { %v8919_v54 = vsub.f32 %v5367_v32, %v6015_v5  ;;  %v8920_v44 = vsub.f32 %v5382_v42, %v6015_v5  ;;  %v8921_v45 = vsub.f32 %v5361_v22, %v6015_v5  ;;  %v8922_v20 = vsub.f32 %v5370_v35, %v6015_v5 }
 0x426   : > { %v6201_v59 = vmul.f32 %v6019_v23, %v8919_v54  ;;  %v6207_v38 = vmul.f32 %v6019_v23, %v8920_v44  ;;  %v6213_v52 = vmul.f32 %v6019_v23, %v8921_v45  ;;  %v6219_v32 = vmul.f32 %v6019_v23, %v8922_v20 }
 0x427   : > { %v8923_v54 = vsub.f32 %v5421_v26, %v6015_v5  ;;  %v8924_v44 = vsub.f32 %v5431_v36, %v6015_v5  ;;  %v8925_v45 = vsub.f32 %v5407_v12, %v6015_v5  ;;  %v8926_v20 = vsub.f32 %v5424_v31, %v6015_v5 }
 0x429   : > { %v6225_v42 = vmul.f32 %v6019_v23, %v8923_v54  ;;  %v6231_v22 = vmul.f32 %v6019_v23, %v8924_v44  ;;  %v6237_v35 = vmul.f32 %v6019_v23, %v8925_v45  ;;  %v6243_v26 = vmul.f32 %v6019_v23, %v8926_v20 }
 0x42a   : > { %v8927_v54 = vsub.f32 %v5465_v28, %v6015_v5  ;;  %v8928_v44 = vsub.f32 %v5475_v39, %v6015_v5  ;;  %v8929_v45 = vsub.f32 %v5459_v48, %v6015_v5  ;;  %v8930_v20 = vsub.f32 %v5468_v34, %v6015_v5 }
 0x42c   : > { %v6249_v36 = vmul.f32 %v6019_v23, %v8927_v54  ;;  %v6255_v12 = vmul.f32 %v6019_v23, %v8928_v44  ;;  %v6261_v31 = vmul.f32 %v6019_v23, %v8929_v45  ;;  %v6267_v28 = vmul.f32 %v6019_v23, %v8930_v20 }
 0x42d   : > { %v8931_v54 = vsub.f32 %v5510_v29, %v6015_v5  ;;  %v8932_v44 = vsub.f32 %v5522_v33, %v6015_v5  ;;  %v8933_v45 = vsub.f32 %v5504_v53, %v6015_v5  ;;  %v8934_v20 = vsub.f32 %v5513_v51, %v6015_v5 }
 0x42f   : > { %v6273_v39 = vmul.f32 %v6019_v23, %v8931_v54  ;;  %v6279_v48 = vmul.f32 %v6019_v23, %v8932_v44  ;;  %v6285_v34 = vmul.f32 %v6019_v23, %v8933_v45  ;;  %v6291_v29 = vmul.f32 %v6019_v23, %v8934_v20 }
 0x430   : > { %v8935_v54 = vsub.f32 %v5556_v27, %v6015_v5  ;;  %v8936_v44 = vsub.f32 %v5566_v17, %v6015_v5  ;;  %v8937_v45 = vsub.f32 %v5542_v11, %v6015_v5  ;;  %v8938_v20 = vsub.f32 %v5559_v57, %v6015_v5 }
 0x432   : > { %v6297_v33 = vmul.f32 %v6019_v23, %v8935_v54  ;;  %v6303_v53 = vmul.f32 %v6019_v23, %v8936_v44  ;;  %v6309_v51 = vmul.f32 %v6019_v23, %v8937_v45  ;;  %v6315_v27 = vmul.f32 %v6019_v23, %v8938_v20 }
 0x433   : > { %v8939_v54 = vsub.f32 %v5594_v30, %v6015_v5  ;;  %v8940_v44 = vsub.f32 %v5604_v63, %v6015_v5  ;;  %v8941_v45 = vsub.f32 %v5588_v62, %v6015_v5  ;;  %v8942_v20 = vsub.f32 %v5597_v15, %v6015_v5 }
 0x435   : > { %v6321_v17 = vmul.f32 %v6019_v23, %v8939_v54  ;;  %v6327_v11 = vmul.f32 %v6019_v23, %v8940_v44  ;;  %v6333_v57 = vmul.f32 %v6019_v23, %v8941_v45  ;;  %v6339_v30 = vmul.f32 %v6019_v23, %v8942_v20 }
 0x436   : > { %v8943_v54 = vsub.f32 %v5639_v14, %v6015_v5  ;;  %v8944_v44 = vsub.f32 %v8884_v41, %v6015_v5  ;;  %v8945_v45 = vsub.f32 %v8885_v21, %v6015_v5  ;;  %v8946_v20 = vsub.f32 %v8886_v49, %v6015_v5 }
 0x438   : > { %v6345_v63 = vmul.f32 %v6019_v23, %v8943_v54  ;;  %v6351_v62 = vmul.f32 %v6019_v23, %v8944_v44  ;;  %v6357_v15 = vmul.f32 %v6019_v23, %v8945_v45  ;;  %v6363_v14 = vmul.f32 %v6019_v23, %v8946_v20 }
 0x439   : > { %v8947_v54 = vsub.f32 %v5681_v13, %v6015_v5  ;;  %v8948_v44 = vsub.f32 %v8887_v46, %v6015_v5  ;;  %v8949_v45 = vsub.f32 %v8888_v40, %v6015_v5  ;;  %v8950_v20 = vsub.f32 %v8889_v55, %v6015_v5 }
 0x43b   : > { %v6369_v41 = vmul.f32 %v6019_v23, %v8947_v54  ;;  %v6375_v21 = vmul.f32 %v6019_v23, %v8948_v44  ;;  %v6381_v49 = vmul.f32 %v6019_v23, %v8949_v45  ;;  %v6387_v13 = vmul.f32 %v6019_v23, %v8950_v20 }
 0x43c   : > { %v8951_v54 = vsub.f32 %v8890_v50, %v6015_v5  ;;  %v8952_v44 = vsub.f32 %v8891_v6, %v6015_v5  ;;  %v8953_v45 = vsub.f32 %v8892_v25, %v6015_v5  ;;  %v8955_v20 = vsub.f32 %v8893_v4, %v6015_v5 }
 0x43e   : > { %v6393_v46 = vmul.f32 %v6019_v23, %v8951_v54  ;;  %v6399_v40 = vmul.f32 %v6019_v23, %v8952_v44  ;;  %v6405_v55 = vmul.f32 %v6019_v23, %v8953_v45  ;;  %v6411_v50 = vmul.f32 %v6019_v23, %v8955_v20  ;;  %v8961_v45 = vld [vmem:[#allocation84_spill] sm:$0xff]  ;;  %v8964_v20 = vld [vmem:[#allocation86_spill] sm:$0xff] }
 0x43f   : > { %v8957_v54 = vsub.f32 %v8894_v1, %v6015_v5  ;;  %v8959_v44 = vsub.f32 %v8895_v18, %v6015_v5 }
 0x440   : > { %8954 = vst [vmem:[#allocation66_spill] sm:$0xff] %v6405_v55  ;;  %8956 = vst [vmem:[#allocation62_spill] sm:$0xff] %v6411_v50  ;;  %v8962_v55 = vsub.f32 %v8961_v45, %v6015_v5  ;;  %v8965_v50 = vsub.f32 %v8964_v20, %v6015_v5 }
 0x441   : > { %v6417_v6 = vmul.f32 %v6019_v23, %v8957_v54  ;;  %v6423_v25 = vmul.f32 %v6019_v23, %v8959_v44  ;;  %v8967_v54 = vld [vmem:[#allocation94_spill] sm:$0xff]  ;;  %v8970_v44 = vsub.f32 %v8898_v0, %v6015_v5 }
 0x442   : > { %v6429_v4 = vmul.f32 %v6019_v23, %v8962_v55  ;;  %v6435_v1 = vmul.f32 %v6019_v23, %v8965_v50  ;;  %v8972_v55 = vld [vmem:[#allocation92_spill] sm:$0xff]  ;;  %v8975_v50 = vld [vmem:[#allocation95_spill] sm:$0xff] }
 0x443   : > { %8958 = vst [vmem:[#allocation64_spill] sm:$0xff] %v6417_v6  ;;  %8960 = vst [vmem:[#allocation72_spill] sm:$0xff] %v6423_v25  ;;  %v8968_v6 = vsub.f32 %v8967_v54, %v6015_v5  ;;  %v6447_v45 = vmul.f32 %v6019_v23, %v8970_v44 }
 0x444   : > { %8963 = vst [vmem:[#allocation69_spill] sm:$0xff] %v6429_v4  ;;  %8966 = vst [vmem:[#allocation71_spill] sm:$0xff] %v6435_v1  ;;  %v8973_v4 = vsub.f32 %v8972_v55, %v6015_v5  ;;  %v8976_v1 = vsub.f32 %v8975_v50, %v6015_v5 }
 0x445   : > { %v6441_v18 = vmul.f32 %v6019_v23, %v8968_v6  ;;  %8971 = vst [vmem:[#allocation80_spill] sm:$0xff] %v6447_v45  ;;  %v6463_v6 = vld [vmem:[%s388_s1] ss:$0 sm:$0xff]  ;;  %v8980_v45 = vld [vmem:[#allocation104_spill] sm:$0xff] }
 0x446   : > { %v6453_v20 = vmul.f32 %v6019_v23, %v8973_v4  ;;  %v6459_v54 = vmul.f32 %v6019_v23, %v8976_v1  ;;  %v8981_v55 = vsub.f32 %v8980_v45, %v6015_v5  ;;  %v8987_v45 = vsub.f32 %v5898_v24, %v6015_v5 }
 0x447   : > { %8969 = vst [vmem:[#allocation78_spill] sm:$0xff] %v6441_v18  ;;  %v8978_v18 = vld [vmem:[#allocation102_spill] sm:$0xff] }
 0x448   : > { %8974 = vst [vmem:[#allocation76_spill] sm:$0xff] %v6453_v20  ;;  %8977 = vst [vmem:[#allocation79_spill] sm:$0xff] %v6459_v54  ;;  %v8979_v0 = vsub.f32 %v8978_v18, %v6015_v5  ;;  %v6475_v4 = vmul.f32 %v6019_v23, %v8981_v55  ;;  %v8982_v20 = vld [vmem:[#allocation100_spill] sm:$0xff]  ;;  %v8984_v54 = vld [vmem:[#allocation103_spill] sm:$0xff]  ;;  %v6495_v55 = vmul.f32 %v6019_v23, %v8987_v45 }
 0x449   : > { %v8983_v50 = vsub.f32 %v8982_v20, %v6015_v5  ;;  %v8985_v25 = vsub.f32 %v8984_v54, %v6015_v5  ;;  %v8988_v20 = vsub.f32 %v8905_v60, %v6015_v5  ;;  %v8989_v54 = vsub.f32 %v8906_v2, %v6015_v5 }
 0x44a   : > { %v6469_v44 = vmul.f32 %v6019_v23, %v8979_v0  ;;  %v6489_v0 = vpop.f32.mrb[4].mxu1  ;;  %v8992_v60 = vsub.f32 %v8908_v37, %v6015_v5  ;;  %v8993_v2 = vsub.f32 %v8909_v8, %v6015_v5  ;;  %v6545_v8 = vmul.f32 %v6463_v6, %v6153_v19 }
 0x44b   : > { %v6481_v1 = vmul.f32 %v6019_v23, %v8983_v50  ;;  %v6487_v18 = vmul.f32 %v6019_v23, %v8985_v25  ;;  %8986 = vst [vmem:[#allocation85_spill] sm:$0xff] %v6489_v0  ;;  %v6501_v50 = vmul.f32 %v6019_v23, %v8988_v20  ;;  %v6507_v25 = vmul.f32 %v6019_v23, %v8989_v54  ;;  %v6515_v45 = vpop.f32.mrb[5].mxu1 }
 0x44c   : > { %v8990_v0 = vsub.f32 %v8907_v58, %v6015_v5  ;;  %8991 = vst [vmem:[#allocation88_spill] sm:$0xff] %v6515_v45  ;;  %v6521_v20 = vmul.f32 %v6019_v23, %v8992_v60  ;;  %v6527_v54 = vmul.f32 %v6019_v23, %v8993_v2  ;;  %v8994_v58 = vsub.f32 %v8910_v47, %v6015_v5  ;;  %v6541_v60 = vpop.f32.mrb[6].mxu1 }
 0x44d   : > { %v8995_v45 = vsub.f32 %v5936_v61, %v6015_v5  ;;  %8996 = vst [vmem:[#allocation96_spill] sm:$0xff] %v6541_v60  ;;  %v6549_v2 = vmul.f32 %v6463_v6, %v6159_v56  ;;  %v6553_v47 = vmul.f32 %v6463_v6, %v6165_v9  ;;  %v6557_v61 = vmul.f32 %v6463_v6, %v6171_v7  ;;  %v6559_v5 = vpop.f32.mrb[7].mxu1  ;;  %v9008_v60 = vld [vmem:[#allocation64_spill] sm:$0xff] }
 0x44e   : > { %v6513_v24 = vmul.f32 %v6019_v23, %v8990_v0  ;;  %v6533_v0 = vmul.f32 %v6019_v23, %v8994_v58  ;;  %8997 = vst [vmem:[#allocation111_spill] sm:$0xff] %v6559_v5  ;;  %v6567_v19 = vmul.f32 %v6463_v6, %v6183_v3  ;;  %v6571_v56 = vmul.f32 %v6463_v6, %v6189_v10  ;;  %v9010_v5 = vld [vmem:[#allocation72_spill] sm:$0xff] }
 0x44f   : > { %v6539_v37 = vmul.f32 %v6019_v23, %v8995_v45  ;;  %v6563_v23 = vmul.f32 %v6463_v6, %v6177_v16  ;;  %v6575_v9 = vmul.f32 %v6463_v6, %v6195_v43  ;;  %v6579_v7 = vmul.f32 %v6463_v6, %v6201_v59  ;;  %v6641_v45 = vpop.f32.mrb[8].mxu1 }
 0x450   : > { %v6583_v16 = vmul.f32 %v6463_v6, %v6207_v38  ;;  %v6587_v3 = vmul.f32 %v6463_v6, %v6213_v52  ;;  %v6591_v10 = vmul.f32 %v6463_v6, %v6219_v32  ;;  %v6595_v43 = vmul.f32 %v6463_v6, %v6225_v42  ;;  %8998 = vst [vmem:[#allocation107_spill] sm:$0xff] %v6641_v45 }
 0x451   : > { %v6599_v59 = vmul.f32 %v6463_v6, %v6231_v22  ;;  %v6603_v38 = vmul.f32 %v6463_v6, %v6237_v35  ;;  %v6607_v52 = vmul.f32 %v6463_v6, %v6243_v26  ;;  %v6611_v32 = vmul.f32 %v6463_v6, %v6249_v36 }
 0x452   : > { %v6615_v42 = vmul.f32 %v6463_v6, %v6255_v12  ;;  %v6619_v22 = vmul.f32 %v6463_v6, %v6261_v31  ;;  %v6623_v35 = vmul.f32 %v6463_v6, %v6267_v28  ;;  %v6627_v26 = vmul.f32 %v6463_v6, %v6273_v39 }
 0x453   : > { %v6631_v36 = vmul.f32 %v6463_v6, %v6279_v48  ;;  %v6635_v12 = vmul.f32 %v6463_v6, %v6285_v34  ;;  %v6639_v31 = vmul.f32 %v6463_v6, %v6291_v29  ;;  %v6645_v28 = vmul.f32 %v6463_v6, %v6297_v33  ;;  %v6659_v29 = vpop.f32.mrb[9].mxu1 }
 0x454   : > { %v6649_v39 = vmul.f32 %v6463_v6, %v6303_v53  ;;  %v6653_v48 = vmul.f32 %v6463_v6, %v6309_v51  ;;  %v6657_v34 = vmul.f32 %v6463_v6, %v6315_v27  ;;  %8999 = vst [vmem:[#allocation109_spill] sm:$0xff] %v6659_v29  ;;  %v6663_v58 = vmul.f32 %v6463_v6, %v6321_v17  ;;  %v6677_v27 = vpop.f32.mrb[10].mxu1  ;;  %v9006_v29 = vld [vmem:[#allocation62_spill] sm:$0xff] }
 0x455   : > { %v6667_v33 = vmul.f32 %v6463_v6, %v6327_v11  ;;  %v6671_v53 = vmul.f32 %v6463_v6, %v6333_v57  ;;  %v6675_v51 = vmul.f32 %v6463_v6, %v6339_v30  ;;  %9000 = vst [vmem:[#allocation115_spill] sm:$0xff] %v6677_v27  ;;  %v6681_v45 = vmul.f32 %v6463_v6, %v6345_v63  ;;  %v6695_v30 = vpop.f32.mrb[11].mxu1 }
 0x456   : > { %v6685_v17 = vmul.f32 %v6463_v6, %v6351_v62  ;;  %v6689_v11 = vmul.f32 %v6463_v6, %v6357_v15  ;;  %v6693_v57 = vmul.f32 %v6463_v6, %v6363_v14  ;;  %9001 = vst [vmem:[#allocation117_spill] sm:$0xff] %v6695_v30  ;;  %v6699_v27 = vmul.f32 %v6463_v6, %v6369_v41  ;;  %v9004_v30 = vld [vmem:[#allocation66_spill] sm:$0xff] }
 0x457   : > { %v6703_v63 = vmul.f32 %v6463_v6, %v6375_v21  ;;  %v6707_v62 = vmul.f32 %v6463_v6, %v6381_v49  ;;  %v6711_v15 = vmul.f32 %v6463_v6, %v6387_v13  ;;  %v6715_v14 = vmul.f32 %v6463_v6, %v6393_v46 }
 0x458   : > { %v6719_v41 = vmul.f32 %v6463_v6, %v6399_v40  ;;  %v6723_v21 = vmul.f32 %v6463_v6, %v9004_v30  ;;  %v6727_v49 = vmul.f32 %v6463_v6, %v9006_v29  ;;  %v6731_v13 = vmul.f32 %v6463_v6, %v9008_v60 }
 0x459   : > { %9002 = vst [vmem:[#allocation113_spill] sm:$0xff] %v6715_v14  ;;  %v6735_v46 = vmul.f32 %v6463_v6, %v9010_v5  ;;  %v9012_v14 = vld [vmem:[#allocation69_spill] sm:$0xff] }
 0x45a   : > { %9003 = vst [vmem:[#allocation84_spill] sm:$0xff] %v6719_v41  ;;  %9005 = vst [vmem:[#allocation86_spill] sm:$0xff] %v6723_v21  ;;  %v6739_v40 = vmul.f32 %v6463_v6, %v9012_v14  ;;  %v9013_v41 = vld [vmem:[#allocation71_spill] sm:$0xff]  ;;  %v9015_v21 = vld [vmem:[#allocation78_spill] sm:$0xff] }
 0x45b   : > { %9007 = vst [vmem:[#allocation94_spill] sm:$0xff] %v6727_v49  ;;  %9009 = vst [vmem:[#allocation92_spill] sm:$0xff] %v6731_v13  ;;  %v6743_v30 = vmul.f32 %v6463_v6, %v9013_v41  ;;  %v6748_v29 = vmul.f32 %v6463_v6, %v9015_v21  ;;  %v9016_v49 = vld [vmem:[#allocation80_spill] sm:$0xff]  ;;  %v6764_v41 = vld [vmem:[%s396_s8] ss:$0 sm:$0xff]  ;;  %v6772_v21 = vmul.f32 %v6463_v6, %v6475_v4 }
 0x45c   : > { %9011 = vst [vmem:[#allocation95_spill] sm:$0xff] %v6735_v46  ;;  %v6752_v60 = vmul.f32 %v6463_v6, %v9016_v49  ;;  %v9017_v13 = vld [vmem:[#allocation76_spill] sm:$0xff]  ;;  %v9018_v46 = vld [vmem:[#allocation79_spill] sm:$0xff]  ;;  %v6776_v49 = vmul.f32 %v6463_v6, %v6481_v1  ;;  %v6794_v4 = vmul.f32 %v6463_v6, %v6507_v25  ;;  %v6798_v1 = vmul.f32 %v6463_v6, %v6513_v24 }
 0x45d   : > { %9014 = vst [vmem:[#allocation102_spill] sm:$0xff] %v6743_v30  ;;  %v6756_v5 = vmul.f32 %v6463_v6, %v9017_v13  ;;  %v6760_v14 = vmul.f32 %v6463_v6, %v9018_v46  ;;  %v6768_v30 = vmul.f32 %v6463_v6, %v6469_v44  ;;  %v6780_v13 = vmul.f32 %v6463_v6, %v6487_v18  ;;  %v6782_v46 = vpop.f32.mrb[12].mxu1 }
 0x45e   : > { %9020 = vst [vmem:[#allocation100_spill] sm:$0xff] %v6782_v46  ;;  %v6790_v44 = vmul.f32 %v6463_v6, %v6501_v50  ;;  %v6800_v18 = vpop.f32.mrb[13].mxu1  ;;  %v6804_v46 = vmul.f32 %v6463_v6, %v6521_v20  ;;  %v6812_v50 = vmul.f32 %v6463_v6, %v6533_v0  ;;  %v6816_v25 = vmul.f32 %v6463_v6, %v6539_v37 }
 0x45f   : > { %9019 = vst [vmem:[#allocation104_spill] sm:$0xff] %v6760_v14  ;;  %v6786_v14 = vmul.f32 %v6463_v6, %v6495_v55  ;;  %9021 = vst [vmem:[#allocation103_spill] sm:$0xff] %v6800_v18  ;;  %v6808_v55 = vmul.f32 %v6463_v6, %v6527_v54  ;;  %v6818_v24 = vpop.f32.mrb[14].mxu1  ;;  %v1987_v18 = vadd.f32 %v6764_v41, %v6545_v8 }
 0x460   : > { %9022 = vst [vmem:[#allocation66_spill] sm:$0xff] %v6812_v50  ;;  %9023 = vst [vmem:[#allocation62_spill] sm:$0xff] %v6818_v24  ;;  %v1988_v20 = vadd.f32 %v6764_v41, %v6549_v2  ;;  %v1989_v54 = vadd.f32 %v6764_v41, %v6553_v47  ;;  %v1990_v0 = vadd.f32 %v6764_v41, %v6557_v61  ;;  %v6828_v50 = vpop.f32.mrb[15].mxu1 }
 0x461   : > { %v1991_v6 = vadd.f32 %v6764_v41, %v6563_v23  ;;  %v1992_v37 = vadd.f32 %v6764_v41, %v6567_v19  ;;  %v1993_v8 = vadd.f32 %v6764_v41, %v6571_v56  ;;  %v1994_v2 = vadd.f32 %v6764_v41, %v6575_v9  ;;  %2051 = vst [vmem:[%s6848_s15] sm:$0xff] %v1987_v18 }
 0x462   : > { %v1995_v47 = vadd.f32 %v6764_v41, %v6579_v7  ;;  %v1996_v61 = vadd.f32 %v6764_v41, %v6583_v16  ;;  %v1997_v24 = vadd.f32 %v6764_v41, %v6587_v3  ;;  %v1998_v23 = vadd.f32 %v6764_v41, %v6591_v10  ;;  %2052 = vst [vmem:[%s6848_s15 + $0x8] sm:$0xff] %v1988_v20  ;;  %v9025_v20 = vld [vmem:[#allocation84_spill] sm:$0xff] }
 0x463   : > { %2053 = vst [vmem:[%s6848_s15 + $0x10] sm:$0xff] %v1989_v54  ;;  %2054 = vst [vmem:[%s6848_s15 + $0x18] sm:$0xff] %v1990_v0  ;;  %v1999_v19 = vadd.f32 %v6764_v41, %v6595_v43  ;;  %v2000_v56 = vadd.f32 %v6764_v41, %v6599_v59  ;;  %v2001_v9 = vadd.f32 %v6764_v41, %v6603_v38  ;;  %v9026_v54 = vld [vmem:[#allocation86_spill] sm:$0xff] }
 0x464   : > { %v2002_v7 = vadd.f32 %v6764_v41, %v6607_v52  ;;  %2055 = vst [vmem:[%s6848_s15 + $0x20] sm:$0xff] %v1991_v6  ;;  %2056 = vst [vmem:[%s6848_s15 + $0x28] sm:$0xff] %v1992_v37  ;;  %v2003_v16 = vadd.f32 %v6764_v41, %v6611_v32  ;;  %v2004_v3 = vadd.f32 %v6764_v41, %v6615_v42  ;;  %v6890_v42 = vpop.f32.mrb[16].mxu1  ;;  %v9027_v0 = vld [vmem:[#allocation94_spill] sm:$0xff]  ;;  %v9028_v6 = vld [vmem:[#allocation92_spill] sm:$0xff] }
 0x465   : > { %2057 = vst [vmem:[%s6848_s15 + $0x30] sm:$0xff] %v1993_v8  ;;  %2058 = vst [vmem:[%s6848_s15 + $0x38] sm:$0xff] %v1994_v2  ;;  %v2005_v10 = vadd.f32 %v6764_v41, %v6619_v22  ;;  %v2006_v43 = vadd.f32 %v6764_v41, %v6623_v35  ;;  %v2007_v59 = vadd.f32 %v6764_v41, %v6627_v26  ;;  %v9029_v8 = vld [vmem:[#allocation95_spill] sm:$0xff] }
 0x466   : > { %2059 = vst [vmem:[%s6848_s15 + $0x40] sm:$0xff] %v1995_v47  ;;  %2060 = vst [vmem:[%s6848_s15 + $0x48] sm:$0xff] %v1996_v61  ;;  %v2008_v38 = vadd.f32 %v6764_v41, %v6631_v36  ;;  %v2009_v52 = vadd.f32 %v6764_v41, %v6635_v12  ;;  %v2010_v32 = vadd.f32 %v6764_v41, %v6639_v31  ;;  %v6904_v12 = vpop.f32.mrb[17].mxu1  ;;  %v9030_v61 = vld [vmem:[#allocation102_spill] sm:$0xff] }
 0x467   : > { %2061 = vst [vmem:[%s6848_s15 + $0x50] sm:$0xff] %v1997_v24  ;;  %2062 = vst [vmem:[%s6848_s15 + $0x58] sm:$0xff] %v1998_v23  ;;  %v2011_v22 = vadd.f32 %v6764_v41, %v6645_v28  ;;  %v2012_v35 = vadd.f32 %v6764_v41, %v6649_v39  ;;  %v2013_v26 = vadd.f32 %v6764_v41, %v6653_v48  ;;  %v9024_v24 = vld [vmem:[#allocation113_spill] sm:$0xff] }
 0x468   : > { %2063 = vst [vmem:[%s6848_s15 + $0x60] sm:$0xff] %v1999_v19  ;;  %2064 = vst [vmem:[%s6848_s15 + $0x68] sm:$0xff] %v2000_v56  ;;  %v2014_v36 = vadd.f32 %v6764_v41, %v6657_v34  ;;  %v2015_v31 = vadd.f32 %v6764_v41, %v6663_v58  ;;  %v2016_v28 = vadd.f32 %v6764_v41, %v6667_v33  ;;  %v6918_v34 = vpop.f32.mrb[18].mxu1 }
 0x469   : > { %2065 = vst [vmem:[%s6848_s15 + $0x70] sm:$0xff] %v2001_v9  ;;  %2066 = vst [vmem:[%s6848_s15 + $0x78] sm:$0xff] %v2002_v7  ;;  %v2017_v39 = vadd.f32 %v6764_v41, %v6671_v53  ;;  %v2018_v48 = vadd.f32 %v6764_v41, %v6675_v51  ;;  %v2019_v58 = vadd.f32 %v6764_v41, %v6681_v45  ;;  %v6932_v18 = vpop.f32.mrb[19].mxu1  ;;  %v9031_v9 = vld [vmem:[#allocation104_spill] sm:$0xff] }
 0x46a   : > { %2067 = vst [vmem:[%s6848_s15 + $0x80] sm:$0xff] %v2003_v16  ;;  %2068 = vst [vmem:[%s6848_s15 + $0x88] sm:$0xff] %v2004_v3  ;;  %v2020_v33 = vadd.f32 %v6764_v41, %v6685_v17  ;;  %v2021_v53 = vadd.f32 %v6764_v41, %v6689_v11  ;;  %v2022_v51 = vadd.f32 %v6764_v41, %v6693_v57  ;;  %v6994_v3 = vpop.f32.mrb[20].mxu1 }
 0x46b   : > { %2069 = vst [vmem:[%s6848_s15 + $0x90] sm:$0xff] %v2005_v10  ;;  %2070 = vst [vmem:[%s6848_s15 + $0x98] sm:$0xff] %v2006_v43  ;;  %v2023_v45 = vadd.f32 %v6764_v41, %v6699_v27  ;;  %v2024_v17 = vadd.f32 %v6764_v41, %v6703_v63  ;;  %v2025_v11 = vadd.f32 %v6764_v41, %v6707_v62  ;;  %v9032_v10 = vld [vmem:[#allocation66_spill] sm:$0xff] }
 0x46c   : > { %2071 = vst [vmem:[%s6848_s15 + $0xa0] sm:$0xff] %v2007_v59  ;;  %2072 = vst [vmem:[%s6848_s15 + $0xa8] sm:$0xff] %v2008_v38  ;;  %v2026_v57 = vadd.f32 %v6764_v41, %v6711_v15  ;;  %v2027_v27 = vadd.f32 %v6764_v41, %v9024_v24  ;;  %v2028_v63 = vadd.f32 %v6764_v41, %v9025_v20  ;;  %v9043_v20 = vld [vmem:[#allocation32_spill] sm:$0xff] }
 0x46d   : > { %2073 = vst [vmem:[%s6848_s15 + $0xb0] sm:$0xff] %v2009_v52  ;;  %2074 = vst [vmem:[%s6848_s15 + $0xb8] sm:$0xff] %v2010_v32  ;;  %v2029_v62 = vadd.f32 %v6764_v41, %v9026_v54  ;;  %v2030_v15 = vadd.f32 %v6764_v41, %v9027_v0  ;;  %v2031_v37 = vadd.f32 %v6764_v41, %v9028_v6  ;;  %v9035_v52 = vld [vmem:[#allocation111_spill] sm:$0xff] }
 0x46e   : > { %2075 = vst [vmem:[%s6848_s15 + $0xc0] sm:$0xff] %v2011_v22  ;;  %2076 = vst [vmem:[%s6848_s15 + $0xc8] sm:$0xff] %v2012_v35  ;;  %v2032_v2 = vadd.f32 %v6764_v41, %v9029_v8  ;;  %v2033_v47 = vadd.f32 %v6764_v41, %v6739_v40  ;;  %v2034_v23 = vadd.f32 %v6764_v41, %v9030_v61  ;;  %v9036_v35 = vld [vmem:[#allocation96_spill] sm:$0xff] }
 0x46f   : > { %2077 = vst [vmem:[%s6848_s15 + $0xd0] sm:$0xff] %v2013_v26  ;;  %2078 = vst [vmem:[%s6848_s15 + $0xd8] sm:$0xff] %v2014_v36  ;;  %v2035_v19 = vadd.f32 %v6764_v41, %v6748_v29  ;;  %v2036_v56 = vadd.f32 %v6764_v41, %v6752_v60  ;;  %v2037_v40 = vadd.f32 %v6764_v41, %v6756_v5  ;;  %v9037_v36 = vld [vmem:[#allocation109_spill] sm:$0xff] }
 0x470   : > { %2079 = vst [vmem:[%s6848_s15 + $0xe0] sm:$0xff] %v2015_v31  ;;  %2080 = vst [vmem:[%s6848_s15 + $0xe8] sm:$0xff] %v2016_v28  ;;  %v2038_v7 = vadd.f32 %v6764_v41, %v9031_v9  ;;  %v2039_v16 = vadd.f32 %v6764_v41, %v6768_v30  ;;  %v2040_v29 = vadd.f32 %v6764_v41, %v6772_v21  ;;  %v9038_v28 = vld [vmem:[#allocation28_spill] sm:$0xff] }
 0x471   : > { %2081 = vst [vmem:[%s6848_s15 + $0xf0] sm:$0xff] %v2017_v39  ;;  %2082 = vst [vmem:[%s6848_s15 + $0xf8] sm:$0xff] %v2018_v48  ;;  %v2041_v60 = vadd.f32 %v6764_v41, %v6776_v49  ;;  %v2042_v5 = vadd.f32 %v6764_v41, %v6780_v13  ;;  %v2043_v30 = vadd.f32 %v6764_v41, %v6786_v14  ;;  %v7008_v14 = vpop.f32.mrb[21].mxu1  ;;  %v9039_v48 = vld [vmem:[#allocation30_spill] sm:$0xff] }
 0x472   : > { %2083 = vst [vmem:[%s6848_s15 + $0x100] sm:$0xff] %v2019_v58  ;;  %2084 = vst [vmem:[%s6848_s15 + $0x108] sm:$0xff] %v2020_v33  ;;  %v2044_v21 = vadd.f32 %v6764_v41, %v6790_v44  ;;  %v2045_v49 = vadd.f32 %v6764_v41, %v6794_v4  ;;  %v2046_v13 = vadd.f32 %v6764_v41, %v6798_v1  ;;  %v7022_v59 = vpop.f32.mrb[22].mxu1  ;;  %v9040_v33 = vld [vmem:[#allocation27_spill] sm:$0xff] }
 0x473   : > { %2085 = vst [vmem:[%s6848_s15 + $0x110] sm:$0xff] %v2021_v53  ;;  %2086 = vst [vmem:[%s6848_s15 + $0x118] sm:$0xff] %v2022_v51  ;;  %v2047_v44 = vadd.f32 %v6764_v41, %v6804_v46  ;;  %v2048_v4 = vadd.f32 %v6764_v41, %v6808_v55  ;;  %v2049_v43 = vadd.f32 %v6764_v41, %v9032_v10  ;;  %v7029_v46 = vld [vmem:[%s5098_s14] ss:$0 sm:$0xff]  ;;  %v7043_v22 = vpop.f32.mrb[23].mxu1  ;;  %s3879_s14 = sshll.u32 %s4927_s20, 14 }
 0x474   : > { %2087 = vst [vmem:[%s6848_s15 + $0x120] sm:$0xff] %v2023_v45  ;;  %2088 = vst [vmem:[%s6848_s15 + $0x128] sm:$0xff] %v2024_v17  ;;  %v2050_v1 = vadd.f32 %v6764_v41, %v6816_v25  ;;  %v9033_v55 = vld [vmem:[#allocation85_spill] sm:$0xff]  ;;  %v9034_v41 = vld [vmem:[#allocation88_spill] sm:$0xff]  ;;  %v7041_v32 = vadd.f32 %v7029_v46, %v9035_v52  ;;  %v7051_v26 = vadd.f32 %v7029_v46, %v9036_v35  ;;  %v7071_v54 = vpop.f32.mrb[24].mxu1  ;;  %s8479_s17 = scalar_lea.hbm %s8551_s7, %s3879_s14 }
 0x475   : > { %2089 = vst [vmem:[%s6848_s15 + $0x130] sm:$0xff] %v2025_v11  ;;  %2090 = vst [vmem:[%s6848_s15 + $0x138] sm:$0xff] %v2026_v57  ;;  %v7033_v38 = vadd.f32 %v7029_v46, %v9033_v55  ;;  %v7037_v25 = vadd.f32 %v7029_v46, %v9034_v41  ;;  %v7055_v31 = vadd.f32 %v7029_v46, %v9037_v36  ;;  %v9041_v51 = vld [vmem:[#allocation117_spill] sm:$0xff]  ;;  %v7073_v0 = vpop.f32.mrb[25].mxu1  ;;  %v9050_v55 = vld [vmem:[#allocation36_spill] sm:$0xff] }
 0x476   : > { %2091 = vst [vmem:[%s6848_s15 + $0x140] sm:$0xff] %v2027_v27  ;;  %2092 = vst [vmem:[%s6848_s15 + $0x148] sm:$0xff] %v2028_v63  ;;  %v2662_v58 = vmul.f32 %v9039_v48, %v7041_v32  ;;  %v7065_v45 = vadd.f32 %v7029_v46, %v9041_v51  ;;  %v9042_v57 = vld [vmem:[#allocation29_spill] sm:$0xff]  ;;  %v7081_v61 = vpop.f32.mrb[26].mxu1  ;;  %v9051_v48 = vld [vmem:[#allocation100_spill] sm:$0xff] }
 0x477   : > { %2093 = vst [vmem:[%s6848_s15 + $0x150] sm:$0xff] %v2029_v62  ;;  %2094 = vst [vmem:[%s6848_s15 + $0x158] sm:$0xff] %v2030_v15  ;;  %v2661_v39 = vmul.f32 %v9038_v28, %v7037_v25  ;;  %v2663_v53 = vmul.f32 %v9040_v33, %v7033_v38  ;;  %v2664_v24 = vmul.f32 %v9042_v57, %v7051_v26 }
 0x478   : > { %2095 = vst [vmem:[%s6848_s15 + $0x160] sm:$0xff] %v2031_v37  ;;  %2096 = vst [vmem:[%s6848_s15 + $0x168] sm:$0xff] %v2032_v2  ;;  %v2795_v27 = vmul.f32 %v2662_v58, %v2662_v58  ;;  %v2665_v63 = vmul.f32 %v9043_v20, %v7055_v31  ;;  %v9044_v37 = vld [vmem:[#allocation107_spill] sm:$0xff]  ;;  %v9045_v2 = vld [vmem:[#allocation34_spill] sm:$0xff] }
 0x479   : > { %2097 = vst [vmem:[%s6848_s15 + $0x170] sm:$0xff] %v2033_v47  ;;  %2098 = vst [vmem:[%s6848_s15 + $0x178] sm:$0xff] %v2034_v23  ;;  %v2725_v17 = vadd.f32 %v2662_v58, %v2661_v39  ;;  %v2794_v11 = vmul.f32 %v2661_v39, %v2661_v39  ;;  %v2796_v15 = vmul.f32 %v2663_v53, %v2663_v53 }
 0x47a   : > { %2099 = vst [vmem:[%s6848_s15 + $0x180] sm:$0xff] %v2035_v19  ;;  %2100 = vst [vmem:[%s6848_s15 + $0x188] sm:$0xff] %v2036_v56  ;;  %v7077_v8 = vadd.f32 %v7029_v46, %v9044_v37  ;;  %v2666_v47 = vmul.f32 %v9045_v2, %v7065_v45  ;;  %v9046_v19 = vld [vmem:[#allocation115_spill] sm:$0xff]  ;;  %v2797_v9 = vmul.f32 %v2664_v24, %v2664_v24 }
 0x47b   : > { %2101 = vst [vmem:[%s6848_s15 + $0x190] sm:$0xff] %v2037_v40  ;;  %2102 = vst [vmem:[%s6848_s15 + $0x198] sm:$0xff] %v2038_v7  ;;  %v2726_v62 = vadd.f32 %v2725_v17, %v2663_v53  ;;  %v2858_v6 = vadd.f32 %v2795_v27, %v2794_v11  ;;  %v7085_v56 = vadd.f32 %v7029_v46, %v9046_v19  ;;  %v7087_v40 = vpop.f32.mrb[27].mxu1  ;;  %v9053_v17 = vld [vmem:[#allocation62_spill] sm:$0xff] }
 0x47c   : > { %2103 = vst [vmem:[%s6848_s15 + $0x1a0] sm:$0xff] %v2039_v16  ;;  %2104 = vst [vmem:[%s6848_s15 + $0x1a8] sm:$0xff] %v2040_v29  ;;  %v2798_v16 = vmul.f32 %v2665_v63, %v2665_v63  ;;  %v9047_v29 = vld [vmem:[#allocation103_spill] sm:$0xff]  ;;  %v7103_v52 = vpop.f32.mrb[28].mxu1  ;;  %v7109_v58 = vadd.f32 %v7029_v46, %v9051_v48  ;;  %v7117_v11 = vadd.f32 %v7029_v46, %v9053_v17 }
 0x47d   : > { %2105 = vst [vmem:[%s6848_s15 + $0x1b0] sm:$0xff] %v2041_v60  ;;  %2106 = vst [vmem:[%s6848_s15 + $0x1b8] sm:$0xff] %v2042_v5  ;;  %v2727_v23 = vadd.f32 %v2726_v62, %v2664_v24  ;;  %v2859_v7 = vadd.f32 %v2858_v6, %v2796_v15  ;;  %v7091_v60 = vadd.f32 %v7029_v46, %v9047_v29  ;;  %v7105_v36 = vpop.f32.mrb[29].mxu1  ;;  %v9054_v15 = vld [vmem:[#allocation35_spill] sm:$0xff] }
 0x47e   : > { %2107 = vst [vmem:[%s6848_s15 + $0x1c0] sm:$0xff] %v2043_v30  ;;  %2108 = vst [vmem:[%s6848_s15 + $0x1c8] sm:$0xff] %v2044_v21  ;;  %v9048_v30 = vld [vmem:[#allocation31_spill] sm:$0xff]  ;;  %v7113_v53 = vpop.f32.mrb[30].mxu1  ;;  %v2671_v6 = vmul.f32 %v9054_v15, %v7109_v58  ;;  %v7161_v17 = vadd.f32 %v7029_v46, %v7043_v22  ;;  %v9061_v22 = vld [vmem:[#allocation46_spill] sm:$0xff] }
 0x47f   : > { %2109 = vst [vmem:[%s6848_s15 + $0x1d0] sm:$0xff] %v2045_v49  ;;  %2110 = vst [vmem:[%s6848_s15 + $0x1d8] sm:$0xff] %v2046_v13  ;;  %v2728_v5 = vadd.f32 %v2727_v23, %v2665_v63  ;;  %v2667_v21 = vmul.f32 %v9048_v30, %v7077_v8  ;;  %v2860_v49 = vadd.f32 %v2859_v7, %v2797_v9  ;;  %v7119_v57 = vpop.f32.mrb[31].mxu1  ;;  %v9055_v23 = vld [vmem:[#allocation37_spill] sm:$0xff]  ;;  %v9058_v48 = vld [vmem:[#allocation39_spill] sm:$0xff] }
 0x480   : > { %2111 = vst [vmem:[%s6848_s15 + $0x1e0] sm:$0xff] %v2047_v44  ;;  %2112 = vst [vmem:[%s6848_s15 + $0x1e8] sm:$0xff] %v2048_v4  ;;  %v2799_v13 = vmul.f32 %v2666_v47, %v2666_v47  ;;  %v7097_v44 = vadd.f32 %v7029_v46, %v6828_v50  ;;  %v2669_v41 = vmul.f32 %v9050_v55, %v7091_v60  ;;  %v9052_v50 = vld [vmem:[#allocation38_spill] sm:$0xff] }
 0x481   : > { %2113 = vst [vmem:[%s6848_s15 + $0x1f0] sm:$0xff] %v2049_v43  ;;  %2114 = vst [vmem:[%s6848_s15 + $0x1f8] sm:$0xff] %v2050_v1  ;;  %v2729_v4 = vadd.f32 %v2728_v5, %v2666_v47  ;;  %v2861_v10 = vadd.f32 %v2860_v49, %v2798_v16  ;;  %v9049_v43 = vld [vmem:[#allocation33_spill] sm:$0xff]  ;;  %v2800_v28 = vmul.f32 %v2667_v21, %v2667_v21  ;;  %v9056_v16 = vld [vmem:[#allocation40_spill] sm:$0xff] }
 0x482   : > { %v2668_v1 = vmul.f32 %v9049_v43, %v7085_v56  ;;  %v2670_v33 = vmul.f32 %v9052_v50, %v7097_v44  ;;  %v2802_v20 = vmul.f32 %v2669_v41, %v2669_v41  ;;  %v7123_v63 = vadd.f32 %v7029_v46, %v6904_v12  ;;  %v7135_v12 = vpop.f32.mrb[32].mxu1 }
 0x483   : > { %v2730_v35 = vadd.f32 %v2729_v4, %v2667_v21  ;;  %v2862_v39 = vadd.f32 %v2861_v10, %v2799_v13  ;;  %v7129_v47 = vadd.f32 %v7029_v46, %v6932_v18  ;;  %v2672_v19 = vmul.f32 %v9055_v23, %v7117_v11  ;;  %v7137_v30 = vpop.f32.mrb[33].mxu1  ;;  %v9057_v18 = vld [vmem:[#allocation42_spill] sm:$0xff] }
 0x484   : > { %v2801_v24 = vmul.f32 %v2668_v1, %v2668_v1  ;;  %v2803_v2 = vmul.f32 %v2670_v33, %v2670_v33  ;;  %v2673_v29 = vmul.f32 %v9056_v16, %v7123_v63  ;;  %v2804_v21 = vmul.f32 %v2671_v6, %v2671_v6  ;;  %v7145_v10 = vpop.f32.mrb[34].mxu1 }
 0x485   : > { %v2731_v51 = vadd.f32 %v2730_v35, %v2668_v1  ;;  %v2863_v27 = vadd.f32 %v2862_v39, %v2800_v28  ;;  %v7141_v13 = vadd.f32 %v7029_v46, %v6890_v42  ;;  %v2674_v4 = vmul.f32 %v9057_v18, %v7129_v47  ;;  %v7147_v55 = vpop.f32.mrb[35].mxu1 }
 0x486   : > { %v2805_v43 = vmul.f32 %v2672_v19, %v2672_v19  ;;  %v2806_v35 = vmul.f32 %v2673_v29, %v2673_v29  ;;  %v7151_v28 = vadd.f32 %v7029_v46, %v6918_v34  ;;  %v7155_v39 = vadd.f32 %v7029_v46, %v7008_v14  ;;  %v7167_v14 = vpop.f32.mrb[36].mxu1 }
 0x487   : > { %v2732_v62 = vadd.f32 %v2731_v51, %v2669_v41  ;;  %v2864_v37 = vadd.f32 %v2863_v27, %v2801_v24  ;;  %v2675_v50 = vmul.f32 %v9058_v48, %v7141_v13  ;;  %v2807_v51 = vmul.f32 %v2674_v4, %v2674_v4 }
 0x489   : > { %v2733_v9 = vadd.f32 %v2732_v62, %v2670_v33  ;;  %v2865_v7 = vadd.f32 %v2864_v37, %v2802_v20  ;;  %v9059_v20 = vld [vmem:[#allocation41_spill] sm:$0xff]  ;;  %v9060_v62 = vld [vmem:[#allocation44_spill] sm:$0xff]  ;;  %v7169_v37 = vpop.f32.mrb[37].mxu1 }
 0x48a   : > { %v2676_v34 = vmul.f32 %v9059_v20, %v7151_v28  ;;  %v2677_v15 = vmul.f32 %v9060_v62, %v7155_v39 }
 0x48b   : > { %v2734_v5 = vadd.f32 %v2733_v9, %v2671_v6  ;;  %v2866_v49 = vadd.f32 %v2865_v7, %v2803_v2  ;;  %v2808_v2 = vmul.f32 %v2675_v50, %v2675_v50  ;;  %v2678_v9 = vmul.f32 %v9061_v22, %v7161_v17  ;;  %v7177_v7 = vpop.f32.mrb[38].mxu1 }
 0x48c   : > { %v2810_v18 = vmul.f32 %v2677_v15, %v2677_v15  ;;  %v7213_v22 = vadd.f32 %v7029_v46, %v7081_v61  ;;  %v9069_v61 = vld [vmem:[#allocation49_spill] sm:$0xff] }
 0x48d   : > { %v2735_v1 = vadd.f32 %v2734_v5, %v2672_v19  ;;  %v2867_v41 = vadd.f32 %v2866_v49, %v2804_v21  ;;  %v7173_v19 = vadd.f32 %v7029_v46, %v6994_v3  ;;  %v7183_v5 = vpop.f32.mrb[39].mxu1  ;;  %v2809_v21 = vmul.f32 %v2676_v34, %v2676_v34 }
 0x48f   : > { %v2736_v42 = vadd.f32 %v2735_v1, %v2673_v29  ;;  %v2868_v33 = vadd.f32 %v2867_v41, %v2805_v43  ;;  %v7181_v29 = vadd.f32 %v7029_v46, %v7022_v59  ;;  %v9062_v43 = vld [vmem:[#allocation43_spill] sm:$0xff] }
 0x490   : > { %v2679_v1 = vmul.f32 %v9062_v43, %v7173_v19 }
 0x491   : > { %v2737_v24 = vadd.f32 %v2736_v42, %v2674_v4  ;;  %v2869_v27 = vadd.f32 %v2868_v33, %v2806_v35  ;;  %v7187_v4 = vadd.f32 %v7029_v46, %v7073_v0  ;;  %v2811_v35 = vmul.f32 %v2678_v9, %v2678_v9  ;;  %v7199_v0 = vpop.f32.mrb[40].mxu1 }
 0x492   : > { %v7193_v42 = vadd.f32 %v7029_v46, %v7087_v40  ;;  %v7201_v20 = vpop.f32.mrb[41].mxu1  ;;  %v9065_v40 = vld [vmem:[#allocation50_spill] sm:$0xff] }
 0x493   : > { %v2738_v6 = vadd.f32 %v2737_v24, %v2675_v50  ;;  %v2870_v23 = vadd.f32 %v2869_v27, %v2807_v51  ;;  %v9063_v50 = vld [vmem:[#allocation45_spill] sm:$0xff]  ;;  %v9064_v51 = vld [vmem:[#allocation48_spill] sm:$0xff] }
 0x494   : > { %v2680_v33 = vmul.f32 %v9063_v50, %v7181_v29  ;;  %v2681_v24 = vmul.f32 %v9064_v51, %v7187_v4 }
 0x495   : > { %v2739_v16 = vadd.f32 %v2738_v6, %v2676_v34  ;;  %v2871_v49 = vadd.f32 %v2870_v23, %v2808_v2  ;;  %v2812_v34 = vmul.f32 %v2679_v1, %v2679_v1  ;;  %v2682_v6 = vmul.f32 %v9065_v40, %v7193_v42  ;;  %v7209_v2 = vpop.f32.mrb[42].mxu1 }
 0x496   : > { %v7237_v40 = vadd.f32 %v7029_v46, %v7103_v52 }
 0x497   : > { %v2740_v3 = vadd.f32 %v2739_v16, %v2677_v15  ;;  %v2872_v41 = vadd.f32 %v2871_v49, %v2809_v21  ;;  %v7205_v15 = vadd.f32 %v7029_v46, %v7071_v54  ;;  %v2813_v16 = vmul.f32 %v2680_v33, %v2680_v33 }
 0x498   : > { %v2814_v49 = vmul.f32 %v2681_v24, %v2681_v24  ;;  %9071 = vst [vmem:[#allocation69_spill] sm:$0xff] %v7237_v40 }
 0x499   : > { %v2741_v59 = vadd.f32 %v2740_v3, %v2678_v9  ;;  %v2873_v48 = vadd.f32 %v2872_v41, %v2810_v18  ;;  %v7215_v9 = vpop.f32.mrb[43].mxu1  ;;  %v7219_v18 = vadd.f32 %v7029_v46, %v7105_v36  ;;  %v9067_v3 = vld [vmem:[#allocation47_spill] sm:$0xff]  ;;  %v2815_v41 = vmul.f32 %v2682_v6, %v2682_v6 }
 0x49a   : > { %v2683_v43 = vmul.f32 %v9067_v3, %v7205_v15  ;;  %v7231_v36 = vpop.f32.mrb[44].mxu1 }
 0x49b   : > { %v2742_v27 = vadd.f32 %v2741_v59, %v2679_v1  ;;  %v2874_v62 = vadd.f32 %v2873_v48, %v2811_v35  ;;  %9066 = vst [vmem:[#allocation64_spill] sm:$0xff] %v7219_v18  ;;  %v7225_v35 = vadd.f32 %v7029_v46, %v7119_v57  ;;  %v2684_v59 = vmul.f32 %v9069_v61, %v7213_v22  ;;  %v9072_v57 = vld [vmem:[#allocation54_spill] sm:$0xff] }
 0x49d   : > { %v2743_v23 = vadd.f32 %v2742_v27, %v2680_v33  ;;  %v2875_v21 = vadd.f32 %v2874_v62, %v2812_v34  ;;  %9068 = vst [vmem:[#allocation72_spill] sm:$0xff] %v7225_v35  ;;  %v9070_v33 = vld [vmem:[#allocation52_spill] sm:$0xff]  ;;  %v7233_v27 = vpop.f32.mrb[45].mxu1  ;;  %v2816_v34 = vmul.f32 %v2683_v43, %v2683_v43 }
 0x49e   : > { %v2685_v51 = vmul.f32 %v9070_v33, %v7219_v18 }
 0x49f   : > { %v2744_v54 = vadd.f32 %v2743_v23, %v2681_v24  ;;  %v2876_v1 = vadd.f32 %v2875_v21, %v2813_v16  ;;  %v2686_v23 = vmul.f32 %v9072_v57, %v7225_v35  ;;  %v7241_v16 = vpop.f32.mrb[46].mxu1 }
 0x4a0   : > { %v2818_v3 = vmul.f32 %v2685_v51, %v2685_v51 }
 0x4a1   : > { %v2745_v48 = vadd.f32 %v2744_v54, %v2682_v6  ;;  %v2877_v50 = vadd.f32 %v2876_v1, %v2814_v49  ;;  %v2817_v6 = vmul.f32 %v2684_v59, %v2684_v59  ;;  %v7243_v49 = vpop.f32.mrb[47].mxu1  ;;  %v7247_v1 = vadd.f32 %v7029_v46, %v7113_v53 }
 0x4a3   : > { %v2746_v24 = vadd.f32 %v2745_v48, %v2683_v43  ;;  %v2878_v62 = vadd.f32 %v2877_v50, %v2815_v41  ;;  %9073 = vst [vmem:[#allocation71_spill] sm:$0xff] %v7247_v1  ;;  %v7251_v43 = vadd.f32 %v7029_v46, %v7137_v30  ;;  %v9075_v41 = vld [vmem:[#allocation51_spill] sm:$0xff]  ;;  %v2819_v50 = vmul.f32 %v2686_v23, %v2686_v23  ;;  %v7263_v30 = vpop.f32.mrb[48].mxu1 }
 0x4a4   : > { %v2687_v61 = vmul.f32 %v9075_v41, %v7237_v40 }
 0x4a5   : > { %v2747_v21 = vadd.f32 %v2746_v24, %v2684_v59  ;;  %v2879_v54 = vadd.f32 %v2878_v62, %v2816_v34  ;;  %9074 = vst [vmem:[#allocation78_spill] sm:$0xff] %v7251_v43  ;;  %v7257_v59 = vadd.f32 %v7029_v46, %v7147_v55  ;;  %v9077_v34 = vld [vmem:[#allocation53_spill] sm:$0xff]  ;;  %v9078_v62 = vld [vmem:[#allocation56_spill] sm:$0xff]  ;;  %v9080_v55 = vld [vmem:[#allocation58_spill] sm:$0xff] }
 0x4a6   : > { %v2688_v53 = vmul.f32 %v9077_v34, %v7247_v1  ;;  %v2689_v57 = vmul.f32 %v9078_v62, %v7251_v43  ;;  %v2820_v41 = vmul.f32 %v2687_v61, %v2687_v61 }
 0x4a7   : > { %v2748_v52 = vadd.f32 %v2747_v21, %v2685_v51  ;;  %v2880_v48 = vadd.f32 %v2879_v54, %v2817_v6  ;;  %9076 = vst [vmem:[#allocation80_spill] sm:$0xff] %v7257_v59  ;;  %v7265_v21 = vpop.f32.mrb[49].mxu1  ;;  %v7269_v54 = vadd.f32 %v7029_v46, %v7135_v12 }
 0x4a9   : > { %v2749_v33 = vadd.f32 %v2748_v52, %v2686_v23  ;;  %v2881_v24 = vadd.f32 %v2880_v48, %v2818_v3  ;;  %9079 = vst [vmem:[#allocation76_spill] sm:$0xff] %v7269_v54  ;;  %v2690_v23 = vmul.f32 %v9080_v55, %v7257_v59  ;;  %v7273_v3 = vpop.f32.mrb[50].mxu1  ;;  %v7277_v48 = vadd.f32 %v7029_v46, %v7145_v10  ;;  %v9085_v10 = vld [vmem:[#allocation57_spill] sm:$0xff] }
 0x4aa   : > { %v7279_v34 = vpop.f32.mrb[51].mxu1 }
 0x4ab   : > { %v2750_v51 = vadd.f32 %v2749_v33, %v2687_v61  ;;  %v2882_v6 = vadd.f32 %v2881_v24, %v2819_v50  ;;  %9081 = vst [vmem:[#allocation79_spill] sm:$0xff] %v7277_v48  ;;  %v2821_v33 = vmul.f32 %v2688_v53, %v2688_v53  ;;  %v2822_v61 = vmul.f32 %v2689_v57, %v2689_v57  ;;  %v9083_v24 = vld [vmem:[#allocation55_spill] sm:$0xff] }
 0x4ac   : > { %v7283_v50 = vadd.f32 %v7029_v46, %v7169_v37  ;;  %v2691_v55 = vmul.f32 %v9083_v24, %v7269_v54  ;;  %v2823_v43 = vmul.f32 %v2690_v23, %v2690_v23  ;;  %v2692_v1 = vmul.f32 %v9085_v10, %v7277_v48  ;;  %v7295_v37 = vpop.f32.mrb[52].mxu1 }
 0x4ad   : > { %v2751_v52 = vadd.f32 %v2750_v51, %v2688_v53  ;;  %v2883_v62 = vadd.f32 %v2882_v6, %v2820_v41  ;;  %v7289_v51 = vadd.f32 %v7029_v46, %v7183_v5  ;;  %v9086_v6 = vld [vmem:[#allocation60_spill] sm:$0xff]  ;;  %v9088_v5 = vld [vmem:[#allocation63_spill] sm:$0xff] }
 0x4ae   : > { %9082 = vst [vmem:[#allocation113_spill] sm:$0xff] %v7283_v50  ;;  %v2693_v40 = vmul.f32 %v9086_v6, %v7283_v50  ;;  %v2824_v24 = vmul.f32 %v2691_v55, %v2691_v55  ;;  %v9094_v50 = vld [vmem:[#allocation67_spill] sm:$0xff] }
 0x4af   : > { %v2752_v12 = vadd.f32 %v2751_v52, %v2689_v57  ;;  %v2884_v59 = vadd.f32 %v2883_v62, %v2821_v33  ;;  %9084 = vst [vmem:[#allocation84_spill] sm:$0xff] %v7289_v51  ;;  %v7297_v52 = vpop.f32.mrb[53].mxu1  ;;  %v7301_v62 = vadd.f32 %v7029_v46, %v7167_v14  ;;  %v2694_v54 = vmul.f32 %v9088_v5, %v7289_v51 }
 0x4b0   : > { %v7305_v10 = vpop.f32.mrb[54].mxu1  ;;  %v2826_v6 = vmul.f32 %v2693_v40, %v2693_v40 }
 0x4b1   : > { %v2753_v53 = vadd.f32 %v2752_v12, %v2690_v23  ;;  %v2885_v41 = vadd.f32 %v2884_v59, %v2822_v61  ;;  %9087 = vst [vmem:[#allocation86_spill] sm:$0xff] %v7301_v62  ;;  %v2825_v59 = vmul.f32 %v2692_v1, %v2692_v1  ;;  %v7307_v61 = vpop.f32.mrb[55].mxu1  ;;  %v2827_v51 = vmul.f32 %v2694_v54, %v2694_v54 }
 0x4b3   : > { %v2754_v57 = vadd.f32 %v2753_v53, %v2691_v55  ;;  %v2886_v33 = vadd.f32 %v2885_v41, %v2823_v43  ;;  %v7311_v53 = vadd.f32 %v7029_v46, %v7177_v7  ;;  %v7315_v43 = vadd.f32 %v7029_v46, %v7201_v20  ;;  %v9091_v55 = vld [vmem:[#allocation59_spill] sm:$0xff]  ;;  %v7327_v20 = vpop.f32.mrb[56].mxu1 }
 0x4b4   : > { %v2695_v41 = vmul.f32 %v9091_v55, %v7301_v62 }
 0x4b5   : > { %v2755_v23 = vadd.f32 %v2754_v57, %v2692_v1  ;;  %v2887_v12 = vadd.f32 %v2886_v33, %v2824_v24  ;;  %9089 = vst [vmem:[#allocation94_spill] sm:$0xff] %v7311_v53  ;;  %9090 = vst [vmem:[#allocation92_spill] sm:$0xff] %v7315_v43  ;;  %v7321_v1 = vadd.f32 %v7029_v46, %v7215_v9  ;;  %v9093_v33 = vld [vmem:[#allocation61_spill] sm:$0xff]  ;;  %v9096_v9 = vld [vmem:[#allocation70_spill] sm:$0xff] }
 0x4b6   : > { %v2696_v7 = vmul.f32 %v9093_v33, %v7311_v53  ;;  %v2697_v48 = vmul.f32 %v9094_v50, %v7315_v43  ;;  %v2828_v55 = vmul.f32 %v2695_v41, %v2695_v41  ;;  %v7341_v50 = vadd.f32 %v7029_v46, %v7209_v2  ;;  %v9101_v2 = vld [vmem:[#allocation68_spill] sm:$0xff] }
 0x4b7   : > { %v2756_v14 = vadd.f32 %v2755_v23, %v2693_v40  ;;  %v2888_v5 = vadd.f32 %v2887_v12, %v2825_v59  ;;  %9092 = vst [vmem:[#allocation95_spill] sm:$0xff] %v7321_v1  ;;  %v7329_v23 = vpop.f32.mrb[57].mxu1  ;;  %v7333_v12 = vadd.f32 %v7029_v46, %v7199_v0 }
 0x4b8   : > { %9097 = vst [vmem:[#allocation104_spill] sm:$0xff] %v7341_v50  ;;  %v2700_v53 = vmul.f32 %v9101_v2, %v7341_v50 }
 0x4b9   : > { %v2757_v57 = vadd.f32 %v2756_v14, %v2694_v54  ;;  %v2889_v24 = vadd.f32 %v2888_v5, %v2826_v6  ;;  %9095 = vst [vmem:[#allocation102_spill] sm:$0xff] %v7333_v12  ;;  %v2698_v54 = vmul.f32 %v9096_v9, %v7321_v1  ;;  %v7337_v6 = vpop.f32.mrb[58].mxu1 }
 0x4ba   : > { %v7343_v5 = vpop.f32.mrb[59].mxu1 }
 0x4bb   : > { %v2758_v40 = vadd.f32 %v2757_v57, %v2695_v41  ;;  %v2890_v59 = vadd.f32 %v2889_v24, %v2827_v51  ;;  %v2829_v57 = vmul.f32 %v2696_v7, %v2696_v7  ;;  %v2830_v41 = vmul.f32 %v2697_v48, %v2697_v48  ;;  %v9099_v24 = vld [vmem:[#allocation65_spill] sm:$0xff] }
 0x4bc   : > { %v7347_v51 = vadd.f32 %v7029_v46, %v7233_v27  ;;  %v2699_v9 = vmul.f32 %v9099_v24, %v7333_v12  ;;  %v2831_v43 = vmul.f32 %v2698_v54, %v2698_v54  ;;  %v7359_v27 = vpop.f32.mrb[60].mxu1 }
 0x4bd   : > { %v2759_v14 = vadd.f32 %v2758_v40, %v2696_v7  ;;  %v2891_v33 = vadd.f32 %v2890_v59, %v2828_v55  ;;  %v7353_v40 = vadd.f32 %v7029_v46, %v7243_v49  ;;  %v9102_v59 = vld [vmem:[#allocation74_spill] sm:$0xff]  ;;  %v9104_v49 = vld [vmem:[#allocation77_spill] sm:$0xff] }
 0x4be   : > { %9098 = vst [vmem:[#allocation66_spill] sm:$0xff] %v7347_v51  ;;  %v2701_v62 = vmul.f32 %v9102_v59, %v7347_v51  ;;  %v2832_v24 = vmul.f32 %v2699_v9, %v2699_v9  ;;  %v9110_v51 = vld [vmem:[#allocation82_spill] sm:$0xff] }
 0x4bf   : > { %v2760_v0 = vadd.f32 %v2759_v14, %v2697_v48  ;;  %v2892_v1 = vadd.f32 %v2891_v33, %v2829_v57  ;;  %9100 = vst [vmem:[#allocation85_spill] sm:$0xff] %v7353_v40  ;;  %v7361_v14 = vpop.f32.mrb[61].mxu1  ;;  %v7365_v33 = vadd.f32 %v7029_v46, %v7231_v36  ;;  %v2702_v12 = vmul.f32 %v9104_v49, %v7353_v40 }
 0x4c0   : > { %v7369_v2 = vpop.f32.mrb[62].mxu1  ;;  %v2834_v59 = vmul.f32 %v2701_v62, %v2701_v62 }
 0x4c1   : > { %v2761_v7 = vadd.f32 %v2760_v0, %v2698_v54  ;;  %v2893_v55 = vadd.f32 %v2892_v1, %v2830_v41  ;;  %9103 = vst [vmem:[#allocation88_spill] sm:$0xff] %v7365_v33  ;;  %v2833_v1 = vmul.f32 %v2700_v53, %v2700_v53  ;;  %v7371_v41 = vpop.f32.mrb[63].mxu1  ;;  %v2835_v40 = vmul.f32 %v2702_v12, %v2702_v12 }
 0x4c3   : > { %v2762_v48 = vadd.f32 %v2761_v7, %v2699_v9  ;;  %v2894_v57 = vadd.f32 %v2893_v55, %v2831_v43  ;;  %v7375_v7 = vadd.f32 %v7029_v46, %v7241_v16  ;;  %v7379_v43 = vadd.f32 %v7029_v46, %v7265_v21  ;;  %v9107_v9 = vld [vmem:[#allocation73_spill] sm:$0xff]  ;;  %v7391_v21 = vpop.f32.mrb[64].mxu1 }
 0x4c4   : > { %v2703_v55 = vmul.f32 %v9107_v9, %v7365_v33 }
 0x4c5   : > { %v2763_v54 = vadd.f32 %v2762_v48, %v2700_v53  ;;  %v2895_v0 = vadd.f32 %v2894_v57, %v2832_v24  ;;  %9105 = vst [vmem:[#allocation111_spill] sm:$0xff] %v7375_v7  ;;  %9106 = vst [vmem:[#allocation96_spill] sm:$0xff] %v7379_v43  ;;  %v7385_v53 = vadd.f32 %v7029_v46, %v7279_v34  ;;  %v9109_v57 = vld [vmem:[#allocation75_spill] sm:$0xff] }
 0x4c6   : > { %v2704_v16 = vmul.f32 %v9109_v57, %v7375_v7  ;;  %v2705_v50 = vmul.f32 %v9110_v51, %v7379_v43  ;;  %v2836_v9 = vmul.f32 %v2703_v55, %v2703_v55  ;;  %v9112_v34 = vld [vmem:[#allocation87_spill] sm:$0xff]  ;;  %v7405_v51 = vadd.f32 %v7029_v46, %v7273_v3 }
 0x4c7   : > { %v2764_v36 = vadd.f32 %v2763_v54, %v2701_v62  ;;  %v2896_v49 = vadd.f32 %v2895_v0, %v2833_v1  ;;  %9108 = vst [vmem:[#allocation109_spill] sm:$0xff] %v7385_v53  ;;  %v7393_v54 = vpop.f32.mrb[65].mxu1  ;;  %v7397_v0 = vadd.f32 %v7029_v46, %v7263_v30  ;;  %v9114_v3 = vld [vmem:[#allocation83_spill] sm:$0xff] }
 0x4c8   : > { %v2708_v7 = vmul.f32 %v9114_v3, %v7405_v51  ;;  %v7441_v3 = vadd.f32 %v7029_v46, %v7343_v5 }
 0x4c9   : > { %v2765_v48 = vadd.f32 %v2764_v36, %v2702_v12  ;;  %v2897_v24 = vadd.f32 %v2896_v49, %v2834_v59  ;;  %9111 = vst [vmem:[#allocation28_spill] sm:$0xff] %v7397_v0  ;;  %v2706_v12 = vmul.f32 %v9112_v34, %v7385_v53  ;;  %v7401_v59 = vpop.f32.mrb[66].mxu1 }
 0x4ca   : > { %v7407_v49 = vpop.f32.mrb[67].mxu1  ;;  %9118 = vst [vmem:[#allocation30_spill] sm:$0xff] %v7441_v3 }
 0x4cb   : > { %v2766_v62 = vadd.f32 %v2765_v48, %v2703_v55  ;;  %v2898_v1 = vadd.f32 %v2897_v24, %v2835_v40  ;;  %v2837_v48 = vmul.f32 %v2704_v16, %v2704_v16  ;;  %v2838_v55 = vmul.f32 %v2705_v50, %v2705_v50  ;;  %v9113_v24 = vld [vmem:[#allocation81_spill] sm:$0xff] }
 0x4cc   : > { %v7411_v40 = vadd.f32 %v7029_v46, %v7297_v52  ;;  %v2707_v34 = vmul.f32 %v9113_v24, %v7397_v0  ;;  %v2839_v43 = vmul.f32 %v2706_v12, %v2706_v12 }
 0x4cd   : > { %v2767_v36 = vadd.f32 %v2766_v62, %v2704_v16  ;;  %v2899_v57 = vadd.f32 %v2898_v1, %v2836_v9  ;;  %v7417_v62 = vadd.f32 %v7029_v46, %v7307_v61  ;;  %v9115_v1 = vld [vmem:[#allocation90_spill] sm:$0xff]  ;;  %v2841_v61 = vmul.f32 %v2708_v7, %v2708_v7 }
 0x4ce   : > { %v2709_v33 = vmul.f32 %v9115_v1, %v7411_v40  ;;  %v2840_v35 = vmul.f32 %v2707_v34, %v2707_v34 }
 0x4cf   : > { %v2768_v30 = vadd.f32 %v2767_v36, %v2705_v50  ;;  %v2900_v53 = vadd.f32 %v2899_v57, %v2837_v48  ;;  %v7425_v36 = vadd.f32 %v7029_v46, %v7295_v37  ;;  %v9116_v48 = vld [vmem:[#allocation93_spill] sm:$0xff] }
 0x4d0   : > { %v2710_v57 = vmul.f32 %v9116_v48, %v7417_v62  ;;  %v2842_v18 = vmul.f32 %v2709_v33, %v2709_v33 }
 0x4d1   : > { %v2769_v16 = vadd.f32 %v2768_v30, %v2706_v12  ;;  %v2901_v9 = vadd.f32 %v2900_v53, %v2838_v55  ;;  %v7431_v53 = vadd.f32 %v7029_v46, %v7305_v10  ;;  %v7435_v12 = vadd.f32 %v7029_v46, %v7329_v23  ;;  %v9117_v55 = vld [vmem:[#allocation89_spill] sm:$0xff] }
 0x4d2   : > { %v2711_v37 = vmul.f32 %v9117_v55, %v7425_v36 }
 0x4d3   : > { %v2770_v52 = vadd.f32 %v2769_v16, %v2707_v34  ;;  %v2902_v50 = vadd.f32 %v2901_v9, %v2839_v43  ;;  %v2843_v34 = vmul.f32 %v2710_v57, %v2710_v57  ;;  %v9119_v16 = vld [vmem:[#allocation91_spill] sm:$0xff]  ;;  %v9120_v9 = vld [vmem:[#allocation98_spill] sm:$0xff] }
 0x4d4   : > { %v2712_v10 = vmul.f32 %v9119_v16, %v7431_v53  ;;  %v2713_v1 = vmul.f32 %v9120_v9, %v7435_v12  ;;  %v9125_v9 = vld [vmem:[#allocation106_spill] sm:$0xff] }
 0x4d5   : > { %v2771_v24 = vadd.f32 %v2770_v52, %v2708_v7  ;;  %v2903_v0 = vadd.f32 %v2902_v50, %v2840_v35  ;;  %v2844_v52 = vmul.f32 %v2711_v37, %v2711_v37  ;;  %v7449_v50 = vadd.f32 %v7029_v46, %v7327_v20 }
 0x4d7   : > { %v2772_v43 = vadd.f32 %v2771_v24, %v2709_v33  ;;  %v2904_v30 = vadd.f32 %v2903_v0, %v2841_v61  ;;  %9121 = vst [vmem:[#allocation27_spill] sm:$0xff] %v7449_v50  ;;  %v9122_v0 = vld [vmem:[#allocation101_spill] sm:$0xff]  ;;  %v2846_v24 = vmul.f32 %v2713_v1, %v2713_v1 }
 0x4d8   : > { %v2714_v48 = vmul.f32 %v9122_v0, %v7441_v3  ;;  %v9126_v0 = vld [vmem:[#allocation110_spill] sm:$0xff] }
 0x4d9   : > { %v2773_v35 = vadd.f32 %v2772_v43, %v2710_v57  ;;  %v2905_v7 = vadd.f32 %v2904_v30, %v2842_v18  ;;  %v7455_v18 = vadd.f32 %v7029_v46, %v7337_v6  ;;  %v2845_v57 = vmul.f32 %v2712_v10, %v2712_v10  ;;  %v9124_v6 = vld [vmem:[#allocation99_spill] sm:$0xff] }
 0x4da   : > { %v7459_v43 = vadd.f32 %v7029_v46, %v7361_v14 }
 0x4db   : > { %v2774_v23 = vadd.f32 %v2773_v35, %v2711_v37  ;;  %v2906_v33 = vadd.f32 %v2905_v7, %v2843_v34  ;;  %v9123_v37 = vld [vmem:[#allocation97_spill] sm:$0xff]  ;;  %v2847_v34 = vmul.f32 %v2714_v48, %v2714_v48  ;;  %v7465_v35 = vadd.f32 %v7029_v46, %v7371_v41 }
 0x4dc   : > { %v2715_v20 = vmul.f32 %v9123_v37, %v7449_v50  ;;  %v2716_v7 = vmul.f32 %v9124_v6, %v7455_v18  ;;  %v7489_v6 = vadd.f32 %v7029_v46, %v7407_v49 }
 0x4dd   : > { %v2775_v5 = vadd.f32 %v2774_v23, %v2712_v10  ;;  %v2907_v61 = vadd.f32 %v2906_v33, %v2844_v52  ;;  %v2717_v23 = vmul.f32 %v9125_v9, %v7459_v43  ;;  %v7473_v33 = vadd.f32 %v7029_v46, %v7359_v27  ;;  %v9131_v9 = vld [vmem:[#allocation114_spill] sm:$0xff] }
 0x4de   : > { %v2848_v52 = vmul.f32 %v2715_v20, %v2715_v20  ;;  %v2849_v41 = vmul.f32 %v2716_v7, %v2716_v7  ;;  %9129 = vst [vmem:[#allocation29_spill] sm:$0xff] %v7489_v6 }
 0x4df   : > { %v2776_v55 = vadd.f32 %v2775_v5, %v2713_v1  ;;  %v2908_v30 = vadd.f32 %v2907_v61, %v2845_v57  ;;  %v2718_v5 = vmul.f32 %v9126_v0, %v7465_v35  ;;  %v2850_v37 = vmul.f32 %v2717_v23, %v2717_v23  ;;  %v9132_v0 = vld [vmem:[#allocation116_spill] sm:$0xff] }
 0x4e1   : > { %v2777_v16 = vadd.f32 %v2776_v55, %v2714_v48  ;;  %v2909_v10 = vadd.f32 %v2908_v30, %v2846_v24  ;;  %v7479_v48 = vadd.f32 %v7029_v46, %v7369_v2  ;;  %v7483_v24 = vadd.f32 %v7029_v46, %v7393_v54 }
 0x4e3   : > { %v2778_v14 = vadd.f32 %v2777_v16, %v2715_v20  ;;  %v2910_v1 = vadd.f32 %v2909_v10, %v2847_v34  ;;  %9127 = vst [vmem:[#allocation117_spill] sm:$0xff] %v7483_v24  ;;  %v9128_v20 = vld [vmem:[#allocation105_spill] sm:$0xff]  ;;  %v2851_v34 = vmul.f32 %v2718_v5, %v2718_v5  ;;  %v9130_v10 = vld [vmem:[#allocation108_spill] sm:$0xff] }
 0x4e4   : > { %v2719_v27 = vmul.f32 %v9128_v20, %v7473_v33  ;;  %v2720_v2 = vmul.f32 %v9130_v10, %v7479_v48  ;;  %v9133_v20 = vld [vmem:[#allocation112_spill] sm:$0xff] }
 0x4e5   : > { %v2779_v57 = vadd.f32 %v2778_v14, %v2716_v7  ;;  %v2911_v61 = vadd.f32 %v2910_v1, %v2848_v52  ;;  %v2721_v14 = vmul.f32 %v9131_v9, %v7483_v24  ;;  %v7497_v1 = vadd.f32 %v7029_v46, %v7391_v21 }
 0x4e6   : > { %v2852_v52 = vmul.f32 %v2719_v27, %v2719_v27 }
 0x4e7   : > { %v2780_v55 = vadd.f32 %v2779_v57, %v2717_v23  ;;  %v2912_v30 = vadd.f32 %v2911_v61, %v2849_v41  ;;  %v2722_v41 = vmul.f32 %v9132_v0, %v7489_v6  ;;  %v2853_v57 = vmul.f32 %v2720_v2, %v2720_v2 }
 0x4e8   : > { %v2854_v61 = vmul.f32 %v2721_v14, %v2721_v14 }
 0x4e9   : > { %v2781_v7 = vadd.f32 %v2780_v55, %v2718_v5  ;;  %v2913_v16 = vadd.f32 %v2912_v30, %v2850_v37  ;;  %v7503_v37 = vadd.f32 %v7029_v46, %v7401_v59 }
 0x4eb   : > { %v2782_v54 = vadd.f32 %v2781_v7, %v2719_v27  ;;  %v2914_v23 = vadd.f32 %v2913_v16, %v2851_v34  ;;  %v2723_v27 = vmul.f32 %v9133_v20, %v7497_v1  ;;  %v2855_v34 = vmul.f32 %v2722_v41, %v2722_v41  ;;  %v9134_v16 = vld [vmem:[#allocation118_spill] sm:$0xff] }
 0x4ec   : > { %v2724_v10 = vmul.f32 %v9134_v16, %v7503_v37 }
 0x4ed   : > { %v2783_v49 = vadd.f32 %v2782_v54, %v2720_v2  ;;  %v2915_v5 = vadd.f32 %v2914_v23, %v2852_v52  ;;  %v2856_v54 = vmul.f32 %v2723_v27, %v2723_v27 }
 0x4ee   : > { %v2857_v23 = vmul.f32 %v2724_v10, %v2724_v10 }
 0x4ef   : > { %v2784_v55 = vadd.f32 %v2783_v49, %v2721_v14  ;;  %v2916_v30 = vadd.f32 %v2915_v5, %v2853_v57 }
 0x4f1   : > { %v2785_v7 = vadd.f32 %v2784_v55, %v2722_v41  ;;  %v2917_v21 = vadd.f32 %v2916_v30, %v2854_v61 }
 0x4f3   : > { %v2786_v9 = vadd.f32 %v2785_v7, %v2723_v27  ;;  %v2918_v2 = vadd.f32 %v2917_v21, %v2855_v34  ;;  %v9135_v27 = vld [vmem:[#allocation119_spill] sm:$0xff]  ;;  %v9136_v34 = vmov 0.0   ;;  %v9137_v21 = vmov 0.0|0.0  }
 0x4f5   : > { %v2787_v52 = vadd.f32 %v2786_v9, %v2724_v10  ;;  %v2919_v0 = vadd.f32 %v2918_v2, %v2856_v54  ;;  %v9139_v10 = vld [vmem:[#allocation121_spill] sm:$0xff] }
 0x4f7   : > { %v2788_v6 = vrot.slane %v2787_v52, 4  ;;  %v2920_v46 = vadd.f32 %v2919_v0, %v2857_v23 }
 0x4f9   : > { %v2789_v59 = vadd.f32 %v2788_v6, %v2787_v52  ;;  %v2921_v14 = vrot.slane %v2920_v46, 4  ;;  %v9138_v6 = vld [vmem:[#allocation120_spill] sm:$0xff] }
 0x4fb   : > { %v2790_v49 = vrot.slane %v2789_v59, 2  ;;  %v2922_v24 = vadd.f32 %v2921_v14, %v2920_v46 }
 0x4fd   : > { %v2791_v20 = vadd.f32 %v2790_v49, %v2789_v59  ;;  %v2923_v57 = vrot.slane %v2922_v24, 2  ;;  %v9140_v49 = vld [vmem:[#allocation26_spill] sm:$0xff] }
 0x4ff   : > { %v2792_v5 = vrot.slane %v2791_v20, 1  ;;  %v2924_v41 = vadd.f32 %v2923_v57, %v2922_v24 }
 0x501   : > { %v2925_v61 = vrot.slane %v2924_v41, 1  ;;  %v2793_v55 = vadd.f32 %v2792_v5, %v2791_v20  ;;  %v9141_v20 = vsub.s32 0, %v9140_v49 }
 0x503   : > { %v2926_v30 = vadd.f32 %v2925_v61, %v2924_v41  ;;  %v9142_v41 = vsub.s32 1, %v9140_v49  ;;  %v9145_v49 = vld [vmem:[#allocation69_spill] sm:$0xff] }
 0x505   : > { %v2927_v7 = vsel %vm1617_vm4, %v2793_v55, %v2926_v30  ;;  %v9164_v30 = vld [vmem:[#allocation109_spill] sm:$0xff]  ;;  %v9165_v55 = vld [vmem:[#allocation28_spill] sm:$0xff] }
 0x506   : > { %4243 = vmatmul.mubr.f32.vlgmr.msra.gmra.mrb[64].mxu0 %v2927_v7  ;;  %v9163_v7 = vld [vmem:[#allocation96_spill] sm:$0xff] }
 0x507   : > { %4312 = vmatpush3.bf16.msra.mxu0 %v9135_v27  ;;  %4253 = vmatprep.mubr.msk.f32.mxu0 %vm4762_vm9, %v9136_v34  ;;  %v9161_v34 = vld [vmem:[#allocation88_spill] sm:$0xff]  ;;  %v9162_v27 = vld [vmem:[#allocation111_spill] sm:$0xff] }
 0x508   : > { %4313 = vmatprep.subr.bf16.mxu0 %v9137_v21  ;;  %v9160_v21 = vld [vmem:[#allocation85_spill] sm:$0xff] }
 0x50b   : > { %4315 = vmatpush3.bf16.msra.mxu0 %v9138_v6  ;;  %v9159_v6 = vld [vmem:[#allocation66_spill] sm:$0xff] }
 0x5d9   : > { %v2994_v16 = vpop.f32.mrb[64].mxu0 }
 0x5da   : > { %v2998_v9 = vmul.f32 %v9139_v10, %v2994_v16  ;;  %v4244_v54 = vpop.f32.mrb[65].mxu0  ;;  %v9166_v16 = vld [vmem:[#allocation117_spill] sm:$0xff] }
 0x5dc   : > { %v2999_v24 = vmul.f32 %v2998_v9, %v2998_v9 }
 0x5de   : > { %v3001_v2 = vrot.slane %v2999_v24, 7 }
 0x5e0   : > { %v3003_v52 = vsub.f32 %v2998_v9, %v3001_v2 }
 0x5e2   : > { %v3004_v23 = vmax.f32 %v3003_v52, 0.0  ;;  %v9167_v52 = vld [vmem:[#allocation29_spill] sm:$0xff] }
 0x5e4   : > { %v3005_v0 = vadd.f32 1e-05, %v3004_v23  ;;  %v9151_v23 = vld [vmem:[#allocation113_spill] sm:$0xff] }
 0x5e6   : > { %4478 = vrsqrt.f32 %v3005_v0  ;;  %v9150_v0 = vld [vmem:[#allocation79_spill] sm:$0xff] }
 0x5f0   : > { %v4479_v46 = vpop.eup %4478 }
 0x5f1   : > { %v3007_v59 = vsel %vm1617_vm4, %v2998_v9, %v4479_v46  ;;  %v9149_v46 = vld [vmem:[#allocation76_spill] sm:$0xff] }
 0x5f2   : > { %4254 = vmatmul.mubr.msk.f32.vlgmr.msra.gmra.mrb[66].mxu0 %vm1701_vm5, %v3007_v59  ;;  %v9143_v59 = vld [vmem:[#allocation64_spill] sm:$0xff] }
 0x6c5   : > { %v3077_v14 = vpop.f32.mrb[66].mxu0 }
 0x6c6   : > { %v7520_v57 = vrot.slane %v3077_v14, %v9141_v20  ;;  %v4255_v5 = vpop.f32.mrb[67].mxu0  ;;  %v7524_v61 = vrot.slane %v3077_v14, %v9142_v41  ;;  %v9144_v14 = vld [vmem:[#allocation72_spill] sm:$0xff]  ;;  %v9146_v20 = vld [vmem:[#allocation71_spill] sm:$0xff] }
 0x6c7   : > { %v9147_v5 = vld [vmem:[#allocation78_spill] sm:$0xff]  ;;  %v9148_v41 = vld [vmem:[#allocation80_spill] sm:$0xff] }
 0x6c8   : > { %v9168_v54 = vsub.f32 %v7037_v25, %v7520_v57  ;;  %v9169_v10 = vsub.f32 %v7041_v32, %v7520_v57  ;;  %v9170_v50 = vsub.f32 %v7033_v38, %v7520_v57  ;;  %v9171_v24 = vsub.f32 %v7051_v26, %v7520_v57 }
 0x6ca   : > { %v7658_v9 = vmul.f32 %v7524_v61, %v9168_v54  ;;  %v7664_v3 = vmul.f32 %v7524_v61, %v9169_v10  ;;  %v7670_v2 = vmul.f32 %v7524_v61, %v9170_v50  ;;  %v7676_v25 = vmul.f32 %v7524_v61, %v9171_v24 }
 0x6cb   : > { %v9172_v54 = vsub.f32 %v7055_v31, %v7520_v57  ;;  %v9173_v10 = vsub.f32 %v7065_v45, %v7520_v57  ;;  %v9174_v50 = vsub.f32 %v7077_v8, %v7520_v57  ;;  %v9175_v24 = vsub.f32 %v7085_v56, %v7520_v57 }
 0x6cd   : > { %v7682_v32 = vmul.f32 %v7524_v61, %v9172_v54  ;;  %v7688_v38 = vmul.f32 %v7524_v61, %v9173_v10  ;;  %v7694_v26 = vmul.f32 %v7524_v61, %v9174_v50  ;;  %v7700_v31 = vmul.f32 %v7524_v61, %v9175_v24 }
 0x6ce   : > { %v9176_v54 = vsub.f32 %v7091_v60, %v7520_v57  ;;  %v9177_v10 = vsub.f32 %v7097_v44, %v7520_v57  ;;  %v9178_v50 = vsub.f32 %v7109_v58, %v7520_v57  ;;  %v9179_v24 = vsub.f32 %v7117_v11, %v7520_v57 }
 0x6d0   : > { %v7706_v45 = vmul.f32 %v7524_v61, %v9176_v54  ;;  %v7712_v8 = vmul.f32 %v7524_v61, %v9177_v10  ;;  %v7718_v56 = vmul.f32 %v7524_v61, %v9178_v50  ;;  %v7724_v60 = vmul.f32 %v7524_v61, %v9179_v24 }
 0x6d1   : > { %v9180_v54 = vsub.f32 %v7123_v63, %v7520_v57  ;;  %v9181_v10 = vsub.f32 %v7129_v47, %v7520_v57  ;;  %v9182_v50 = vsub.f32 %v7141_v13, %v7520_v57  ;;  %v9183_v24 = vsub.f32 %v7151_v28, %v7520_v57 }
 0x6d3   : > { %v7730_v44 = vmul.f32 %v7524_v61, %v9180_v54  ;;  %v7736_v58 = vmul.f32 %v7524_v61, %v9181_v10  ;;  %v7742_v11 = vmul.f32 %v7524_v61, %v9182_v50  ;;  %v7748_v63 = vmul.f32 %v7524_v61, %v9183_v24 }
 0x6d4   : > { %v9184_v54 = vsub.f32 %v7155_v39, %v7520_v57  ;;  %v9185_v10 = vsub.f32 %v7161_v17, %v7520_v57  ;;  %v9186_v50 = vsub.f32 %v7173_v19, %v7520_v57  ;;  %v9187_v24 = vsub.f32 %v7181_v29, %v7520_v57 }
 0x6d6   : > { %v7754_v47 = vmul.f32 %v7524_v61, %v9184_v54  ;;  %v7760_v13 = vmul.f32 %v7524_v61, %v9185_v10  ;;  %v7766_v28 = vmul.f32 %v7524_v61, %v9186_v50  ;;  %v7772_v39 = vmul.f32 %v7524_v61, %v9187_v24 }
 0x6d7   : > { %v9188_v54 = vsub.f32 %v7187_v4, %v7520_v57  ;;  %v9189_v10 = vsub.f32 %v7193_v42, %v7520_v57  ;;  %v9190_v50 = vsub.f32 %v7205_v15, %v7520_v57  ;;  %v9191_v24 = vsub.f32 %v7213_v22, %v7520_v57 }
 0x6d9   : > { %v7778_v17 = vmul.f32 %v7524_v61, %v9188_v54  ;;  %v7784_v19 = vmul.f32 %v7524_v61, %v9189_v10  ;;  %v7790_v29 = vmul.f32 %v7524_v61, %v9190_v50  ;;  %v7796_v4 = vmul.f32 %v7524_v61, %v9191_v24 }
 0x6da   : > { %v9192_v54 = vsub.f32 %v9143_v59, %v7520_v57  ;;  %v9193_v10 = vsub.f32 %v9144_v14, %v7520_v57  ;;  %v9194_v50 = vsub.f32 %v9145_v49, %v7520_v57  ;;  %v9195_v24 = vsub.f32 %v9146_v20, %v7520_v57 }
 0x6dc   : > { %v7802_v42 = vmul.f32 %v7524_v61, %v9192_v54  ;;  %v7808_v15 = vmul.f32 %v7524_v61, %v9193_v10  ;;  %v7814_v22 = vmul.f32 %v7524_v61, %v9194_v50  ;;  %v7820_v59 = vmul.f32 %v7524_v61, %v9195_v24 }
 0x6dd   : > { %v9196_v54 = vsub.f32 %v9147_v5, %v7520_v57  ;;  %v9197_v10 = vsub.f32 %v9148_v41, %v7520_v57  ;;  %v9199_v50 = vsub.f32 %v9149_v46, %v7520_v57  ;;  %v9201_v24 = vsub.f32 %v9150_v0, %v7520_v57 }
 0x6df   : > { %v7826_v14 = vmul.f32 %v7524_v61, %v9196_v54  ;;  %v7832_v49 = vmul.f32 %v7524_v61, %v9197_v10  ;;  %v7838_v20 = vmul.f32 %v7524_v61, %v9199_v50  ;;  %v7844_v5 = vmul.f32 %v7524_v61, %v9201_v24  ;;  %v9205_v10 = vld [vmem:[#allocation84_spill] sm:$0xff]  ;;  %v9208_v50 = vld [vmem:[#allocation86_spill] sm:$0xff] }
 0x6e0   : > { %v9203_v54 = vsub.f32 %v9151_v23, %v7520_v57  ;;  %v9211_v24 = vld [vmem:[#allocation94_spill] sm:$0xff] }
 0x6e1   : > { %9198 = vst [vmem:[#allocation32_spill] sm:$0xff] %v7832_v49  ;;  %9200 = vst [vmem:[#allocation107_spill] sm:$0xff] %v7838_v20  ;;  %v9206_v49 = vsub.f32 %v9205_v10, %v7520_v57  ;;  %v9209_v20 = vsub.f32 %v9208_v50, %v7520_v57 }
 0x6e2   : > { %9202 = vst [vmem:[#allocation34_spill] sm:$0xff] %v7844_v5  ;;  %v7850_v41 = vmul.f32 %v7524_v61, %v9203_v54  ;;  %v9212_v5 = vsub.f32 %v9211_v24, %v7520_v57  ;;  %v9214_v54 = vld [vmem:[#allocation92_spill] sm:$0xff] }
 0x6e3   : > { %v7856_v46 = vmul.f32 %v7524_v61, %v9206_v49  ;;  %v7862_v0 = vmul.f32 %v7524_v61, %v9209_v20  ;;  %v9216_v49 = vld [vmem:[#allocation95_spill] sm:$0xff]  ;;  %v9218_v20 = vld [vmem:[#allocation102_spill] sm:$0xff] }
 0x6e4   : > { %9204 = vst [vmem:[#allocation115_spill] sm:$0xff] %v7850_v41  ;;  %v7868_v23 = vmul.f32 %v7524_v61, %v9212_v5  ;;  %v9215_v41 = vsub.f32 %v9214_v54, %v7520_v57  ;;  %v9220_v5 = vld [vmem:[#allocation104_spill] sm:$0xff] }
 0x6e5   : > { %9207 = vst [vmem:[#allocation103_spill] sm:$0xff] %v7856_v46  ;;  %9210 = vst [vmem:[#allocation31_spill] sm:$0xff] %v7862_v0  ;;  %v9217_v46 = vsub.f32 %v9216_v49, %v7520_v57  ;;  %v9219_v0 = vsub.f32 %v9218_v20, %v7520_v57 }
 0x6e6   : > { %9213 = vst [vmem:[#allocation33_spill] sm:$0xff] %v7868_v23  ;;  %v7874_v10 = vmul.f32 %v7524_v61, %v9215_v41  ;;  %v9221_v23 = vsub.f32 %v9220_v5, %v7520_v57  ;;  %v9222_v41 = vsub.f32 %v9159_v6, %v7520_v57 }
 0x6e7   : > { %v7880_v50 = vmul.f32 %v7524_v61, %v9217_v46  ;;  %v7886_v24 = vmul.f32 %v7524_v61, %v9219_v0  ;;  %v9223_v46 = vsub.f32 %v9160_v21, %v7520_v57  ;;  %v9224_v0 = vsub.f32 %v9161_v34, %v7520_v57 }
 0x6e8   : > { %v7892_v54 = vmul.f32 %v7524_v61, %v9221_v23  ;;  %v7898_v49 = vmul.f32 %v7524_v61, %v9222_v41  ;;  %v9225_v23 = vsub.f32 %v9162_v27, %v7520_v57  ;;  %v9226_v41 = vsub.f32 %v9163_v7, %v7520_v57 }
 0x6e9   : > { %v7904_v20 = vmul.f32 %v7524_v61, %v9223_v46  ;;  %v7910_v5 = vmul.f32 %v7524_v61, %v9224_v0  ;;  %v9227_v46 = vsub.f32 %v9164_v30, %v7520_v57  ;;  %v9228_v0 = vsub.f32 %v9165_v55, %v7520_v57 }
 0x6ea   : > { %v7916_v6 = vmul.f32 %v7524_v61, %v9225_v23  ;;  %v7922_v21 = vmul.f32 %v7524_v61, %v9226_v41  ;;  %v9229_v23 = vsub.f32 %v7405_v51, %v7520_v57  ;;  %v9230_v41 = vsub.f32 %v7411_v40, %v7520_v57 }
 0x6eb   : > { %v7928_v34 = vmul.f32 %v7524_v61, %v9227_v46  ;;  %v7934_v27 = vmul.f32 %v7524_v61, %v9228_v0  ;;  %v9231_v46 = vsub.f32 %v7417_v62, %v7520_v57  ;;  %v9233_v0 = vsub.f32 %v7425_v36, %v7520_v57 }
 0x6ec   : > { %v7940_v7 = vmul.f32 %v7524_v61, %v9229_v23  ;;  %v7946_v30 = vmul.f32 %v7524_v61, %v9230_v41  ;;  %v9235_v23 = vsub.f32 %v7431_v53, %v7520_v57  ;;  %v9236_v41 = vsub.f32 %v7435_v12, %v7520_v57 }
 0x6ed   : > { %v7952_v55 = vmul.f32 %v7524_v61, %v9231_v46  ;;  %v7958_v51 = vmul.f32 %v7524_v61, %v9233_v0  ;;  %v9237_v46 = vld [vmem:[#allocation30_spill] sm:$0xff]  ;;  %v9239_v0 = vld [vmem:[#allocation27_spill] sm:$0xff] }
 0x6ee   : > { %v7964_v40 = vmul.f32 %v7524_v61, %v9235_v23  ;;  %v7970_v62 = vmul.f32 %v7524_v61, %v9236_v41  ;;  %v9241_v23 = vsub.f32 %v7455_v18, %v7520_v57  ;;  %v9242_v41 = vsub.f32 %v7459_v43, %v7520_v57 }
 0x6ef   : > { %9232 = vst [vmem:[#allocation36_spill] sm:$0xff] %v7952_v55  ;;  %9234 = vst [vmem:[#allocation100_spill] sm:$0xff] %v7958_v51  ;;  %v9238_v55 = vsub.f32 %v9237_v46, %v7520_v57  ;;  %v9240_v51 = vsub.f32 %v9239_v0, %v7520_v57 }
 0x6f0   : > { %v7988_v12 = vmul.f32 %v7524_v61, %v9241_v23  ;;  %v7994_v46 = vmul.f32 %v7524_v61, %v9242_v41  ;;  %v9245_v23 = vsub.f32 %v7479_v48, %v7520_v57  ;;  %v9246_v41 = vsub.f32 %v9166_v16, %v7520_v57 }
 0x6f1   : > { %v7976_v36 = vmul.f32 %v7524_v61, %v9238_v55  ;;  %v7982_v53 = vmul.f32 %v7524_v61, %v9240_v51  ;;  %v9243_v55 = vsub.f32 %v7465_v35, %v7520_v57  ;;  %v9244_v51 = vsub.f32 %v7473_v33, %v7520_v57 }
 0x6f2   : > { %v8012_v43 = vmul.f32 %v7524_v61, %v9245_v23  ;;  %v8018_v35 = vmul.f32 %v7524_v61, %v9246_v41  ;;  %v9249_v23 = vsub.f32 %v7503_v37, %v7520_v57  ;;  %v8040_v41 = vld [vmem:[%s388_s1] ss:$0 sm:$0xff]  ;;  %s3424_s1 = sshll.u32 %s6848_s15, 4  ;;  %s8481_s1 = int_to_ptr.vmem [resolvable:$true] %s3424_s1 }
 0x6f3   : > { %v8000_v0 = vmul.f32 %v7524_v61, %v9243_v55  ;;  %v8006_v18 = vmul.f32 %v7524_v61, %v9244_v51  ;;  %v9247_v55 = vsub.f32 %v9167_v52, %v7520_v57  ;;  %v9248_v51 = vsub.f32 %v7497_v1, %v7520_v57  ;;  %s4670_s11 = scalar_lea.vmem %s8481_s1, 16384  ;;  %p4677_p9 = scmp.lt.s32.totalorder %s8481_s1, %s4675_s9 }
 0x6f4   : > { %v8036_v16 = vmul.f32 %v7524_v61, %v9249_v23  ;;  %v8044_v52 = vmul.f32 %v8040_v41, %v7658_v9  ;;  %v8052_v1 = vmul.f32 %v8040_v41, %v7670_v2  ;;  %v8056_v37 = vmul.f32 %v8040_v41, %v7676_v25  ;;  %v9256_v23 = vld [vmem:[#allocation34_spill] sm:$0xff]  ;;  %p4671_p4 = scmp.ne.s32.totalorder %s8481_s1, %s4670_s11  ;;  %p4678_p8 = scmp.lt.s32.totalorder %s4676_s19, %s4670_s11 }
 0x6f5   : > { %v8024_v33 = vmul.f32 %v7524_v61, %v9247_v55  ;;  %v8030_v48 = vmul.f32 %v7524_v61, %v9248_v51  ;;  %v8048_v55 = vmul.f32 %v8040_v41, %v7664_v3  ;;  %v8060_v57 = vmul.f32 %v8040_v41, %v7682_v32  ;;  %v9255_v51 = vld [vmem:[#allocation107_spill] sm:$0xff] }
 0x6f6   : > { %v8064_v61 = vmul.f32 %v8040_v41, %v7688_v38  ;;  %v8068_v3 = vmul.f32 %v8040_v41, %v7694_v26  ;;  %v8072_v9 = vmul.f32 %v8040_v41, %v7700_v31  ;;  %v8076_v2 = vmul.f32 %v8040_v41, %v7706_v45  ;;  %p4672_p11 = pnand %p4671_p4, %p9274_p10  ;;  %p4679_p0 = por %p4678_p8, %p4677_p9 }
 0x6f7   : > { %v8080_v25 = vmul.f32 %v8040_v41, %v7712_v8  ;;  %v8084_v32 = vmul.f32 %v8040_v41, %v7718_v56  ;;  %v8088_v38 = vmul.f32 %v8040_v41, %v7724_v60  ;;  %v8092_v26 = vmul.f32 %v8040_v41, %v7730_v44 }
 0x6f8   : > { %v8096_v31 = vmul.f32 %v8040_v41, %v7736_v58  ;;  %v8100_v45 = vmul.f32 %v8040_v41, %v7742_v11  ;;  %v8104_v8 = vmul.f32 %v8040_v41, %v7748_v63  ;;  %v8108_v56 = vmul.f32 %v8040_v41, %v7754_v47  ;;  %p4673_p3 = pneg %p4672_p11 }
 0x6f9   : > { %v8112_v60 = vmul.f32 %v8040_v41, %v7760_v13  ;;  %v8116_v44 = vmul.f32 %v8040_v41, %v7766_v28  ;;  %v8120_v58 = vmul.f32 %v8040_v41, %v7772_v39  ;;  %v8124_v11 = vmul.f32 %v8040_v41, %v7778_v17 }
 0x6fa   : > { %v8128_v63 = vmul.f32 %v8040_v41, %v7784_v19  ;;  %v8132_v47 = vmul.f32 %v8040_v41, %v7790_v29  ;;  %v8136_v13 = vmul.f32 %v8040_v41, %v7796_v4  ;;  %v8140_v28 = vmul.f32 %v8040_v41, %v7802_v42  ;;  %v9253_v4 = vld [vmem:[#allocation32_spill] sm:$0xff]  ;;  %p4680_p6 = pnand %p4679_p0, %p4673_p3 }
 0x6fb   : > { %v8144_v39 = vmul.f32 %v8040_v41, %v7808_v15  ;;  %v8148_v17 = vmul.f32 %v8040_v41, %v7814_v22  ;;  %v8152_v19 = vmul.f32 %v8040_v41, %v7820_v59  ;;  %v8156_v29 = vmul.f32 %v8040_v41, %v7826_v14 }
 0x6fc   : > { %v8160_v42 = vmul.f32 %v8040_v41, %v9253_v4  ;;  %v8164_v15 = vmul.f32 %v8040_v41, %v9255_v51  ;;  %v8168_v22 = vmul.f32 %v8040_v41, %v9256_v23  ;;  %v8188_v23 = vmul.f32 %v8040_v41, %v7874_v10 }
 0x6fd   : > { %9250 = vst [vmem:[#allocation38_spill] sm:$0xff] %v8148_v17  ;;  %9251 = vst [vmem:[#allocation62_spill] sm:$0xff] %v8152_v19  ;;  %v9257_v17 = vld [vmem:[#allocation115_spill] sm:$0xff]  ;;  %v8208_v10 = vmul.f32 %v8040_v41, %v7904_v20  ;;  %v8228_v20 = vmul.f32 %v8040_v41, %v7934_v27  ;;  %v8248_v27 = vmul.f32 %v8040_v41, %v7964_v40 }
 0x6fe   : > { %9252 = vst [vmem:[#allocation35_spill] sm:$0xff] %v8156_v29  ;;  %9254 = vst [vmem:[#allocation37_spill] sm:$0xff] %v8160_v42  ;;  %v8172_v59 = vmul.f32 %v8040_v41, %v9257_v17  ;;  %v9258_v19 = vld [vmem:[#allocation103_spill] sm:$0xff]  ;;  %v9260_v42 = vld [vmem:[#allocation33_spill] sm:$0xff]  ;;  %v8192_v17 = vmul.f32 %v8040_v41, %v7880_v50  ;;  %v8212_v50 = vmul.f32 %v8040_v41, %v7910_v5 }
 0x6ff   : > { %v8176_v14 = vmul.f32 %v8040_v41, %v9258_v19  ;;  %v9259_v29 = vld [vmem:[#allocation31_spill] sm:$0xff]  ;;  %v8184_v51 = vmul.f32 %v8040_v41, %v9260_v42  ;;  %v8196_v19 = vmul.f32 %v8040_v41, %v7886_v24  ;;  %v8204_v42 = vmul.f32 %v8040_v41, %v7898_v49 }
 0x700   : > { %v8180_v4 = vmul.f32 %v8040_v41, %v9259_v29  ;;  %v8200_v29 = vmul.f32 %v8040_v41, %v7892_v54  ;;  %v8216_v24 = vmul.f32 %v8040_v41, %v7916_v6  ;;  %v8220_v54 = vmul.f32 %v8040_v41, %v7922_v21 }
 0x701   : > { %v8224_v49 = vmul.f32 %v8040_v41, %v7928_v34  ;;  %v8232_v5 = vmul.f32 %v8040_v41, %v7940_v7  ;;  %v8236_v6 = vmul.f32 %v8040_v41, %v7946_v30  ;;  %v8252_v7 = vmul.f32 %v8040_v41, %v7970_v62 }
 0x702   : > { %9261 = vst [vmem:[#allocation40_spill] sm:$0xff] %v8216_v24  ;;  %9262 = vst [vmem:[#allocation42_spill] sm:$0xff] %v8220_v54  ;;  %v9263_v24 = vld [vmem:[#allocation36_spill] sm:$0xff]  ;;  %v8256_v30 = vmul.f32 %v8040_v41, %v7976_v36  ;;  %v8268_v40 = vmul.f32 %v8040_v41, %v7994_v46  ;;  %v8272_v62 = vmul.f32 %v8040_v41, %v8000_v0 }
 0x703   : > { %v8240_v21 = vmul.f32 %v8040_v41, %v9263_v24  ;;  %v9264_v54 = vld [vmem:[#allocation100_spill] sm:$0xff]  ;;  %v8260_v24 = vmul.f32 %v8040_v41, %v7982_v53  ;;  %v8276_v36 = vmul.f32 %v8040_v41, %v8006_v18  ;;  %v8280_v53 = vmul.f32 %v8040_v41, %v8012_v43  ;;  %v8300_v43 = vld [vmem:[%s396_s8] ss:$0 sm:$0xff] }
 0x704   : > { %v8244_v34 = vmul.f32 %v8040_v41, %v9264_v54  ;;  %v8264_v54 = vmul.f32 %v8040_v41, %v7988_v12  ;;  %v8284_v12 = vmul.f32 %v8040_v41, %v8018_v35  ;;  %v8288_v46 = vmul.f32 %v8040_v41, %v8024_v33 }
 0x705   : > { %v8292_v0 = vmul.f32 %v8040_v41, %v8030_v48  ;;  %v8296_v18 = vmul.f32 %v8040_v41, %v8036_v16  ;;  %v3281_v35 = vadd.f32 %v8300_v43, %v8044_v52  ;;  %v3282_v33 = vadd.f32 %v8300_v43, %v8048_v55 }
 0x706   : > { %v3283_v48 = vadd.f32 %v8300_v43, %v8052_v1  ;;  %v3285_v16 = vadd.f32 %v8300_v43, %v8060_v57  ;;  %v3286_v41 = vadd.f32 %v8300_v43, %v8064_v61  ;;  %v3287_v52 = vadd.f32 %v8300_v43, %v8068_v3 }
 0x707   : > { %9265 = vst [vmem:[#allocation39_spill] sm:$0xff] %v8292_v0  ;;  %v3284_v0 = vadd.f32 %v8300_v43, %v8056_v37  ;;  %v3288_v55 = vadd.f32 %v8300_v43, %v8072_v9  ;;  %v3289_v1 = vadd.f32 %v8300_v43, %v8076_v2  ;;  %v3290_v37 = vadd.f32 %v8300_v43, %v8080_v25 }
 0x708   : > { %v3291_v57 = vadd.f32 %v8300_v43, %v8084_v32  ;;  %v3292_v61 = vadd.f32 %v8300_v43, %v8088_v38  ;;  %3808 = vst [vmem:[%s6848_s15 + $0x200] sm:$0xff] %v3281_v35  ;;  %3809 = vst [vmem:[%s6848_s15 + $0x208] sm:$0xff] %v3282_v33  ;;  %v3293_v3 = vadd.f32 %v8300_v43, %v8092_v26  ;;  %v9269_v35 = vld [vmem:[#allocation37_spill] sm:$0xff] }
 0x709   : > { %3810 = vst [vmem:[%s6848_s15 + $0x210] sm:$0xff] %v3283_v48  ;;  %3811 = vst [vmem:[%s6848_s15 + $0x218] sm:$0xff] %v3284_v0  ;;  %v3294_v9 = vadd.f32 %v8300_v43, %v8096_v31  ;;  %v3295_v2 = vadd.f32 %v8300_v43, %v8100_v45  ;;  %v3296_v25 = vadd.f32 %v8300_v43, %v8104_v8  ;;  %v9268_v0 = vld [vmem:[#allocation35_spill] sm:$0xff] }
 0x70a   : > { %3812 = vst [vmem:[%s6848_s15 + $0x220] sm:$0xff] %v3285_v16  ;;  %3813 = vst [vmem:[%s6848_s15 + $0x228] sm:$0xff] %v3286_v41  ;;  %v3297_v32 = vadd.f32 %v8300_v43, %v8108_v56  ;;  %v3298_v38 = vadd.f32 %v8300_v43, %v8112_v60  ;;  %v3299_v26 = vadd.f32 %v8300_v43, %v8116_v44 }
 0x70b   : > { %3814 = vst [vmem:[%s6848_s15 + $0x230] sm:$0xff] %v3287_v52  ;;  %3815 = vst [vmem:[%s6848_s15 + $0x238] sm:$0xff] %v3288_v55  ;;  %v3300_v31 = vadd.f32 %v8300_v43, %v8120_v58  ;;  %v3301_v45 = vadd.f32 %v8300_v43, %v8124_v11  ;;  %v3302_v8 = vadd.f32 %v8300_v43, %v8128_v63  ;;  %v9266_v11 = vld [vmem:[#allocation38_spill] sm:$0xff] }
 0x70c   : > { %3816 = vst [vmem:[%s6848_s15 + $0x240] sm:$0xff] %v3289_v1  ;;  %3817 = vst [vmem:[%s6848_s15 + $0x248] sm:$0xff] %v3290_v37  ;;  %v3303_v56 = vadd.f32 %v8300_v43, %v8132_v47  ;;  %v3304_v60 = vadd.f32 %v8300_v43, %v8136_v13  ;;  %v3305_v44 = vadd.f32 %v8300_v43, %v8140_v28  ;;  %v9267_v47 = vld [vmem:[#allocation62_spill] sm:$0xff] }
 0x70d   : > { %3818 = vst [vmem:[%s6848_s15 + $0x250] sm:$0xff] %v3291_v57  ;;  %3819 = vst [vmem:[%s6848_s15 + $0x258] sm:$0xff] %v3292_v61  ;;  %v3306_v58 = vadd.f32 %v8300_v43, %v8144_v39  ;;  %v3307_v63 = vadd.f32 %v8300_v43, %v9266_v11  ;;  %v3308_v13 = vadd.f32 %v8300_v43, %v9267_v47  ;;  %v9271_v55 = vld [vmem:[#allocation42_spill] sm:$0xff] }
 0x70e   : > { %3820 = vst [vmem:[%s6848_s15 + $0x260] sm:$0xff] %v3293_v3  ;;  %3821 = vst [vmem:[%s6848_s15 + $0x268] sm:$0xff] %v3294_v9  ;;  %v3309_v28 = vadd.f32 %v8300_v43, %v9268_v0  ;;  %v3310_v39 = vadd.f32 %v8300_v43, %v9269_v35  ;;  %v3311_v33 = vadd.f32 %v8300_v43, %v8164_v15 }
 0x70f   : > { %3822 = vst [vmem:[%s6848_s15 + $0x270] sm:$0xff] %v3295_v2  ;;  %3823 = vst [vmem:[%s6848_s15 + $0x278] sm:$0xff] %v3296_v25  ;;  %v3312_v48 = vadd.f32 %v8300_v43, %v8168_v22  ;;  %v3313_v16 = vadd.f32 %v8300_v43, %v8172_v59  ;;  %v3314_v41 = vadd.f32 %v8300_v43, %v8176_v14 }
 0x710   : > { %3824 = vst [vmem:[%s6848_s15 + $0x280] sm:$0xff] %v3297_v32  ;;  %3825 = vst [vmem:[%s6848_s15 + $0x288] sm:$0xff] %v3298_v38  ;;  %v3315_v15 = vadd.f32 %v8300_v43, %v8180_v4  ;;  %v3316_v22 = vadd.f32 %v8300_v43, %v8184_v51  ;;  %v3317_v59 = vadd.f32 %v8300_v43, %v8188_v23 }
 0x711   : > { %3826 = vst [vmem:[%s6848_s15 + $0x290] sm:$0xff] %v3299_v26  ;;  %3827 = vst [vmem:[%s6848_s15 + $0x298] sm:$0xff] %v3300_v31  ;;  %v3318_v14 = vadd.f32 %v8300_v43, %v8192_v17  ;;  %v3319_v4 = vadd.f32 %v8300_v43, %v8196_v19  ;;  %v3320_v51 = vadd.f32 %v8300_v43, %v8200_v29  ;;  %v9270_v29 = vld [vmem:[#allocation40_spill] sm:$0xff] }
 0x712   : > { %3828 = vst [vmem:[%s6848_s15 + $0x2a0] sm:$0xff] %v3301_v45  ;;  %3829 = vst [vmem:[%s6848_s15 + $0x2a8] sm:$0xff] %v3302_v8  ;;  %v3321_v23 = vadd.f32 %v8300_v43, %v8204_v42  ;;  %v3322_v17 = vadd.f32 %v8300_v43, %v8208_v10  ;;  %v3323_v19 = vadd.f32 %v8300_v43, %v8212_v50 }
 0x713   : > { %3830 = vst [vmem:[%s6848_s15 + $0x2b0] sm:$0xff] %v3303_v56  ;;  %3831 = vst [vmem:[%s6848_s15 + $0x2b8] sm:$0xff] %v3304_v60  ;;  %v3324_v52 = vadd.f32 %v8300_v43, %v9270_v29  ;;  %v3325_v42 = vadd.f32 %v8300_v43, %v9271_v55  ;;  %v3326_v10 = vadd.f32 %v8300_v43, %v8224_v49 }
 0x714   : > { %3832 = vst [vmem:[%s6848_s15 + $0x2c0] sm:$0xff] %v3305_v44  ;;  %3833 = vst [vmem:[%s6848_s15 + $0x2c8] sm:$0xff] %v3306_v58  ;;  %v3327_v50 = vadd.f32 %v8300_v43, %v8228_v20  ;;  %v3328_v1 = vadd.f32 %v8300_v43, %v8232_v5  ;;  %v3329_v49 = vadd.f32 %v8300_v43, %v8236_v6 }
 0x715   : > { %3834 = vst [vmem:[%s6848_s15 + $0x2d0] sm:$0xff] %v3307_v63  ;;  %3835 = vst [vmem:[%s6848_s15 + $0x2d8] sm:$0xff] %v3308_v13  ;;  %v3330_v37 = vadd.f32 %v8300_v43, %v8240_v21  ;;  %v3331_v20 = vadd.f32 %v8300_v43, %v8244_v34  ;;  %v3332_v5 = vadd.f32 %v8300_v43, %v8248_v27 }
 0x716   : > { %3836 = vst [vmem:[%s6848_s15 + $0x2e0] sm:$0xff] %v3309_v28  ;;  %3837 = vst [vmem:[%s6848_s15 + $0x2e8] sm:$0xff] %v3310_v39  ;;  %v3333_v6 = vadd.f32 %v8300_v43, %v8252_v7  ;;  %v3334_v21 = vadd.f32 %v8300_v43, %v8256_v30  ;;  %v3335_v34 = vadd.f32 %v8300_v43, %v8260_v24 }
 0x717   : > { %3838 = vst [vmem:[%s6848_s15 + $0x2f0] sm:$0xff] %v3311_v33  ;;  %3839 = vst [vmem:[%s6848_s15 + $0x2f8] sm:$0xff] %v3312_v48  ;;  %v3336_v27 = vadd.f32 %v8300_v43, %v8264_v54  ;;  %v3337_v57 = vadd.f32 %v8300_v43, %v8268_v40  ;;  %v3338_v7 = vadd.f32 %v8300_v43, %v8272_v62  ;;  %v9272_v62 = vld [vmem:[#allocation39_spill] sm:$0xff] }
 0x718   : > { %3840 = vst [vmem:[%s6848_s15 + $0x300] sm:$0xff] %v3313_v16  ;;  %3841 = vst [vmem:[%s6848_s15 + $0x308] sm:$0xff] %v3314_v41  ;;  %v3339_v30 = vadd.f32 %v8300_v43, %v8276_v36  ;;  %v3340_v24 = vadd.f32 %v8300_v43, %v8280_v53  ;;  %v3341_v54 = vadd.f32 %v8300_v43, %v8284_v12 }
 0x719   : > { %3842 = vst [vmem:[%s6848_s15 + $0x310] sm:$0xff] %v3315_v15  ;;  %3843 = vst [vmem:[%s6848_s15 + $0x318] sm:$0xff] %v3316_v22  ;;  %v3342_v40 = vadd.f32 %v8300_v43, %v8288_v46  ;;  %v3343_v36 = vadd.f32 %v8300_v43, %v9272_v62  ;;  %v3344_v53 = vadd.f32 %v8300_v43, %v8296_v18 }
 0x71a   : > { %3844 = vst [vmem:[%s6848_s15 + $0x320] sm:$0xff] %v3317_v59  ;;  %3845 = vst [vmem:[%s6848_s15 + $0x328] sm:$0xff] %v3318_v14 }
 0x71b   : > { %3846 = vst [vmem:[%s6848_s15 + $0x330] sm:$0xff] %v3319_v4  ;;  %3847 = vst [vmem:[%s6848_s15 + $0x338] sm:$0xff] %v3320_v51 }
 0x71c   : > { %3848 = vst [vmem:[%s6848_s15 + $0x340] sm:$0xff] %v3321_v23  ;;  %3849 = vst [vmem:[%s6848_s15 + $0x348] sm:$0xff] %v3322_v17 }
 0x71d   : > { %3850 = vst [vmem:[%s6848_s15 + $0x350] sm:$0xff] %v3323_v19  ;;  %3851 = vst [vmem:[%s6848_s15 + $0x358] sm:$0xff] %v3324_v52 }
 0x71e   : > { %3852 = vst [vmem:[%s6848_s15 + $0x360] sm:$0xff] %v3325_v42  ;;  %3853 = vst [vmem:[%s6848_s15 + $0x368] sm:$0xff] %v3326_v10 }
 0x71f   : > { %3854 = vst [vmem:[%s6848_s15 + $0x370] sm:$0xff] %v3327_v50  ;;  %3855 = vst [vmem:[%s6848_s15 + $0x378] sm:$0xff] %v3328_v1 }
 0x720   : > { %3856 = vst [vmem:[%s6848_s15 + $0x380] sm:$0xff] %v3329_v49  ;;  %3857 = vst [vmem:[%s6848_s15 + $0x388] sm:$0xff] %v3330_v37 }
 0x721   : > { %3858 = vst [vmem:[%s6848_s15 + $0x390] sm:$0xff] %v3331_v20  ;;  %3859 = vst [vmem:[%s6848_s15 + $0x398] sm:$0xff] %v3332_v5 }
 0x722   : > { %3860 = vst [vmem:[%s6848_s15 + $0x3a0] sm:$0xff] %v3333_v6  ;;  %3861 = vst [vmem:[%s6848_s15 + $0x3a8] sm:$0xff] %v3334_v21 }
 0x723   : > { %3862 = vst [vmem:[%s6848_s15 + $0x3b0] sm:$0xff] %v3335_v34  ;;  %3863 = vst [vmem:[%s6848_s15 + $0x3b8] sm:$0xff] %v3336_v27 }
 0x724   : > { %3864 = vst [vmem:[%s6848_s15 + $0x3c0] sm:$0xff] %v3337_v57  ;;  %3865 = vst [vmem:[%s6848_s15 + $0x3c8] sm:$0xff] %v3338_v7 }
 0x725   : > { %3866 = vst [vmem:[%s6848_s15 + $0x3d0] sm:$0xff] %v3339_v30  ;;  %3867 = vst [vmem:[%s6848_s15 + $0x3d8] sm:$0xff] %v3340_v24 }
 0x726   : > { %3868 = vst [vmem:[%s6848_s15 + $0x3e0] sm:$0xff] %v3341_v54  ;;  %3869 = vst [vmem:[%s6848_s15 + $0x3e8] sm:$0xff] %v3342_v40 }
 0x727   : > { %3870 = vst [vmem:[%s6848_s15 + $0x3f0] sm:$0xff] %v3343_v36  ;;  %3871 = vst [vmem:[%s6848_s15 + $0x3f8] sm:$0xff] %v3344_v53 }
 0x728   : > { %4683 = shalt.err (!%p4680_p6)
}
 0x729   : > { %s4684_s29 = scalar_lea.hbm %s8479_s17, 16384  ;;  %s4688_s23 = scalar_lea.hbm %s8551_s7, 49152 }
 0x72a   : > { %p4685_p2 = scmp.ne.s32.totalorder %s8479_s17, %s4684_s29  ;;  %p4689_p1 = scmp.lt.u32.totalorder %s8479_s17, %s8551_s7 }
 0x72b   : > { %p4690_p12 = scmp.lt.u32.totalorder %s4688_s23, %s4684_s29  ;;  %p4692_p4 = scmp.lt.u32.totalorder %s4684_s29, %s8479_s17 }
 0x72c   : > { %p4686_p13 = pnand %p4685_p2, %p9274_p10 }
 0x72d   : > { %p4691_p7 = por %p4690_p12, %p4689_p1 }
 0x72e   : > { %p4687_p5 = pneg %p4686_p13 }
 0x72f   : > { %p4693_p11 = por %p4692_p4, %p4691_p7 }
 0x731   : > { %p4694_p3 = pnand %p4693_p11, %p4687_p5 }
 0x733   : > { %4697 = shalt.err (!%p4694_p3)
}
 0x734   : > { %s4764_s18 = smov 128   ;;  %s4765_s13 = smov 8  }
 0x735   : > { %4330 = dma.vmem_to_hbm [thread:$0]  (%p9274_p10), %s8481_s1, 16384, %s8479_s17, %s3411_s26, %s4764_s18, %s4764_s18, %s4765_s13  }
 0x736 PF: > { %s9275_s30 = sld [smem:[#allocation21_spill]]  ;;  %s9276_s24 = sld [smem:[#allocation19_spill]] }
 0x737   : > { %s9277_s28 = sld [smem:[#allocation25_spill]] }
 0x73c   : > { %p4359_p9 = scmp.ge.s32.totalorder %s9275_s30, 2  ;;  %s3439_s15 = sand.u32 1, %s9276_s24  }
 0x73d   : > { %p9278_p8 = scmp.ne.s32.totalorder %s9277_s28, 0  ;;  %s3440_s14 = scalar_lea.sflag [#allocation4], %s3439_s15 }
 0x73f   : > { %p4353_p0 = pnand %p4359_p9, %p9278_p8 }
 0x741   : > { %4731 = dma.done.wait (!%p4353_p0), %s3440_s14, 16384  }
 0x742   : > { %4733 = vsyncadd (!%p4353_p0), %s3440_s14, 4294950912  ;;  %s9279_s27 = sld [smem:[#allocation22_spill]]  ;;  %s9280_s20 = sld [smem:[#allocation20_spill]] }
 0x743   : > { %s9281_s26 = sld [smem:[#allocation23_spill]]  ;;  %s9282_s24 = smov %s4740_s25 }
 0x748   : > { %p27_p6 = scmp.ge.s32.totalorder %s9279_s27, 5   ;;  %s9283_s25 = smov %s9280_s20 }
 0x74a   :  { %29 = sbr.rel (!%p27_p6) target bundleno = 13 (0xd), region = 147 }
 0x751   :  { %3445 = vsyncpa [#allocation3], 1 }
 0x752   :  { %3447 = vsyncpa [#allocation3 + $0x1], 1 }
 0x753   :  { %3448 = vsyncpa [#allocation6], 1 }
 0x754   :  { %3450 = vsyncpa [#allocation6 + $0x1], 1 }
 0x755   :  { %3451 = vsyncpa [#allocation9], 1 }
 0x756   :  { %3453 = vsyncpa [#allocation9 + $0x1], 1 }
 0x757   :  { %3454 = vsyncpa [#allocation12], 1 }
 0x758   :  { %3455 = vsyncpa [#allocation4], 1 }
 0x759   :  { %3457 = vsyncpa [#allocation4 + $0x1], 1 }

</bundles_post_ra>
